<compile_context>
chip_gen: v6e
topology: v6e:2x2x1
jax: 0.10.0
libtpu: 0.0.40
codegen_flags: <defaults>
</compile_context>

<pallas_src>
import jax
import jax.numpy as jnp
from jax import lax
from jax.experimental import pallas as pl
from jax.experimental.pallas import tpu as pltpu


# ----------------------------- constants ------------------------------------

_K1 = 16            # conv1 contraction dim (9 taps zero-padded to 16)
_C1 = 32            # conv1 output channels
_C2 = 64            # conv2 output channels
_PITCH = 16         # row pitch of zero-padded conv2 input (16x16 spatial grid, flat rows)
_PAD_ROWS = 288     # 16*18: padded conv2 input + zero slack rows (all tap reads in-bounds)
_CONV2_ROWS = 240   # conv2 output rows computed in the flat (row = 16*i + j) layout
_OUT_ROWS = 208     # rows kept after fused 2x2 pool; valid pooled value (p,q) at row 32p+2q


def _round_up(x, m):
    return (x + m - 1) // m * m


# ----------------------------- Pallas kernels -------------------------------

def _conv_pool_kernel(x1_ref, w1_ref, b1_ref, w2_ref, b2_ref, y_ref, pad_s):
    """Per-sample: conv1+relu+pool2x2 -> conv2+relu+pool2x2, all in VMEM."""
    # conv1 + bias + relu : single (784,16) @ (16,32) matmul, f32 accumulation.
    a1 = jnp.dot(x1_ref[0], w1_ref[...], preferred_element_type=jnp.float32)
    a1 = jnp.maximum(a1 + b1_ref[...], 0.0)                              # (784, 32)

    # fused 2x2 max-pool: im2col rows are pool-phase-major (4 blocks of 196 rows).
    pooled1 = jnp.maximum(
        jnp.maximum(a1[0:196], a1[196:392]),
        jnp.maximum(a1[392:588], a1[588:784]))                           # (196,32), row = 14p+q

    # zero-padded conv2 input in VMEM scratch (row = 16*i' + j', zeros on the border).
    pad_s[...] = jnp.zeros((_PAD_ROWS, _C1), dtype=pad_s.dtype)
    p1 = pooled1.astype(pad_s.dtype)
    for r in range(14):                                                  # interior rows
        pad_s[_PITCH * (r + 1) + 1:_PITCH * (r + 1) + 15, :] = p1[14 * r:14 * (r + 1), :]

    # conv2 as 9 shifted-slice matmuls straight out of VMEM (no HBM im2col).
    acc = jnp.zeros((_CONV2_ROWS, _C2), jnp.float32)
    for kh in range(3):
        for kw in range(3):
            k = kh * 3 + kw
            tap = pad_s[_PITCH * kh + kw:_PITCH * kh + kw + _CONV2_ROWS, :]   # (240,32) bf16
            acc = acc + jnp.dot(tap, w2_ref[32 * k:32 * (k + 1), :],
                                preferred_element_type=jnp.float32)
    h2 = jnp.maximum(acc + b2_ref[...], 0.0)                             # (240,64), row = 16i+j

    # fused 2x2 max-pool via shifted-slice maxes; valid result (p,q) lands at row 32p+2q.
    t1 = jnp.maximum(h2[0:224], h2[1:225])                               # max over (j, j+1)
    t2 = jnp.maximum(t1[0:_OUT_ROWS], t1[16:16 + _OUT_ROWS])             # max over (i, i+1)
    y_ref[0] = t2.astype(y_ref.dtype)


def _fc_kernel(x_ref, w1_ref, b1_ref, w2_ref, b2_ref, o_ref):
    """o = (relu(x @ w1 + b1)) @ w2 + b2 ; bf16 matmuls, f32 accumulation/bias."""
    h = jnp.dot(x_ref[...], w1_ref[...], preferred_element_type=jnp.float32)
    h = jnp.maximum(h + b1_ref[...], 0.0).astype(jnp.bfloat16)
    o = jnp.dot(h, w2_ref[...], preferred_element_type=jnp.float32) + b2_ref[...]
    o_ref[...] = o.astype(o_ref.dtype)


# ----------------------------- pallas_call wrappers --------------------------

def conv_block(x1, w1, b1, w2, b2):
    n = x1.shape[0]
    return pl.pallas_call(
        _conv_pool_kernel,
        out_shape=jax.ShapeDtypeStruct((n, _OUT_ROWS, _C2), jnp.bfloat16),
        grid=(n,),
        in_specs=[
            pl.BlockSpec((1, 784, _K1), lambda i: (i, 0, 0)),
            pl.BlockSpec((_K1, _C1), lambda i: (0, 0)),
            pl.BlockSpec((1, _C1), lambda i: (0, 0)),
            pl.BlockSpec((9 * _C1, _C2), lambda i: (0, 0)),
            pl.BlockSpec((1, _C2), lambda i: (0, 0)),
        ],
        out_specs=pl.BlockSpec((1, _OUT_ROWS, _C2), lambda i: (i, 0, 0)),
        scratch_shapes=[pltpu.VMEM((_PAD_ROWS, _C1), jnp.bfloat16)],
        compiler_params=pltpu.CompilerParams(dimension_semantics=("parallel",)),
        cost_estimate=pl.CostEstimate(
            flops=2 * n * (784 * _K1 * _C1 + 9 * _CONV2_ROWS * _C1 * _C2),
            transcendentals=0,
            bytes_accessed=n * (784 * _K1 * 2 + _OUT_ROWS * _C2 * 2)
                           + (_K1 * _C1 + 9 * _C1 * _C2) * 2 + (_C1 + _C2) * 4),
    )(x1, w1, b1, w2, b2)


def fc_block(feat, wf1, bf1, wf2, bf2):
    n = feat.shape[0]
    bm = min(128, _round_up(n, 8))            # batch-row tile (keeps VMEM small, pipelines)
    npad = _round_up(n, bm)
    if npad != n:
        feat = jnp.pad(feat, ((0, npad - n), (0, 0)))
    k = feat.shape[1]
    out = pl.pallas_call(
        _fc_kernel,
        out_shape=jax.ShapeDtypeStruct((npad, 10), jnp.float32),
        grid=(npad // bm,),
        in_specs=[
            pl.BlockSpec((bm, k), lambda i: (i, 0)),
            pl.BlockSpec((k, 128), lambda i: (0, 0)),
            pl.BlockSpec((1, 128), lambda i: (0, 0)),
            pl.BlockSpec((128, 10), lambda i: (0, 0)),
            pl.BlockSpec((1, 10), lambda i: (0, 0)),
        ],
        out_specs=pl.BlockSpec((bm, 10), lambda i: (i, 0)),
        compiler_params=pltpu.CompilerParams(dimension_semantics=("parallel",)),
        cost_estimate=pl.CostEstimate(
            flops=2 * npad * (k * 128 + 128 * 10),
            transcendentals=0,
            bytes_accessed=npad * (k * 2 + 10 * 4) + (k * 128 + 128 * 10) * 2 + (128 + 10) * 4),
    )(feat, wf1, bf1, wf2, bf2)
    return out[:n]


# ----------------------------- JAX glue --------------------------------------

def _conv1_phase_im2col(x_nchw):
    """Pool-phase-major im2col of the padded 1-channel input: (N, 784, 16) (taps padded 9->16).

    Row 196*(2*dh+dw) + 14*p + q, tap k = kh*3+kw  ==  x_pad[n, 2p+dh+kh, 2q+dw+kw].
    This is ~25 KB/sample (bf16) of extra HBM traffic; conv1 is latency/BW-trivial so the
    big conv2 im2col blow-up is the one eliminated (done in-VMEM inside the kernel).
    """
    n = x_nchw.shape[0]
    xp = jnp.pad(x_nchw[:, 0], ((0, 0), (1, 1), (1, 1)))                 # (N, 30, 30)
    zero = jnp.zeros((n, 14, 14), xp.dtype)
    blocks = []
    for dh in range(2):
        for dw in range(2):
            taps = [xp[:, dh + kh:dh + kh + 28:2, dw + kw:dw + kw + 28:2]
                    for kh in range(3) for kw in range(3)]
            taps += [zero] * (_K1 - 9)
            blocks.append(jnp.stack(taps, axis=-1).reshape(n, 196, _K1))
    return jnp.concatenate(blocks, axis=1)                               # (N, 784, 16)


def digit_classifier_forward(x_nchw, prep):
    n = x_nchw.shape[0]
    x1 = _conv1_phase_im2col(x_nchw).astype(jnp.bfloat16)
    y = conv_block(x1, prep["w1"], prep["b1"], prep["w2"], prep["b2"])   # (N, 208, 64) bf16
    # valid pooled conv2 outputs live at flat rows 32p+2q -> crop to (N,7,7,64); the resulting
    # (p, q, c) feature order is what the pre-permuted fc1 weight consumes (== torch.flatten).
    feat = y.reshape(n, 13, 16, _C2)[:, 0:13:2, 0:14:2, :].reshape(n, 7 * 7 * _C2)
    return fc_block(feat, prep["wf1"], prep["bf1"], prep["wf2"], prep["bf2"])


# ----------------------------- parameters ------------------------------------

def init_params(key):
    ks = jax.random.split(key, 8)

    def u(k, shape, fan_in):
        bound = 1.0 / jnp.sqrt(jnp.float32(fan_in))
        return jax.random.uniform(k, shape, jnp.float32, -bound, bound)

    return {
        # PyTorch layouts: conv weights (Cout, Cin, KH, KW), linear weights (out, in)
        "conv1_w": u(ks[0], (32, 1, 3, 3), 1 * 9),
        "conv1_b": u(ks[1], (32,), 1 * 9),
        "conv2_w": u(ks[2], (64, 32, 3, 3), 32 * 9),
        "conv2_b": u(ks[3], (64,), 32 * 9),
        "fc1_w": u(ks[4], (128, 64 * 7 * 7), 64 * 7 * 7),
        "fc1_b": u(ks[5], (128,), 64 * 7 * 7),
        "fc2_w": u(ks[6], (10, 128), 128),
        "fc2_b": u(ks[7], (10,), 128),
    }


def prepare_params(params):
    """One-time (outside jit) repack of torch-layout params into kernel-ready matrices."""
    w1 = params["conv1_w"].reshape(32, 9).T                              # (9,32), row = kh*3+kw
    w1 = jnp.concatenate([w1, jnp.zeros((_K1 - 9, 32), w1.dtype)], axis=0)
    w2 = jnp.transpose(params["conv2_w"], (2, 3, 1, 0)).reshape(9 * 32, 64)   # row=(kh*3+kw)*32+ci
    # fold torch.flatten's (c, p, q) order into fc1: rows ordered (p, q, c) to match `feat`.
    wf1 = params["fc1_w"].reshape(128, 64, 7, 7).transpose(2, 3, 1, 0).reshape(3136, 128)
    return {
        "w1": w1.astype(jnp.bfloat16),
        "b1": params["conv1_b"].reshape(1, 32).astype(jnp.float32),
        "w2": w2.astype(jnp.bfloat16),
        "b2": params["conv2_b"].reshape(1, 64).astype(jnp.float32),
        "wf1": wf1.astype(jnp.bfloat16),
        "bf1": params["fc1_b"].reshape(1, 128).astype(jnp.float32),
        "wf2": params["fc2_w"].T.astype(jnp.bfloat16),
        "bf2": params["fc2_b"].reshape(1, 10).astype(jnp.float32),
    }


# ----------------------------- reference (pure JAX, f32) ---------------------

def reference_forward(x, params):
    y = lax.conv_general_dilated(x, params["conv1_w"], (1, 1), ((1, 1), (1, 1)),
                                 dimension_numbers=("NCHW", "OIHW", "NCHW"))
    y = jax.nn.relu(y + params["conv1_b"][None, :, None, None])
    y = lax.reduce_window(y, -jnp.inf, lax.max, (1, 1, 2, 2), (1, 1, 2, 2), "VALID")
    y = lax.conv_general_dilated(y, params["conv2_w"], (1, 1), ((1, 1), (1, 1)),
                                 dimension_numbers=("NCHW", "OIHW", "NCHW"))
    y = jax.nn.relu(y + params["conv2_b"][None, :, None, None])
    y = lax.reduce_window(y, -jnp.inf, lax.max, (1, 1, 2, 2), (1, 1, 2, 2), "VALID")
    y = y.reshape(y.shape[0], -1)
    y = jax.nn.relu(y @ params["fc1_w"].T + params["fc1_b"])
    return y @ params["fc2_w"].T + params["fc2_b"]


# ----------------------------- main ------------------------------------------

if __name__ == "__main__":
    key = jax.random.PRNGKey(0)
    pkey, xkey = jax.random.split(key)
    params = init_params(pkey)
    prep = prepare_params(params)

    # fc1 expects 64*7*7 -> 28x28 single-channel inputs (MNIST-like); small batch of 2.
    x = jax.random.normal(xkey, (2, 1, 28, 28), jnp.float32)

    fwd = jax.jit(digit_classifier_forward)
    out = fwd(x, prep)
    jax.block_until_ready(out)
    assert out.shape == (2, 10) and out.dtype == jnp.float32

    ref = reference_forward(x, params)
    err = float(jnp.max(jnp.abs(out - ref)))
    assert err < 8e-2, f"mismatch vs f32 reference: max abs err {err}"
    print("KERNEL_OK")
</pallas_src>

<mosaic_0001>
module attributes {stable_mosaic.version = 11 : i64} {
  func.func @_conv_pool_kernel(%arg0: i32, %arg1: memref<1x784x16xbf16, #tpu.memory_space<vmem>>, %arg2: memref<16x32xbf16, #tpu.memory_space<vmem>>, %arg3: memref<1x32xf32, #tpu.memory_space<vmem>>, %arg4: memref<288x64xbf16, #tpu.memory_space<vmem>>, %arg5: memref<1x64xf32, #tpu.memory_space<vmem>>, %arg6: memref<1x208x64xbf16, #tpu.memory_space<vmem>>, %arg7: memref<288x32xbf16, #tpu.memory_space<vmem>>) attributes {dimension_semantics = [#tpu.dimension_semantics<parallel>], iteration_bounds = array<i64: 2>, scalar_prefetch = 0 : i64, scratch_operands = 1 : i64, tpu.core_type = #tpu.core_type<tc>, window_params = [{transform_indices = @transform_0, window_bounds = array<i64: 1, 784, 16>}, {pipeline_mode = #tpu.pipeline_mode<synchronous>, transform_indices = @transform_1, window_bounds = array<i64: 16, 32>}, {pipeline_mode = #tpu.pipeline_mode<synchronous>, transform_indices = @transform_2, window_bounds = array<i64: 1, 32>}, {pipeline_mode = #tpu.pipeline_mode<synchronous>, transform_indices = @transform_3, window_bounds = array<i64: 288, 64>}, {pipeline_mode = #tpu.pipeline_mode<synchronous>, transform_indices = @transform_4, window_bounds = array<i64: 1, 64>}, {transform_indices = @transform_5, window_bounds = array<i64: 1, 208, 64>}]} {
    %c0 = arith.constant 0 : index
    %c0_0 = arith.constant 0 : index
    %c0_1 = arith.constant 0 : index
    %0 = vector.load %arg1[%c0, %c0_0, %c0_1] : memref<1x784x16xbf16, #tpu.memory_space<vmem>>, vector<1x784x16xbf16>
    %1 = vector.shape_cast %0 : vector<1x784x16xbf16> to vector<784x16xbf16>
    %c0_2 = arith.constant 0 : index
    %c0_3 = arith.constant 0 : index
    %2 = vector.load %arg2[%c0_2, %c0_3] : memref<16x32xbf16, #tpu.memory_space<vmem>>, vector<16x32xbf16>
    %cst = arith.constant dense<0.000000e+00> : vector<784x32xf32>
    %3 = tpu.matmul %1, %2, %cst {dimension_numbers = #tpu.dot_dimension_numbers<[1], [0], [0], [1], [0, 0, 1, 1], [], []>} : vector<784x16xbf16>, vector<16x32xbf16>, vector<784x32xf32> -> vector<784x32xf32>
    %c0_4 = arith.constant 0 : index
    %c0_5 = arith.constant 0 : index
    %4 = vector.load %arg3[%c0_4, %c0_5] : memref<1x32xf32, #tpu.memory_space<vmem>>, vector<1x32xf32>
    %5 = vector.broadcast %4 : vector<1x32xf32> to vector<784x32xf32>
    %6 = arith.addf %3, %5 : vector<784x32xf32>
    %cst_6 = arith.constant 0.000000e+00 : f32
    %7 = vector.broadcast %cst_6 : f32 to vector<784x32xf32>
    %8 = arith.maximumf %6, %7 : vector<784x32xf32>
    %9 = vector.extract_strided_slice %8 {offsets = [0, 0], sizes = [196, 32], strides = [1, 1]} : vector<784x32xf32> to vector<196x32xf32>
    %10 = vector.extract_strided_slice %8 {offsets = [196, 0], sizes = [196, 32], strides = [1, 1]} : vector<784x32xf32> to vector<196x32xf32>
    %11 = arith.maximumf %9, %10 : vector<196x32xf32>
    %12 = vector.extract_strided_slice %8 {offsets = [392, 0], sizes = [196, 32], strides = [1, 1]} : vector<784x32xf32> to vector<196x32xf32>
    %13 = vector.extract_strided_slice %8 {offsets = [588, 0], sizes = [196, 32], strides = [1, 1]} : vector<784x32xf32> to vector<196x32xf32>
    %14 = arith.maximumf %12, %13 : vector<196x32xf32>
    %15 = arith.maximumf %11, %14 : vector<196x32xf32>
    %cst_7 = arith.constant 0.000000e+00 : bf16
    %16 = vector.broadcast %cst_7 : bf16 to vector<288x32xbf16>
    %c0_8 = arith.constant 0 : index
    %c0_9 = arith.constant 0 : index
    %17 = vector.load %arg7[%c0_8, %c0_9] : memref<288x32xbf16, #tpu.memory_space<vmem>>, vector<288x32xbf16>
    tpu.vector_store %arg7[%c0_8, %c0_9], %16 {strides = array<i32>} : memref<288x32xbf16, #tpu.memory_space<vmem>>, vector<288x32xbf16>,
    %18 = arith.truncf %15 : vector<196x32xf32> to vector<196x32xbf16>
    %19 = vector.extract_strided_slice %18 {offsets = [0, 0], sizes = [14, 32], strides = [1, 1]} : vector<196x32xbf16> to vector<14x32xbf16>
    %c17 = arith.constant 17 : index
    %c0_10 = arith.constant 0 : index
    %20 = vector.load %arg7[%c17, %c0_10] : memref<288x32xbf16, #tpu.memory_space<vmem>>, vector<14x32xbf16>
    tpu.vector_store %arg7[%c17, %c0_10], %19 {strides = array<i32>} : memref<288x32xbf16, #tpu.memory_space<vmem>>, vector<14x32xbf16>,
    %21 = vector.extract_strided_slice %18 {offsets = [14, 0], sizes = [14, 32], strides = [1, 1]} : vector<196x32xbf16> to vector<14x32xbf16>
    %c33 = arith.constant 33 : index
    %c0_11 = arith.constant 0 : index
    %22 = vector.load %arg7[%c33, %c0_11] : memref<288x32xbf16, #tpu.memory_space<vmem>>, vector<14x32xbf16>
    tpu.vector_store %arg7[%c33, %c0_11], %21 {strides = array<i32>} : memref<288x32xbf16, #tpu.memory_space<vmem>>, vector<14x32xbf16>,
    %23 = vector.extract_strided_slice %18 {offsets = [28, 0], sizes = [14, 32], strides = [1, 1]} : vector<196x32xbf16> to vector<14x32xbf16>
    %c49 = arith.constant 49 : index
    %c0_12 = arith.constant 0 : index
    %24 = vector.load %arg7[%c49, %c0_12] : memref<288x32xbf16, #tpu.memory_space<vmem>>, vector<14x32xbf16>
    tpu.vector_store %arg7[%c49, %c0_12], %23 {strides = array<i32>} : memref<288x32xbf16, #tpu.memory_space<vmem>>, vector<14x32xbf16>,
    %25 = vector.extract_strided_slice %18 {offsets = [42, 0], sizes = [14, 32], strides = [1, 1]} : vector<196x32xbf16> to vector<14x32xbf16>
    %c65 = arith.constant 65 : index
    %c0_13 = arith.constant 0 : index
    %26 = vector.load %arg7[%c65, %c0_13] : memref<288x32xbf16, #tpu.memory_space<vmem>>, vector<14x32xbf16>
    tpu.vector_store %arg7[%c65, %c0_13], %25 {strides = array<i32>} : memref<288x32xbf16, #tpu.memory_space<vmem>>, vector<14x32xbf16>,
    %27 = vector.extract_strided_slice %18 {offsets = [56, 0], sizes = [14, 32], strides = [1, 1]} : vector<196x32xbf16> to vector<14x32xbf16>
    %c81 = arith.constant 81 : index
    %c0_14 = arith.constant 0 : index
    %28 = vector.load %arg7[%c81, %c0_14] : memref<288x32xbf16, #tpu.memory_space<vmem>>, vector<14x32xbf16>
    tpu.vector_store %arg7[%c81, %c0_14], %27 {strides = array<i32>} : memref<288x32xbf16, #tpu.memory_space<vmem>>, vector<14x32xbf16>,
    %29 = vector.extract_strided_slice %18 {offsets = [70, 0], sizes = [14, 32], strides = [1, 1]} : vector<196x32xbf16> to vector<14x32xbf16>
    %c97 = arith.constant 97 : index
    %c0_15 = arith.constant 0 : index
    %30 = vector.load %arg7[%c97, %c0_15] : memref<288x32xbf16, #tpu.memory_space<vmem>>, vector<14x32xbf16>
    tpu.vector_store %arg7[%c97, %c0_15], %29 {strides = array<i32>} : memref<288x32xbf16, #tpu.memory_space<vmem>>, vector<14x32xbf16>,
    %31 = vector.extract_strided_slice %18 {offsets = [84, 0], sizes = [14, 32], strides = [1, 1]} : vector<196x32xbf16> to vector<14x32xbf16>
    %c113 = arith.constant 113 : index
    %c0_16 = arith.constant 0 : index
    %32 = vector.load %arg7[%c113, %c0_16] : memref<288x32xbf16, #tpu.memory_space<vmem>>, vector<14x32xbf16>
    tpu.vector_store %arg7[%c113, %c0_16], %31 {strides = array<i32>} : memref<288x32xbf16, #tpu.memory_space<vmem>>, vector<14x32xbf16>,
    %33 = vector.extract_strided_slice %18 {offsets = [98, 0], sizes = [14, 32], strides = [1, 1]} : vector<196x32xbf16> to vector<14x32xbf16>
    %c129 = arith.constant 129 : index
    %c0_17 = arith.constant 0 : index
    %34 = vector.load %arg7[%c129, %c0_17] : memref<288x32xbf16, #tpu.memory_space<vmem>>, vector<14x32xbf16>
    tpu.vector_store %arg7[%c129, %c0_17], %33 {strides = array<i32>} : memref<288x32xbf16, #tpu.memory_space<vmem>>, vector<14x32xbf16>,
    %35 = vector.extract_strided_slice %18 {offsets = [112, 0], sizes = [14, 32], strides = [1, 1]} : vector<196x32xbf16> to vector<14x32xbf16>
    %c145 = arith.constant 145 : index
    %c0_18 = arith.constant 0 : index
    %36 = vector.load %arg7[%c145, %c0_18] : memref<288x32xbf16, #tpu.memory_space<vmem>>, vector<14x32xbf16>
    tpu.vector_store %arg7[%c145, %c0_18], %35 {strides = array<i32>} : memref<288x32xbf16, #tpu.memory_space<vmem>>, vector<14x32xbf16>,
    %37 = vector.extract_strided_slice %18 {offsets = [126, 0], sizes = [14, 32], strides = [1, 1]} : vector<196x32xbf16> to vector<14x32xbf16>
    %c161 = arith.constant 161 : index
    %c0_19 = arith.constant 0 : index
    %38 = vector.load %arg7[%c161, %c0_19] : memref<288x32xbf16, #tpu.memory_space<vmem>>, vector<14x32xbf16>
    tpu.vector_store %arg7[%c161, %c0_19], %37 {strides = array<i32>} : memref<288x32xbf16, #tpu.memory_space<vmem>>, vector<14x32xbf16>,
    %39 = vector.extract_strided_slice %18 {offsets = [140, 0], sizes = [14, 32], strides = [1, 1]} : vector<196x32xbf16> to vector<14x32xbf16>
    %c177 = arith.constant 177 : index
    %c0_20 = arith.constant 0 : index
    %40 = vector.load %arg7[%c177, %c0_20] : memref<288x32xbf16, #tpu.memory_space<vmem>>, vector<14x32xbf16>
    tpu.vector_store %arg7[%c177, %c0_20], %39 {strides = array<i32>} : memref<288x32xbf16, #tpu.memory_space<vmem>>, vector<14x32xbf16>,
    %41 = vector.extract_strided_slice %18 {offsets = [154, 0], sizes = [14, 32], strides = [1, 1]} : vector<196x32xbf16> to vector<14x32xbf16>
    %c193 = arith.constant 193 : index
    %c0_21 = arith.constant 0 : index
    %42 = vector.load %arg7[%c193, %c0_21] : memref<288x32xbf16, #tpu.memory_space<vmem>>, vector<14x32xbf16>
    tpu.vector_store %arg7[%c193, %c0_21], %41 {strides = array<i32>} : memref<288x32xbf16, #tpu.memory_space<vmem>>, vector<14x32xbf16>,
    %43 = vector.extract_strided_slice %18 {offsets = [168, 0], sizes = [14, 32], strides = [1, 1]} : vector<196x32xbf16> to vector<14x32xbf16>
    %c209 = arith.constant 209 : index
    %c0_22 = arith.constant 0 : index
    %44 = vector.load %arg7[%c209, %c0_22] : memref<288x32xbf16, #tpu.memory_space<vmem>>, vector<14x32xbf16>
    tpu.vector_store %arg7[%c209, %c0_22], %43 {strides = array<i32>} : memref<288x32xbf16, #tpu.memory_space<vmem>>, vector<14x32xbf16>,
    %45 = vector.extract_strided_slice %18 {offsets = [182, 0], sizes = [14, 32], strides = [1, 1]} : vector<196x32xbf16> to vector<14x32xbf16>
    %c225 = arith.constant 225 : index
    %c0_23 = arith.constant 0 : index
    %46 = vector.load %arg7[%c225, %c0_23] : memref<288x32xbf16, #tpu.memory_space<vmem>>, vector<14x32xbf16>
    tpu.vector_store %arg7[%c225, %c0_23], %45 {strides = array<i32>} : memref<288x32xbf16, #tpu.memory_space<vmem>>, vector<14x32xbf16>,
    %cst_24 = arith.constant 0.000000e+00 : f32
    %47 = vector.broadcast %cst_24 : f32 to vector<240x64xf32>
    %c0_25 = arith.constant 0 : index
    %c0_26 = arith.constant 0 : index
    %48 = vector.load %arg7[%c0_25, %c0_26] : memref<288x32xbf16, #tpu.memory_space<vmem>>, vector<240x32xbf16>
    %c0_27 = arith.constant 0 : index
    %c0_28 = arith.constant 0 : index
    %49 = vector.load %arg4[%c0_27, %c0_28] : memref<288x64xbf16, #tpu.memory_space<vmem>>, vector<32x64xbf16>
    %cst_29 = arith.constant dense<0.000000e+00> : vector<240x64xf32>
    %50 = tpu.matmul %48, %49, %cst_29 {dimension_numbers = #tpu.dot_dimension_numbers<[1], [0], [0], [1], [0, 0, 1, 1], [], []>} : vector<240x32xbf16>, vector<32x64xbf16>, vector<240x64xf32> -> vector<240x64xf32>
    %51 = arith.addf %47, %50 : vector<240x64xf32>
    %c1 = arith.constant 1 : index
    %c0_30 = arith.constant 0 : index
    %52 = vector.load %arg7[%c1, %c0_30] : memref<288x32xbf16, #tpu.memory_space<vmem>>, vector<240x32xbf16>
    %c32 = arith.constant 32 : index
    %c0_31 = arith.constant 0 : index
    %53 = vector.load %arg4[%c32, %c0_31] : memref<288x64xbf16, #tpu.memory_space<vmem>>, vector<32x64xbf16>
    %cst_32 = arith.constant dense<0.000000e+00> : vector<240x64xf32>
    %54 = tpu.matmul %52, %53, %cst_32 {dimension_numbers = #tpu.dot_dimension_numbers<[1], [0], [0], [1], [0, 0, 1, 1], [], []>} : vector<240x32xbf16>, vector<32x64xbf16>, vector<240x64xf32> -> vector<240x64xf32>
    %55 = arith.addf %51, %54 : vector<240x64xf32>
    %c2 = arith.constant 2 : index
    %c0_33 = arith.constant 0 : index
    %56 = vector.load %arg7[%c2, %c0_33] : memref<288x32xbf16, #tpu.memory_space<vmem>>, vector<240x32xbf16>
    %c64 = arith.constant 64 : index
    %c0_34 = arith.constant 0 : index
    %57 = vector.load %arg4[%c64, %c0_34] : memref<288x64xbf16, #tpu.memory_space<vmem>>, vector<32x64xbf16>
    %cst_35 = arith.constant dense<0.000000e+00> : vector<240x64xf32>
    %58 = tpu.matmul %56, %57, %cst_35 {dimension_numbers = #tpu.dot_dimension_numbers<[1], [0], [0], [1], [0, 0, 1, 1], [], []>} : vector<240x32xbf16>, vector<32x64xbf16>, vector<240x64xf32> -> vector<240x64xf32>
    %59 = arith.addf %55, %58 : vector<240x64xf32>
    %c16 = arith.constant 16 : index
    %c0_36 = arith.constant 0 : index
    %60 = vector.load %arg7[%c16, %c0_36] : memref<288x32xbf16, #tpu.memory_space<vmem>>, vector<240x32xbf16>
    %c96 = arith.constant 96 : index
    %c0_37 = arith.constant 0 : index
    %61 = vector.load %arg4[%c96, %c0_37] : memref<288x64xbf16, #tpu.memory_space<vmem>>, vector<32x64xbf16>
    %cst_38 = arith.constant dense<0.000000e+00> : vector<240x64xf32>
    %62 = tpu.matmul %60, %61, %cst_38 {dimension_numbers = #tpu.dot_dimension_numbers<[1], [0], [0], [1], [0, 0, 1, 1], [], []>} : vector<240x32xbf16>, vector<32x64xbf16>, vector<240x64xf32> -> vector<240x64xf32>
    %63 = arith.addf %59, %62 : vector<240x64xf32>
    %c17_39 = arith.constant 17 : index
    %c0_40 = arith.constant 0 : index
    %64 = vector.load %arg7[%c17_39, %c0_40] : memref<288x32xbf16, #tpu.memory_space<vmem>>, vector<240x32xbf16>
    %c128 = arith.constant 128 : index
    %c0_41 = arith.constant 0 : index
    %65 = vector.load %arg4[%c128, %c0_41] : memref<288x64xbf16, #tpu.memory_space<vmem>>, vector<32x64xbf16>
    %cst_42 = arith.constant dense<0.000000e+00> : vector<240x64xf32>
    %66 = tpu.matmul %64, %65, %cst_42 {dimension_numbers = #tpu.dot_dimension_numbers<[1], [0], [0], [1], [0, 0, 1, 1], [], []>} : vector<240x32xbf16>, vector<32x64xbf16>, vector<240x64xf32> -> vector<240x64xf32>
    %67 = arith.addf %63, %66 : vector<240x64xf32>
    %c18 = arith.constant 18 : index
    %c0_43 = arith.constant 0 : index
    %68 = vector.load %arg7[%c18, %c0_43] : memref<288x32xbf16, #tpu.memory_space<vmem>>, vector<240x32xbf16>
    %c160 = arith.constant 160 : index
    %c0_44 = arith.constant 0 : index
    %69 = vector.load %arg4[%c160, %c0_44] : memref<288x64xbf16, #tpu.memory_space<vmem>>, vector<32x64xbf16>
    %cst_45 = arith.constant dense<0.000000e+00> : vector<240x64xf32>
    %70 = tpu.matmul %68, %69, %cst_45 {dimension_numbers = #tpu.dot_dimension_numbers<[1], [0], [0], [1], [0, 0, 1, 1], [], []>} : vector<240x32xbf16>, vector<32x64xbf16>, vector<240x64xf32> -> vector<240x64xf32>
    %71 = arith.addf %67, %70 : vector<240x64xf32>
    %c32_46 = arith.constant 32 : index
    %c0_47 = arith.constant 0 : index
    %72 = vector.load %arg7[%c32_46, %c0_47] : memref<288x32xbf16, #tpu.memory_space<vmem>>, vector<240x32xbf16>
    %c192 = arith.constant 192 : index
    %c0_48 = arith.constant 0 : index
    %73 = vector.load %arg4[%c192, %c0_48] : memref<288x64xbf16, #tpu.memory_space<vmem>>, vector<32x64xbf16>
    %cst_49 = arith.constant dense<0.000000e+00> : vector<240x64xf32>
    %74 = tpu.matmul %72, %73, %cst_49 {dimension_numbers = #tpu.dot_dimension_numbers<[1], [0], [0], [1], [0, 0, 1, 1], [], []>} : vector<240x32xbf16>, vector<32x64xbf16>, vector<240x64xf32> -> vector<240x64xf32>
    %75 = arith.addf %71, %74 : vector<240x64xf32>
    %c33_50 = arith.constant 33 : index
    %c0_51 = arith.constant 0 : index
    %76 = vector.load %arg7[%c33_50, %c0_51] : memref<288x32xbf16, #tpu.memory_space<vmem>>, vector<240x32xbf16>
    %c224 = arith.constant 224 : index
    %c0_52 = arith.constant 0 : index
    %77 = vector.load %arg4[%c224, %c0_52] : memref<288x64xbf16, #tpu.memory_space<vmem>>, vector<32x64xbf16>
    %cst_53 = arith.constant dense<0.000000e+00> : vector<240x64xf32>
    %78 = tpu.matmul %76, %77, %cst_53 {dimension_numbers = #tpu.dot_dimension_numbers<[1], [0], [0], [1], [0, 0, 1, 1], [], []>} : vector<240x32xbf16>, vector<32x64xbf16>, vector<240x64xf32> -> vector<240x64xf32>
    %79 = arith.addf %75, %78 : vector<240x64xf32>
    %c34 = arith.constant 34 : index
    %c0_54 = arith.constant 0 : index
    %80 = vector.load %arg7[%c34, %c0_54] : memref<288x32xbf16, #tpu.memory_space<vmem>>, vector<240x32xbf16>
    %c256 = arith.constant 256 : index
    %c0_55 = arith.constant 0 : index
    %81 = vector.load %arg4[%c256, %c0_55] : memref<288x64xbf16, #tpu.memory_space<vmem>>, vector<32x64xbf16>
    %cst_56 = arith.constant dense<0.000000e+00> : vector<240x64xf32>
    %82 = tpu.matmul %80, %81, %cst_56 {dimension_numbers = #tpu.dot_dimension_numbers<[1], [0], [0], [1], [0, 0, 1, 1], [], []>} : vector<240x32xbf16>, vector<32x64xbf16>, vector<240x64xf32> -> vector<240x64xf32>
    %83 = arith.addf %79, %82 : vector<240x64xf32>
    %c0_57 = arith.constant 0 : index
    %c0_58 = arith.constant 0 : index
    %84 = vector.load %arg5[%c0_57, %c0_58] : memref<1x64xf32, #tpu.memory_space<vmem>>, vector<1x64xf32>
    %85 = vector.broadcast %84 : vector<1x64xf32> to vector<240x64xf32>
    %86 = arith.addf %83, %85 : vector<240x64xf32>
    %cst_59 = arith.constant 0.000000e+00 : f32
    %87 = vector.broadcast %cst_59 : f32 to vector<240x64xf32>
    %88 = arith.maximumf %86, %87 : vector<240x64xf32>
    %89 = vector.extract_strided_slice %88 {offsets = [0, 0], sizes = [224, 64], strides = [1, 1]} : vector<240x64xf32> to vector<224x64xf32>
    %90 = vector.extract_strided_slice %88 {offsets = [1, 0], sizes = [224, 64], strides = [1, 1]} : vector<240x64xf32> to vector<224x64xf32>
    %91 = arith.maximumf %89, %90 : vector<224x64xf32>
    %92 = vector.extract_strided_slice %91 {offsets = [0, 0], sizes = [208, 64], strides = [1, 1]} : vector<224x64xf32> to vector<208x64xf32>
    %93 = vector.extract_strided_slice %91 {offsets = [16, 0], sizes = [208, 64], strides = [1, 1]} : vector<224x64xf32> to vector<208x64xf32>
    %94 = arith.maximumf %92, %93 : vector<208x64xf32>
    %95 = arith.truncf %94 : vector<208x64xf32> to vector<208x64xbf16>
    %c0_60 = arith.constant 0 : index
    %c0_61 = arith.constant 0 : index
    %c0_62 = arith.constant 0 : index
    %96 = vector.load %arg6[%c0_60, %c0_61, %c0_62] : memref<1x208x64xbf16, #tpu.memory_space<vmem>>, vector<1x208x64xbf16>
    %97 = vector.shape_cast %96 : vector<1x208x64xbf16> to vector<208x64xbf16>
    %98 = vector.shape_cast %95 : vector<208x64xbf16> to vector<1x208x64xbf16>
    tpu.vector_store %arg6[%c0_60, %c0_61, %c0_62], %98 {strides = array<i32>} : memref<1x208x64xbf16, #tpu.memory_space<vmem>>, vector<1x208x64xbf16>,
    return
  }
  func.func @transform_0(%arg0: i32) -> (i32, i32, i32) {
    %c0_i32 = arith.constant 0 : i32
    %c0_i32_0 = arith.constant 0 : i32
    %c0_i32_1 = arith.constant 0 : i32
    return %arg0, %c0_i32, %c0_i32_0 : i32, i32, i32
  }
  func.func @transform_1(%arg0: i32) -> (i32, i32) {
    %c0_i32 = arith.constant 0 : i32
    %c0_i32_0 = arith.constant 0 : i32
    %c0_i32_1 = arith.constant 0 : i32
    return %c0_i32, %c0_i32_0 : i32, i32
  }
  func.func @transform_2(%arg0: i32) -> (i32, i32) {
    %c0_i32 = arith.constant 0 : i32
    %c0_i32_0 = arith.constant 0 : i32
    %c0_i32_1 = arith.constant 0 : i32
    return %c0_i32, %c0_i32_0 : i32, i32
  }
  func.func @transform_3(%arg0: i32) -> (i32, i32) {
    %c0_i32 = arith.constant 0 : i32
    %c0_i32_0 = arith.constant 0 : i32
    %c0_i32_1 = arith.constant 0 : i32
    return %c0_i32, %c0_i32_0 : i32, i32
  }
  func.func @transform_4(%arg0: i32) -> (i32, i32) {
    %c0_i32 = arith.constant 0 : i32
    %c0_i32_0 = arith.constant 0 : i32
    %c0_i32_1 = arith.constant 0 : i32
    return %c0_i32, %c0_i32_0 : i32, i32
  }
  func.func @transform_5(%arg0: i32) -> (i32, i32, i32) {
    %c0_i32 = arith.constant 0 : i32
    %c0_i32_0 = arith.constant 0 : i32
    %c0_i32_1 = arith.constant 0 : i32
    return %arg0, %c0_i32, %c0_i32_0 : i32, i32, i32
  }
}

module attributes {stable_mosaic.version = 11 : i64} {
  func.func @_fc_kernel(%arg0: i32, %arg1: memref<8x3136xbf16, #tpu.memory_space<vmem>>, %arg2: memref<3136x128xbf16, #tpu.memory_space<vmem>>, %arg3: memref<1x128xf32, #tpu.memory_space<vmem>>, %arg4: memref<128x10xbf16, #tpu.memory_space<vmem>>, %arg5: memref<1x10xf32, #tpu.memory_space<vmem>>, %arg6: memref<8x10xf32, #tpu.memory_space<vmem>>) attributes {dimension_semantics = [#tpu.dimension_semantics<parallel>], iteration_bounds = array<i64: 1>, scalar_prefetch = 0 : i64, scratch_operands = 0 : i64, tpu.core_type = #tpu.core_type<tc>, window_params = [{transform_indices = @transform_0, window_bounds = array<i64: 8, 3136>}, {pipeline_mode = #tpu.pipeline_mode<synchronous>, transform_indices = @transform_1, window_bounds = array<i64: 3136, 128>}, {pipeline_mode = #tpu.pipeline_mode<synchronous>, transform_indices = @transform_2, window_bounds = array<i64: 1, 128>}, {pipeline_mode = #tpu.pipeline_mode<synchronous>, transform_indices = @transform_3, window_bounds = array<i64: 128, 10>}, {pipeline_mode = #tpu.pipeline_mode<synchronous>, transform_indices = @transform_4, window_bounds = array<i64: 1, 10>}, {transform_indices = @transform_5, window_bounds = array<i64: 8, 10>}]} {
    %c0 = arith.constant 0 : index
    %c0_0 = arith.constant 0 : index
    %0 = vector.load %arg1[%c0, %c0_0] : memref<8x3136xbf16, #tpu.memory_space<vmem>>, vector<8x3136xbf16>
    %c0_1 = arith.constant 0 : index
    %c0_2 = arith.constant 0 : index
    %1 = vector.load %arg2[%c0_1, %c0_2] : memref<3136x128xbf16, #tpu.memory_space<vmem>>, vector<3136x128xbf16>
    %cst = arith.constant dense<0.000000e+00> : vector<8x128xf32>
    %2 = tpu.matmul %0, %1, %cst {dimension_numbers = #tpu.dot_dimension_numbers<[1], [0], [0], [1], [0, 0, 1, 1], [], []>} : vector<8x3136xbf16>, vector<3136x128xbf16>, vector<8x128xf32> -> vector<8x128xf32>
    %c0_3 = arith.constant 0 : index
    %c0_4 = arith.constant 0 : index
    %3 = vector.load %arg3[%c0_3, %c0_4] : memref<1x128xf32, #tpu.memory_space<vmem>>, vector<1x128xf32>
    %4 = vector.broadcast %3 : vector<1x128xf32> to vector<8x128xf32>
    %5 = arith.addf %2, %4 : vector<8x128xf32>
    %cst_5 = arith.constant 0.000000e+00 : f32
    %6 = vector.broadcast %cst_5 : f32 to vector<8x128xf32>
    %7 = arith.maximumf %5, %6 : vector<8x128xf32>
    %8 = arith.truncf %7 : vector<8x128xf32> to vector<8x128xbf16>
    %c0_6 = arith.constant 0 : index
    %c0_7 = arith.constant 0 : index
    %9 = vector.load %arg4[%c0_6, %c0_7] : memref<128x10xbf16, #tpu.memory_space<vmem>>, vector<128x10xbf16>
    %cst_8 = arith.constant dense<0.000000e+00> : vector<8x10xf32>
    %10 = tpu.matmul %8, %9, %cst_8 {dimension_numbers = #tpu.dot_dimension_numbers<[1], [0], [0], [1], [0, 0, 1, 1], [], []>} : vector<8x128xbf16>, vector<128x10xbf16>, vector<8x10xf32> -> vector<8x10xf32>
    %c0_9 = arith.constant 0 : index
    %c0_10 = arith.constant 0 : index
    %11 = vector.load %arg5[%c0_9, %c0_10] : memref<1x10xf32, #tpu.memory_space<vmem>>, vector<1x10xf32>
    %12 = vector.broadcast %11 : vector<1x10xf32> to vector<8x10xf32>
    %13 = arith.addf %10, %12 : vector<8x10xf32>
    %c0_11 = arith.constant 0 : index
    %c0_12 = arith.constant 0 : index
    %14 = vector.load %arg6[%c0_11, %c0_12] : memref<8x10xf32, #tpu.memory_space<vmem>>, vector<8x10xf32>
    tpu.vector_store %arg6[%c0_11, %c0_12], %13 {strides = array<i32>} : memref<8x10xf32, #tpu.memory_space<vmem>>, vector<8x10xf32>,
    return
  }
  func.func @transform_0(%arg0: i32) -> (i32, i32) {
    %c0_i32 = arith.constant 0 : i32
    %c0_i32_0 = arith.constant 0 : i32
    return %arg0, %c0_i32 : i32, i32
  }
  func.func @transform_1(%arg0: i32) -> (i32, i32) {
    %c0_i32 = arith.constant 0 : i32
    %c0_i32_0 = arith.constant 0 : i32
    %c0_i32_1 = arith.constant 0 : i32
    return %c0_i32, %c0_i32_0 : i32, i32
  }
  func.func @transform_2(%arg0: i32) -> (i32, i32) {
    %c0_i32 = arith.constant 0 : i32
    %c0_i32_0 = arith.constant 0 : i32
    %c0_i32_1 = arith.constant 0 : i32
    return %c0_i32, %c0_i32_0 : i32, i32
  }
  func.func @transform_3(%arg0: i32) -> (i32, i32) {
    %c0_i32 = arith.constant 0 : i32
    %c0_i32_0 = arith.constant 0 : i32
    %c0_i32_1 = arith.constant 0 : i32
    return %c0_i32, %c0_i32_0 : i32, i32
  }
  func.func @transform_4(%arg0: i32) -> (i32, i32) {
    %c0_i32 = arith.constant 0 : i32
    %c0_i32_0 = arith.constant 0 : i32
    %c0_i32_1 = arith.constant 0 : i32
    return %c0_i32, %c0_i32_0 : i32, i32
  }
  func.func @transform_5(%arg0: i32) -> (i32, i32) {
    %c0_i32 = arith.constant 0 : i32
    %c0_i32_0 = arith.constant 0 : i32
    return %arg0, %c0_i32 : i32, i32
  }
}

</mosaic_0001>

<bundles_post_ra>
// kernel: digit_classifier_forward.3
= control target key start
LH: loop header
LB: loop body
LE: loop exit
PB: predicated region body
PF: predicated region fallthrough
CT: control target
= control target key end

     0   :  { %vm3113_vm0 = vmmov 0   ;;  %vm1696_vm1 = vcmask 523264   ;;  %vm2333_vm2 = vcmask 80896   ;;  %s3818_s1 = inlined_call_operand.vmem [shape: bf16[3136,128], index: 1, kind: input, shape index: {}]   ;;  %s3819_s0 = inlined_call_operand.vmem [shape: bf16[8,3136], index: 0, kind: input, shape index: {}]   ;;  %s3820_s2 = inlined_call_operand.vmem [shape: f32[1,128], index: 2, kind: input, shape index: {}]   ;;  %s3821_s3 = inlined_call_operand.vmem [shape: bf16[128,10], index: 3, kind: input, shape index: {}]   ;;  %s3822_s4 = inlined_call_operand.vmem [shape: f32[1,10], index: 4, kind: input, shape index: {}]   ;;  %s3823_s5 = inlined_call_operand.vmem [shape: f32[8,10], index: 5, kind: output, shape index: {}]  }
   0x1   :  { %v2883_v0 = vld [vmem:[%s3818_s1 + $0x78] sm:$0xff]   ;;  %v2887_v4 = vld [vmem:[%s3818_s1 + $0x70] sm:$0xff]   ;;  %v2891_v8 = vld [vmem:[%s3818_s1 + $0x68] sm:$0xff]  }
   0x2   :  { %v2884_v1 = vld [vmem:[%s3818_s1 + $0x38] sm:$0xff]   ;;  %2571 = vmatprep.subr.bf16.mxu0 %v2883_v0  ;;  %v2888_v5 = vld [vmem:[%s3818_s1 + $0x30] sm:$0xff]   ;;  %v2892_v9 = vld [vmem:[%s3818_s1 + $0x28] sm:$0xff]  }
   0x3   :  { %v2885_v2 = vld [vmem:[%s3818_s1 + $0xf8] sm:$0xff]   ;;  %2572 = vmatpush3.bf16.msra.mxu0 %v2884_v1  ;;  %v2889_v6 = vld [vmem:[%s3818_s1 + $0xf0] sm:$0xff]   ;;  %v2893_v10 = vld [vmem:[%s3818_s1 + $0xe8] sm:$0xff]  }
   0x4   :  { %v2886_v3 = vld [vmem:[%s3818_s1 + $0xb8] sm:$0xff]   ;;  %2593 = vmatprep.subr.bf16.mxu1 %v2885_v2  ;;  %2573 = vmatprep.subr.bf16.mxu0 %v2887_v4  ;;  %v2890_v7 = vld [vmem:[%s3818_s1 + $0xb0] sm:$0xff]   ;;  %v2894_v11 = vld [vmem:[%s3818_s1 + $0xa8] sm:$0xff]  }
   0x5   :  { %2594 = vmatpush3.bf16.msra.mxu1 %v2886_v3  ;;  %v2895_v12 = vld [vmem:[%s3818_s1 + $0x60] sm:$0xff]   ;;  %v2899_v16 = vld [vmem:[%s3818_s1 + $0x58] sm:$0xff]   ;;  %v2903_v20 = vld [vmem:[%s3818_s1 + $0x50] sm:$0xff]  }
   0x6   :  { %2595 = vmatprep.subr.bf16.mxu1 %v2889_v6  ;;  %v2896_v13 = vld [vmem:[%s3818_s1 + $0x20] sm:$0xff]   ;;  %v2900_v17 = vld [vmem:[%s3818_s1 + $0x18] sm:$0xff]   ;;  %v2904_v21 = vld [vmem:[%s3818_s1 + $0x10] sm:$0xff]  }
   0x7   :  { %2574 = vmatpush3.bf16.msra.mxu0 %v2888_v5  ;;  %v2897_v14 = vld [vmem:[%s3818_s1 + $0xe0] sm:$0xff]   ;;  %v2901_v18 = vld [vmem:[%s3818_s1 + $0xd8] sm:$0xff]   ;;  %v2905_v22 = vld [vmem:[%s3818_s1 + $0xd0] sm:$0xff]  }
   0x8   :  { %2575 = vmatprep.subr.bf16.mxu0 %v2891_v8  ;;  %v2898_v15 = vld [vmem:[%s3818_s1 + $0xa0] sm:$0xff]   ;;  %v2902_v19 = vld [vmem:[%s3818_s1 + $0x98] sm:$0xff]   ;;  %v2906_v23 = vld [vmem:[%s3818_s1 + $0x90] sm:$0xff]  }
   0x9   :  { %2596 = vmatpush3.bf16.msra.mxu1 %v2890_v7  ;;  %v2907_v24 = vld [vmem:[%s3818_s1 + $0x48] sm:$0xff]   ;;  %v2911_v28 = vld [vmem:[%s3818_s1 + $0x40] sm:$0xff]   ;;  %v2917_v35 = vld [vmem:[%s3818_s1 + $0x178] sm:$0xff]  }
   0xa   :  { %2597 = vmatprep.subr.bf16.mxu1 %v2893_v10  ;;  %v2908_v25 = vld [vmem:[%s3818_s1 + $0x8] sm:$0xff]   ;;  %v2912_v29 = vld [vmem:[%s3818_s1] sm:$0xff]   ;;  %v2920_v39 = vld [vmem:[%s3818_s1 + $0x138] sm:$0xff]  }
   0xb   :  { %2576 = vmatpush3.bf16.msra.mxu0 %v2892_v9  ;;  %v2909_v26 = vld [vmem:[%s3818_s1 + $0xc8] sm:$0xff]   ;;  %v2913_v30 = vld [vmem:[%s3818_s1 + $0xc0] sm:$0xff]   ;;  %v2921_v40 = vld [vmem:[%s3818_s1 + $0x1f8] sm:$0xff]  }
   0xc   :  { %2577 = vmatprep.subr.bf16.mxu0 %v2895_v12  ;;  %v2910_v27 = vld [vmem:[%s3818_s1 + $0x88] sm:$0xff]   ;;  %v21_v31 = vld [vmem:[%s3819_s0] sm:$0xff]  ;;  %v2922_v41 = vld [vmem:[%s3818_s1 + $0x1b8] sm:$0xff]  }
   0xd   :  { %2598 = vmatpush3.bf16.msra.mxu1 %v2894_v11  ;;  %v2340_v32 = vcombine.low %v21_v31, %v21_v31  ;;  %v2341_v33 = vcombine.high %v21_v31, %v21_v31  ;;  %v2916_v34 = vld [vmem:[%s3818_s1 + $0x80] sm:$0xff]   ;;  %v22_v36 = vld [vmem:[%s3819_s0 + $0x8] sm:$0xff]  ;;  %v2923_v42 = vld [vmem:[%s3818_s1 + $0x170] sm:$0xff]  }
   0xe   :  { %2599 = vmatprep.subr.bf16.mxu1 %v2897_v14  ;;  %v2342_v37 = vcombine.low %v22_v36, %v22_v36  ;;  %v2343_v38 = vcombine.high %v22_v36, %v22_v36  ;;  %v2924_v43 = vld [vmem:[%s3818_s1 + $0x130] sm:$0xff]   ;;  %v2927_v46 = vld [vmem:[%s3818_s1 + $0x168] sm:$0xff]   ;;  %v2931_v50 = vld [vmem:[%s3818_s1 + $0x160] sm:$0xff]  }
   0xf   :  { %2578 = vmatpush3.bf16.msra.mxu0 %v2896_v13  ;;  %1732 = vmatprep.mubr.bf16.mxu0 %v2341_v33  ;;  %v2925_v44 = vld [vmem:[%s3818_s1 + $0x1f0] sm:$0xff]   ;;  %v2928_v47 = vld [vmem:[%s3818_s1 + $0x128] sm:$0xff]   ;;  %v2932_v51 = vld [vmem:[%s3818_s1 + $0x120] sm:$0xff]  }
  0x10   :  { %2579 = vmatprep.subr.bf16.mxu0 %v2899_v16  ;;  %1772 = vmatprep.mubr.bf16.mxu1 %v2343_v38  ;;  %v2926_v45 = vld [vmem:[%s3818_s1 + $0x1b0] sm:$0xff]   ;;  %v2929_v48 = vld [vmem:[%s3818_s1 + $0x1e8] sm:$0xff]   ;;  %v2933_v52 = vld [vmem:[%s3818_s1 + $0x1e0] sm:$0xff]  }
  0x11   :  { %2600 = vmatpush3.bf16.msra.mxu1 %v2898_v15  ;;  %v2930_v49 = vld [vmem:[%s3818_s1 + $0x1a8] sm:$0xff]   ;;  %v2934_v53 = vld [vmem:[%s3818_s1 + $0x1a0] sm:$0xff]   ;;  %v2935_v54 = vld [vmem:[%s3818_s1 + $0x158] sm:$0xff]  }
  0x12   :  { %2601 = vmatprep.subr.bf16.mxu1 %v2901_v18  ;;  %v2936_v55 = vld [vmem:[%s3818_s1 + $0x118] sm:$0xff]   ;;  %v2939_v58 = vld [vmem:[%s3818_s1 + $0x150] sm:$0xff]   ;;  %v2943_v62 = vld [vmem:[%s3818_s1 + $0x148] sm:$0xff]  }
  0x13   :  { %2580 = vmatpush3.bf16.msra.mxu0 %v2900_v17  ;;  %v2937_v56 = vld [vmem:[%s3818_s1 + $0x1d8] sm:$0xff]   ;;  %v2940_v59 = vld [vmem:[%s3818_s1 + $0x110] sm:$0xff]   ;;  %v2944_v63 = vld [vmem:[%s3818_s1 + $0x108] sm:$0xff]  }
  0x14   :  { %2581 = vmatprep.subr.bf16.mxu0 %v2903_v20  ;;  %v2938_v57 = vld [vmem:[%s3818_s1 + $0x198] sm:$0xff]   ;;  %v2941_v60 = vld [vmem:[%s3818_s1 + $0x1d0] sm:$0xff]   ;;  %v2945_v0 = vld [vmem:[%s3818_s1 + $0x1c8] sm:$0xff]  }
  0x15   :  { %2602 = vmatpush3.bf16.msra.mxu1 %v2902_v19  ;;  %v2942_v61 = vld [vmem:[%s3818_s1 + $0x190] sm:$0xff]   ;;  %v2946_v1 = vld [vmem:[%s3818_s1 + $0x188] sm:$0xff]   ;;  %v2947_v2 = vld [vmem:[%s3818_s1 + $0x140] sm:$0xff]  }
  0x16   :  { %2603 = vmatprep.subr.bf16.mxu1 %v2905_v22  ;;  %v2948_v3 = vld [vmem:[%s3818_s1 + $0x100] sm:$0xff]   ;;  %v23_v5 = vld [vmem:[%s3819_s0 + $0x10] sm:$0xff]  ;;  %v2953_v9 = vld [vmem:[%s3818_s1 + $0x278] sm:$0xff]  }
  0x17   :  { %2582 = vmatpush3.bf16.msra.mxu0 %v2904_v21  ;;  %v2949_v4 = vld [vmem:[%s3818_s1 + $0x1c0] sm:$0xff]   ;;  %v2344_v6 = vcombine.low %v23_v5, %v23_v5  ;;  %v2345_v7 = vcombine.high %v23_v5, %v23_v5  ;;  %v24_v10 = vld [vmem:[%s3819_s0 + $0x18] sm:$0xff]  ;;  %v2959_v16 = vld [vmem:[%s3818_s1 + $0x270] sm:$0xff]  }
  0x18   :  { %2583 = vmatprep.subr.bf16.mxu0 %v2907_v24  ;;  %v2952_v8 = vld [vmem:[%s3818_s1 + $0x180] sm:$0xff]   ;;  %v2346_v11 = vcombine.low %v24_v10, %v24_v10  ;;  %v2347_v12 = vcombine.high %v24_v10, %v24_v10  ;;  %v2956_v13 = vld [vmem:[%s3818_s1 + $0x238] sm:$0xff]   ;;  %v2960_v17 = vld [vmem:[%s3818_s1 + $0x230] sm:$0xff]  }
  0x19   :  { %2604 = vmatpush3.bf16.msra.mxu1 %v2906_v23  ;;  %v2957_v14 = vld [vmem:[%s3818_s1 + $0x2f8] sm:$0xff]   ;;  %v2961_v18 = vld [vmem:[%s3818_s1 + $0x2f0] sm:$0xff]   ;;  %v2963_v20 = vld [vmem:[%s3818_s1 + $0x268] sm:$0xff]  }
  0x1a   :  { %2605 = vmatprep.subr.bf16.mxu1 %v2909_v26  ;;  %v2958_v15 = vld [vmem:[%s3818_s1 + $0x2b8] sm:$0xff]   ;;  %v2962_v19 = vld [vmem:[%s3818_s1 + $0x2b0] sm:$0xff]   ;;  %v2964_v21 = vld [vmem:[%s3818_s1 + $0x228] sm:$0xff]  }
  0x1b   :  { %2584 = vmatpush3.bf16.msra.mxu0 %v2908_v25  ;;  %v2965_v22 = vld [vmem:[%s3818_s1 + $0x2e8] sm:$0xff]   ;;  %v2967_v24 = vld [vmem:[%s3818_s1 + $0x260] sm:$0xff]   ;;  %v2974_v31 = vld [vmem:[%s3818_s1 + $0x298] sm:$0xff]  }
  0x1c   :  { %2585 = vmatprep.subr.bf16.mxu0 %v2911_v28  ;;  %v2966_v23 = vld [vmem:[%s3818_s1 + $0x2a8] sm:$0xff]   ;;  %v2968_v25 = vld [vmem:[%s3818_s1 + $0x220] sm:$0xff]   ;;  %v2971_v28 = vld [vmem:[%s3818_s1 + $0x258] sm:$0xff]  }
  0x1d   :  { %2606 = vmatpush3.bf16.msra.mxu1 %v2910_v27  ;;  %v2969_v26 = vld [vmem:[%s3818_s1 + $0x2e0] sm:$0xff]   ;;  %v2976_v33 = vld [vmem:[%s3818_s1 + $0x210] sm:$0xff]   ;;  %v2979_v36 = vld [vmem:[%s3818_s1 + $0x248] sm:$0xff]  }
  0x1e   :  { %2607 = vmatprep.subr.bf16.mxu1 %v2913_v30  ;;  %v2970_v27 = vld [vmem:[%s3818_s1 + $0x2a0] sm:$0xff]   ;;  %v2973_v30 = vld [vmem:[%s3818_s1 + $0x2d8] sm:$0xff]   ;;  %v2981_v38 = vld [vmem:[%s3818_s1 + $0x2c8] sm:$0xff]  }
  0x1f   :  { %2586 = vmatpush3.bf16.msra.mxu0 %v2912_v29  ;;  %v2972_v29 = vld [vmem:[%s3818_s1 + $0x218] sm:$0xff]   ;;  %v3015_v10 = vld [vmem:[%s3818_s1 + $0x348] sm:$0xff]  }
  0x20   :  { %2615 = vmatprep.subr.bf16.mxu0 %v2917_v35  ;;  %v2978_v35 = vld [vmem:[%s3818_s1 + $0x290] sm:$0xff]   ;;  %v3010_v5 = vld [vmem:[%s3818_s1 + $0x398] sm:$0xff]  }
  0x21   :  { %2608 = vmatpush3.bf16.msra.mxu1 %v2916_v34  ;;  %v2977_v34 = vld [vmem:[%s3818_s1 + $0x2d0] sm:$0xff]  }
  0x22   :  { %1733 = vmatmul.mubr.bf16.vlgmr.msra.gmra.mxu0 %v2340_v32  ;;  %2637 = vmatprep.subr.bf16.mxu1 %v2921_v40  ;;  %v2975_v32 = vld [vmem:[%s3818_s1 + $0x250] sm:$0xff]   ;;  %v2983_v40 = vld [vmem:[%s3818_s1 + $0x240] sm:$0xff]  }
  0x23   :  { %2616 = vmatpush3.bf16.msra.mxu0 %v2920_v39  ;;  %1812 = vmatprep.mubr.bf16.mxu0 %v2345_v7  ;;  %v2982_v39 = vld [vmem:[%s3818_s1 + $0x288] sm:$0xff]   ;;  %v3012_v7 = vld [vmem:[%s3818_s1 + $0x310] sm:$0xff]  }
  0x24   :  { %1773 = vmatmul.mubr.bf16.vlgmr.msra.gmra.mxu1 %v2342_v37  ;;  %2617 = vmatprep.subr.bf16.mxu0 %v2923_v42  ;;  %v2980_v37 = vld [vmem:[%s3818_s1 + $0x208] sm:$0xff]   ;;  %v2985_v42 = vld [vmem:[%s3818_s1 + $0x2c0] sm:$0xff]  }
  0x25   :  { %2638 = vmatpush3.bf16.msra.mxu1 %v2922_v41  ;;  %1852 = vmatprep.mubr.bf16.mxu1 %v2347_v12  ;;  %v2984_v41 = vld [vmem:[%s3818_s1 + $0x200] sm:$0xff]   ;;  %v3017_v12 = vld [vmem:[%s3818_s1 + $0x3c8] sm:$0xff]  }
  0x26   :  { %2639 = vmatprep.subr.bf16.mxu1 %v2925_v44 }
  0x27   :  { %2618 = vmatpush3.bf16.msra.mxu0 %v2924_v43  ;;  %v25_v43 = vld [vmem:[%s3819_s0 + $0x20] sm:$0xff] }
  0x28   :  { %2619 = vmatprep.subr.bf16.mxu0 %v2927_v46  ;;  %v2348_v44 = vcombine.low %v25_v43, %v25_v43  ;;  %v2988_v46 = vld [vmem:[%s3818_s1 + $0x280] sm:$0xff]  }
  0x29   :  { %2640 = vmatpush3.bf16.msra.mxu1 %v2926_v45  ;;  %v2349_v45 = vcombine.high %v25_v43, %v25_v43  ;;  %v3046_v43 = vld [vmem:[%s3818_s1 + $0x498] sm:$0xff]  }
  0x2a   :  { %2641 = vmatprep.subr.bf16.mxu1 %v2929_v48  ;;  %v26_v48 = vld [vmem:[%s3819_s0 + $0x28] sm:$0xff] }
  0x2b   :  { %2620 = vmatpush3.bf16.msra.mxu0 %v2928_v47  ;;  %v2989_v47 = vld [vmem:[%s3818_s1 + $0x378] sm:$0xff]  }
  0x2c   :  { %2621 = vmatprep.subr.bf16.mxu0 %v2931_v50  ;;  %v2351_v50 = vcombine.high %v26_v48, %v26_v48 }
  0x2d   :  { %2642 = vmatpush3.bf16.msra.mxu1 %v2930_v49  ;;  %v2350_v49 = vcombine.low %v26_v48, %v26_v48  ;;  %v3051_v48 = vld [vmem:[%s3818_s1 + $0x448] sm:$0xff]  }
  0x2e   :  { %2643 = vmatprep.subr.bf16.mxu1 %v2933_v52  ;;  %v2993_v52 = vld [vmem:[%s3818_s1 + $0x3f8] sm:$0xff]  }
  0x2f   :  { %2622 = vmatpush3.bf16.msra.mxu0 %v2932_v51  ;;  %v2992_v51 = vld [vmem:[%s3818_s1 + $0x338] sm:$0xff]  }
  0x30   :  { %2623 = vmatprep.subr.bf16.mxu0 %v2935_v54  ;;  %v2995_v54 = vld [vmem:[%s3818_s1 + $0x370] sm:$0xff]  }
  0x31   :  { %2644 = vmatpush3.bf16.msra.mxu1 %v2934_v53  ;;  %v2994_v53 = vld [vmem:[%s3818_s1 + $0x3b8] sm:$0xff]  }
  0x32   :  { %2645 = vmatprep.subr.bf16.mxu1 %v2937_v56  ;;  %v2997_v56 = vld [vmem:[%s3818_s1 + $0x3f0] sm:$0xff]  }
  0x33   :  { %2624 = vmatpush3.bf16.msra.mxu0 %v2936_v55  ;;  %v2996_v55 = vld [vmem:[%s3818_s1 + $0x330] sm:$0xff]  }
  0x34   :  { %2625 = vmatprep.subr.bf16.mxu0 %v2939_v58  ;;  %v2999_v58 = vld [vmem:[%s3818_s1 + $0x368] sm:$0xff]  }
  0x35   :  { %2646 = vmatpush3.bf16.msra.mxu1 %v2938_v57  ;;  %v2998_v57 = vld [vmem:[%s3818_s1 + $0x3b0] sm:$0xff]  }
  0x36   :  { %2647 = vmatprep.subr.bf16.mxu1 %v2941_v60  ;;  %v3001_v60 = vld [vmem:[%s3818_s1 + $0x3e8] sm:$0xff]  }
  0x37   :  { %2626 = vmatpush3.bf16.msra.mxu0 %v2940_v59  ;;  %v3000_v59 = vld [vmem:[%s3818_s1 + $0x328] sm:$0xff]  }
  0x38   :  { %2627 = vmatprep.subr.bf16.mxu0 %v2943_v62  ;;  %v3003_v62 = vld [vmem:[%s3818_s1 + $0x360] sm:$0xff]  }
  0x39   :  { %2648 = vmatpush3.bf16.msra.mxu1 %v2942_v61  ;;  %v3002_v61 = vld [vmem:[%s3818_s1 + $0x3a8] sm:$0xff]  }
  0x3a   :  { %2649 = vmatprep.subr.bf16.mxu1 %v2945_v0  ;;  %v3005_v0 = vld [vmem:[%s3818_s1 + $0x3e0] sm:$0xff]  }
  0x3b   :  { %2628 = vmatpush3.bf16.msra.mxu0 %v2944_v63  ;;  %v3004_v63 = vld [vmem:[%s3818_s1 + $0x320] sm:$0xff]  }
  0x3c   :  { %2629 = vmatprep.subr.bf16.mxu0 %v2947_v2  ;;  %v3007_v2 = vld [vmem:[%s3818_s1 + $0x358] sm:$0xff]  }
  0x3d   :  { %2650 = vmatpush3.bf16.msra.mxu1 %v2946_v1  ;;  %v3006_v1 = vld [vmem:[%s3818_s1 + $0x3a0] sm:$0xff]  }
  0x3e   :  { %2651 = vmatprep.subr.bf16.mxu1 %v2949_v4  ;;  %v3009_v4 = vld [vmem:[%s3818_s1 + $0x3d8] sm:$0xff]  }
  0x3f   :  { %2630 = vmatpush3.bf16.msra.mxu0 %v2948_v3  ;;  %v3008_v3 = vld [vmem:[%s3818_s1 + $0x318] sm:$0xff]  }
  0x40   :  { %2659 = vmatprep.subr.bf16.mxu0 %v2953_v9  ;;  %v3014_v9 = vld [vmem:[%s3818_s1 + $0x390] sm:$0xff]  }
  0x41   :  { %2652 = vmatpush3.bf16.msra.mxu1 %v2952_v8  ;;  %v3013_v8 = vld [vmem:[%s3818_s1 + $0x3d0] sm:$0xff]  }
  0x42   :  { %1813 = vmatmul.mubr.bf16.vlgmr.msra.gmra.mxu0 %v2344_v6  ;;  %2681 = vmatprep.subr.bf16.mxu1 %v2957_v14  ;;  %v3011_v6 = vld [vmem:[%s3818_s1 + $0x350] sm:$0xff]   ;;  %v3019_v14 = vld [vmem:[%s3818_s1 + $0x340] sm:$0xff]  }
  0x43   :  { %2660 = vmatpush3.bf16.msra.mxu0 %v2956_v13  ;;  %1892 = vmatprep.mubr.bf16.mxu0 %v2349_v45  ;;  %v3018_v13 = vld [vmem:[%s3818_s1 + $0x388] sm:$0xff]   ;;  %v3048_v45 = vld [vmem:[%s3818_s1 + $0x410] sm:$0xff]  }
  0x44   :  { %1853 = vmatmul.mubr.bf16.vlgmr.msra.gmra.mxu1 %v2346_v11  ;;  %2661 = vmatprep.subr.bf16.mxu0 %v2959_v16  ;;  %v3016_v11 = vld [vmem:[%s3818_s1 + $0x308] sm:$0xff]   ;;  %v3021_v16 = vld [vmem:[%s3818_s1 + $0x3c0] sm:$0xff]  }
  0x45   :  { %2682 = vmatpush3.bf16.msra.mxu1 %v2958_v15  ;;  %1932 = vmatprep.mubr.bf16.mxu1 %v2351_v50  ;;  %v3020_v15 = vld [vmem:[%s3818_s1 + $0x300] sm:$0xff]   ;;  %v3053_v50 = vld [vmem:[%s3818_s1 + $0x4c8] sm:$0xff]  }
  0x46   :  { %2683 = vmatprep.subr.bf16.mxu1 %v2961_v18 }
  0x47   :  { %2662 = vmatpush3.bf16.msra.mxu0 %v2960_v17  ;;  %v27_v17 = vld [vmem:[%s3819_s0 + $0x30] sm:$0xff] }
  0x48   :  { %2663 = vmatprep.subr.bf16.mxu0 %v2963_v20  ;;  %v2352_v18 = vcombine.low %v27_v17, %v27_v17  ;;  %v3024_v20 = vld [vmem:[%s3818_s1 + $0x380] sm:$0xff]  }
  0x49   :  { %2684 = vmatpush3.bf16.msra.mxu1 %v2962_v19  ;;  %v2353_v19 = vcombine.high %v27_v17, %v27_v17  ;;  %v3082_v17 = vld [vmem:[%s3818_s1 + $0x598] sm:$0xff]  }
  0x4a   :  { %2685 = vmatprep.subr.bf16.mxu1 %v2965_v22  ;;  %v28_v22 = vld [vmem:[%s3819_s0 + $0x38] sm:$0xff] }
  0x4b   :  { %2664 = vmatpush3.bf16.msra.mxu0 %v2964_v21  ;;  %v3025_v21 = vld [vmem:[%s3818_s1 + $0x478] sm:$0xff]  }
  0x4c   :  { %2665 = vmatprep.subr.bf16.mxu0 %v2967_v24  ;;  %v2355_v24 = vcombine.high %v28_v22, %v28_v22 }
  0x4d   :  { %2686 = vmatpush3.bf16.msra.mxu1 %v2966_v23  ;;  %v2354_v23 = vcombine.low %v28_v22, %v28_v22  ;;  %v3087_v22 = vld [vmem:[%s3818_s1 + $0x548] sm:$0xff]  }
  0x4e   :  { %2687 = vmatprep.subr.bf16.mxu1 %v2969_v26  ;;  %v3029_v26 = vld [vmem:[%s3818_s1 + $0x4f8] sm:$0xff]  }
  0x4f   :  { %2666 = vmatpush3.bf16.msra.mxu0 %v2968_v25  ;;  %v3028_v25 = vld [vmem:[%s3818_s1 + $0x438] sm:$0xff]  }
  0x50   :  { %2667 = vmatprep.subr.bf16.mxu0 %v2971_v28  ;;  %v3031_v28 = vld [vmem:[%s3818_s1 + $0x470] sm:$0xff]  }
  0x51   :  { %2688 = vmatpush3.bf16.msra.mxu1 %v2970_v27  ;;  %v3030_v27 = vld [vmem:[%s3818_s1 + $0x4b8] sm:$0xff]  }
  0x52   :  { %2689 = vmatprep.subr.bf16.mxu1 %v2973_v30  ;;  %v3033_v30 = vld [vmem:[%s3818_s1 + $0x4f0] sm:$0xff]  }
  0x53   :  { %2668 = vmatpush3.bf16.msra.mxu0 %v2972_v29  ;;  %v3032_v29 = vld [vmem:[%s3818_s1 + $0x430] sm:$0xff]  }
  0x54   :  { %2669 = vmatprep.subr.bf16.mxu0 %v2975_v32  ;;  %v3035_v32 = vld [vmem:[%s3818_s1 + $0x468] sm:$0xff]  }
  0x55   :  { %2690 = vmatpush3.bf16.msra.mxu1 %v2974_v31  ;;  %v3034_v31 = vld [vmem:[%s3818_s1 + $0x4b0] sm:$0xff]  }
  0x56   :  { %2691 = vmatprep.subr.bf16.mxu1 %v2977_v34  ;;  %v3037_v34 = vld [vmem:[%s3818_s1 + $0x4e8] sm:$0xff]  }
  0x57   :  { %2670 = vmatpush3.bf16.msra.mxu0 %v2976_v33  ;;  %v3036_v33 = vld [vmem:[%s3818_s1 + $0x428] sm:$0xff]  }
  0x58   :  { %2671 = vmatprep.subr.bf16.mxu0 %v2979_v36  ;;  %v3039_v36 = vld [vmem:[%s3818_s1 + $0x460] sm:$0xff]  }
  0x59   :  { %2692 = vmatpush3.bf16.msra.mxu1 %v2978_v35  ;;  %v3038_v35 = vld [vmem:[%s3818_s1 + $0x4a8] sm:$0xff]  }
  0x5a   :  { %2693 = vmatprep.subr.bf16.mxu1 %v2981_v38  ;;  %v3041_v38 = vld [vmem:[%s3818_s1 + $0x4e0] sm:$0xff]  }
  0x5b   :  { %2672 = vmatpush3.bf16.msra.mxu0 %v2980_v37  ;;  %v3040_v37 = vld [vmem:[%s3818_s1 + $0x420] sm:$0xff]  }
  0x5c   :  { %2673 = vmatprep.subr.bf16.mxu0 %v2983_v40  ;;  %v3043_v40 = vld [vmem:[%s3818_s1 + $0x458] sm:$0xff]  }
  0x5d   :  { %2694 = vmatpush3.bf16.msra.mxu1 %v2982_v39  ;;  %v3042_v39 = vld [vmem:[%s3818_s1 + $0x4a0] sm:$0xff]  }
  0x5e   :  { %2695 = vmatprep.subr.bf16.mxu1 %v2985_v42  ;;  %v3045_v42 = vld [vmem:[%s3818_s1 + $0x4d8] sm:$0xff]  }
  0x5f   :  { %2674 = vmatpush3.bf16.msra.mxu0 %v2984_v41  ;;  %v3044_v41 = vld [vmem:[%s3818_s1 + $0x418] sm:$0xff]  }
  0x60   :  { %2703 = vmatprep.subr.bf16.mxu0 %v2989_v47  ;;  %v3050_v47 = vld [vmem:[%s3818_s1 + $0x490] sm:$0xff]  }
  0x61   :  { %2696 = vmatpush3.bf16.msra.mxu1 %v2988_v46  ;;  %v3049_v46 = vld [vmem:[%s3818_s1 + $0x4d0] sm:$0xff]  }
  0x62   :  { %1893 = vmatmul.mubr.bf16.vlgmr.msra.gmra.mxu0 %v2348_v44  ;;  %2725 = vmatprep.subr.bf16.mxu1 %v2993_v52  ;;  %v3047_v44 = vld [vmem:[%s3818_s1 + $0x450] sm:$0xff]   ;;  %v3055_v52 = vld [vmem:[%s3818_s1 + $0x440] sm:$0xff]  }
  0x63   :  { %2704 = vmatpush3.bf16.msra.mxu0 %v2992_v51  ;;  %1972 = vmatprep.mubr.bf16.mxu0 %v2353_v19  ;;  %v3054_v51 = vld [vmem:[%s3818_s1 + $0x488] sm:$0xff]   ;;  %v3084_v19 = vld [vmem:[%s3818_s1 + $0x510] sm:$0xff]  }
  0x64   :  { %1933 = vmatmul.mubr.bf16.vlgmr.msra.gmra.mxu1 %v2350_v49  ;;  %2705 = vmatprep.subr.bf16.mxu0 %v2995_v54  ;;  %v3052_v49 = vld [vmem:[%s3818_s1 + $0x408] sm:$0xff]   ;;  %v3057_v54 = vld [vmem:[%s3818_s1 + $0x4c0] sm:$0xff]  }
  0x65   :  { %2726 = vmatpush3.bf16.msra.mxu1 %v2994_v53  ;;  %2012 = vmatprep.mubr.bf16.mxu1 %v2355_v24  ;;  %v3056_v53 = vld [vmem:[%s3818_s1 + $0x400] sm:$0xff]   ;;  %v3089_v24 = vld [vmem:[%s3818_s1 + $0x5c8] sm:$0xff]  }
  0x66   :  { %2727 = vmatprep.subr.bf16.mxu1 %v2997_v56 }
  0x67   :  { %2706 = vmatpush3.bf16.msra.mxu0 %v2996_v55  ;;  %v29_v55 = vld [vmem:[%s3819_s0 + $0x40] sm:$0xff] }
  0x68   :  { %2707 = vmatprep.subr.bf16.mxu0 %v2999_v58  ;;  %v2356_v56 = vcombine.low %v29_v55, %v29_v55  ;;  %v3060_v58 = vld [vmem:[%s3818_s1 + $0x480] sm:$0xff]  }
  0x69   :  { %2728 = vmatpush3.bf16.msra.mxu1 %v2998_v57  ;;  %v2357_v57 = vcombine.high %v29_v55, %v29_v55  ;;  %v3104_v55 = vld [vmem:[%s3821_s3 + $0x38] sm:$0xff]  }
  0x6a   :  { %2729 = vmatprep.subr.bf16.mxu1 %v3001_v60  ;;  %v30_v60 = vld [vmem:[%s3819_s0 + $0x48] sm:$0xff] }
  0x6b   :  { %2708 = vmatpush3.bf16.msra.mxu0 %v3000_v59  ;;  %v3061_v59 = vld [vmem:[%s3818_s1 + $0x578] sm:$0xff]  }
  0x6c   :  { %2709 = vmatprep.subr.bf16.mxu0 %v3003_v62  ;;  %v2359_v62 = vcombine.high %v30_v60, %v30_v60 }
  0x6d   :  { %2730 = vmatpush3.bf16.msra.mxu1 %v3002_v61  ;;  %v2358_v61 = vcombine.low %v30_v60, %v30_v60 }
  0x6e   :  { %2731 = vmatprep.subr.bf16.mxu1 %v3005_v0  ;;  %v3065_v0 = vld [vmem:[%s3818_s1 + $0x5f8] sm:$0xff]  }
  0x6f   :  { %2710 = vmatpush3.bf16.msra.mxu0 %v3004_v63  ;;  %v3064_v63 = vld [vmem:[%s3818_s1 + $0x538] sm:$0xff]  }
  0x70   :  { %2711 = vmatprep.subr.bf16.mxu0 %v3007_v2  ;;  %v3067_v2 = vld [vmem:[%s3818_s1 + $0x570] sm:$0xff]  }
  0x71   :  { %2732 = vmatpush3.bf16.msra.mxu1 %v3006_v1  ;;  %v3066_v1 = vld [vmem:[%s3818_s1 + $0x5b8] sm:$0xff]  }
  0x72   :  { %2733 = vmatprep.subr.bf16.mxu1 %v3009_v4  ;;  %v3069_v4 = vld [vmem:[%s3818_s1 + $0x5f0] sm:$0xff]  }
  0x73   :  { %2712 = vmatpush3.bf16.msra.mxu0 %v3008_v3  ;;  %v3068_v3 = vld [vmem:[%s3818_s1 + $0x530] sm:$0xff]  }
  0x74   :  { %2713 = vmatprep.subr.bf16.mxu0 %v3011_v6  ;;  %v3071_v6 = vld [vmem:[%s3818_s1 + $0x568] sm:$0xff]  }
  0x75   :  { %2734 = vmatpush3.bf16.msra.mxu1 %v3010_v5  ;;  %v3070_v5 = vld [vmem:[%s3818_s1 + $0x5b0] sm:$0xff]  }
  0x76   :  { %2735 = vmatprep.subr.bf16.mxu1 %v3013_v8  ;;  %v3073_v8 = vld [vmem:[%s3818_s1 + $0x5e8] sm:$0xff]  }
  0x77   :  { %2714 = vmatpush3.bf16.msra.mxu0 %v3012_v7  ;;  %v3072_v7 = vld [vmem:[%s3818_s1 + $0x528] sm:$0xff]  }
  0x78   :  { %2715 = vmatprep.subr.bf16.mxu0 %v3015_v10  ;;  %v3075_v10 = vld [vmem:[%s3818_s1 + $0x560] sm:$0xff]  }
  0x79   :  { %2736 = vmatpush3.bf16.msra.mxu1 %v3014_v9  ;;  %v3074_v9 = vld [vmem:[%s3818_s1 + $0x5a8] sm:$0xff]  }
  0x7a   :  { %2737 = vmatprep.subr.bf16.mxu1 %v3017_v12  ;;  %v3077_v12 = vld [vmem:[%s3818_s1 + $0x5e0] sm:$0xff]  }
  0x7b   :  { %2716 = vmatpush3.bf16.msra.mxu0 %v3016_v11  ;;  %v3076_v11 = vld [vmem:[%s3818_s1 + $0x520] sm:$0xff]  }
  0x7c   :  { %2717 = vmatprep.subr.bf16.mxu0 %v3019_v14  ;;  %v3079_v14 = vld [vmem:[%s3818_s1 + $0x558] sm:$0xff]  }
  0x7d   :  { %2738 = vmatpush3.bf16.msra.mxu1 %v3018_v13  ;;  %v3078_v13 = vld [vmem:[%s3818_s1 + $0x5a0] sm:$0xff]  }
  0x7e   :  { %2739 = vmatprep.subr.bf16.mxu1 %v3021_v16  ;;  %v3081_v16 = vld [vmem:[%s3818_s1 + $0x5d8] sm:$0xff]  }
  0x7f   :  { %2718 = vmatpush3.bf16.msra.mxu0 %v3020_v15  ;;  %v3080_v15 = vld [vmem:[%s3818_s1 + $0x518] sm:$0xff]  }
  0x80   :  { %2747 = vmatprep.subr.bf16.mxu0 %v3025_v21  ;;  %v3086_v21 = vld [vmem:[%s3818_s1 + $0x590] sm:$0xff]  }
  0x81   :  { %2740 = vmatpush3.bf16.msra.mxu1 %v3024_v20  ;;  %v3085_v20 = vld [vmem:[%s3818_s1 + $0x5d0] sm:$0xff]  }
  0x82   :  { %1973 = vmatmul.mubr.bf16.vlgmr.msra.gmra.mxu0 %v2352_v18  ;;  %2769 = vmatprep.subr.bf16.mxu1 %v3029_v26  ;;  %v3083_v18 = vld [vmem:[%s3818_s1 + $0x550] sm:$0xff]   ;;  %v3091_v26 = vld [vmem:[%s3818_s1 + $0x540] sm:$0xff]  }
  0x83   :  { %2748 = vmatpush3.bf16.msra.mxu0 %v3028_v25  ;;  %2052 = vmatprep.mubr.bf16.mxu0 %v2357_v57  ;;  %v3090_v25 = vld [vmem:[%s3818_s1 + $0x588] sm:$0xff]  }
  0x84   :  { %2013 = vmatmul.mubr.bf16.vlgmr.msra.gmra.mxu1 %v2354_v23  ;;  %2749 = vmatprep.subr.bf16.mxu0 %v3031_v28  ;;  %v3088_v23 = vld [vmem:[%s3818_s1 + $0x508] sm:$0xff]   ;;  %v3093_v28 = vld [vmem:[%s3818_s1 + $0x5c0] sm:$0xff]  }
  0x85   :  { %2770 = vmatpush3.bf16.msra.mxu1 %v3030_v27  ;;  %2092 = vmatprep.mubr.bf16.mxu1 %v2359_v62  ;;  %v3092_v27 = vld [vmem:[%s3818_s1 + $0x500] sm:$0xff]  }
  0x86   :  { %2771 = vmatprep.subr.bf16.mxu1 %v3033_v30 }
  0x87   :  { %2750 = vmatpush3.bf16.msra.mxu0 %v3032_v29  ;;  %v31_v29 = vld [vmem:[%s3819_s0 + $0x50] sm:$0xff] }
  0x88   :  { %2751 = vmatprep.subr.bf16.mxu0 %v3035_v32  ;;  %v2360_v30 = vcombine.low %v31_v29, %v31_v29  ;;  %v3096_v32 = vld [vmem:[%s3818_s1 + $0x580] sm:$0xff]  }
  0x89   :  { %2772 = vmatpush3.bf16.msra.mxu1 %v3034_v31  ;;  %v2361_v31 = vcombine.high %v31_v29, %v31_v29 }
  0x8a   :  { %2773 = vmatprep.subr.bf16.mxu1 %v3037_v34  ;;  %v3112_v34 = vmov 0.0  }
  0x8b   :  { %2752 = vmatpush3.bf16.msra.mxu0 %v3036_v33  ;;  %v32_v33 = vld [vmem:[%s3819_s0 + $0x58] sm:$0xff] }
  0x8c   :  { %2753 = vmatprep.subr.bf16.mxu0 %v3039_v36  ;;  %v2363_v36 = vcombine.high %v32_v33, %v32_v33 }
  0x8d   :  { %2774 = vmatpush3.bf16.msra.mxu1 %v3038_v35  ;;  %v2362_v35 = vcombine.low %v32_v33, %v32_v33 }
  0x8e   :  { %2775 = vmatprep.subr.bf16.mxu1 %v3041_v38  ;;  %v3100_v38 = vld [vmem:[%s3818_s1 + $0x610] sm:$0xff]  }
  0x8f   :  { %2754 = vmatpush3.bf16.msra.mxu0 %v3040_v37  ;;  %v3099_v37 = vld [vmem:[%s3818_s1 + $0x618] sm:$0xff]  }
  0x90   :  { %2755 = vmatprep.subr.bf16.mxu0 %v3043_v40  ;;  %v3102_v40 = vld [vmem:[%s3818_s1 + $0x600] sm:$0xff]  }
  0x91   :  { %2776 = vmatpush3.bf16.msra.mxu1 %v3042_v39  ;;  %v3101_v39 = vld [vmem:[%s3818_s1 + $0x608] sm:$0xff]  }
  0x92   :  { %2777 = vmatprep.subr.bf16.mxu1 %v3045_v42 }
  0x93   :  { %2756 = vmatpush3.bf16.msra.mxu0 %v3044_v41  ;;  %v3103_v41 = vld [vmem:[%s3819_s0 + $0x60] ss:$0 sps:$4 sm:$0xff]  }
  0x94   :  { %2757 = vmatprep.subr.bf16.mxu0 %v3047_v44 }
  0x95   :  { %2778 = vmatpush3.bf16.msra.mxu1 %v3046_v43  ;;  %v2339_v43 = vld [vmem:[%s3820_s2] ss:$0 sm:$0xff] }
  0x96   :  { %2779 = vmatprep.subr.bf16.mxu1 %v3049_v46 }
  0x97   :  { %2758 = vmatpush3.bf16.msra.mxu0 %v3048_v45 }
  0x98   :  { %2759 = vmatprep.subr.bf16.mxu0 %v3051_v48 }
  0x99   :  { %2780 = vmatpush3.bf16.msra.mxu1 %v3050_v47 }
  0x9a   :  { %2781 = vmatprep.subr.bf16.mxu1 %v3053_v50 }
  0x9b   :  { %2760 = vmatpush3.bf16.msra.mxu0 %v3052_v49 }
  0x9c   :  { %2761 = vmatprep.subr.bf16.mxu0 %v3055_v52 }
  0x9d   :  { %2782 = vmatpush3.bf16.msra.mxu1 %v3054_v51 }
  0x9e   :  { %2783 = vmatprep.subr.bf16.mxu1 %v3057_v54 }
  0x9f   :  { %2762 = vmatpush3.bf16.msra.mxu0 %v3056_v53 }
  0xa0   :  { %2791 = vmatprep.subr.bf16.mxu0 %v3061_v59 }
  0xa1   :  { %2784 = vmatpush3.bf16.msra.mxu1 %v3060_v58  ;;  %v3106_v58 = vld [vmem:[%s3821_s3 + $0x28] sm:$0xff]  }
  0xa2   :  { %2053 = vmatmul.mubr.bf16.vlgmr.msra.gmra.mxu0 %v2356_v56  ;;  %2813 = vmatprep.subr.bf16.mxu1 %v3065_v0  ;;  %v3105_v56 = vld [vmem:[%s3821_s3 + $0x30] sm:$0xff]  }
  0xa3   :  { %2792 = vmatpush3.bf16.msra.mxu0 %v3064_v63  ;;  %2132 = vmatprep.mubr.bf16.mxu0 %v2361_v31 }
  0xa4   :  { %2093 = vmatmul.mubr.bf16.vlgmr.msra.gmra.mxu1 %v2358_v61  ;;  %2793 = vmatprep.subr.bf16.mxu0 %v3067_v2 }
  0xa5   :  { %2814 = vmatpush3.bf16.msra.mxu1 %v3066_v1  ;;  %2172 = vmatprep.mubr.bf16.mxu1 %v2363_v36  ;;  %v3107_v1 = vld [vmem:[%s3821_s3 + $0x20] sm:$0xff]  }
  0xa6   :  { %2815 = vmatprep.subr.bf16.mxu1 %v3069_v4 }
  0xa7   :  { %2794 = vmatpush3.bf16.msra.mxu0 %v3068_v3 }
  0xa8   :  { %2795 = vmatprep.subr.bf16.mxu0 %v3071_v6 }
  0xa9   :  { %2816 = vmatpush3.bf16.msra.mxu1 %v3070_v5 }
  0xaa   :  { %2817 = vmatprep.subr.bf16.mxu1 %v3073_v8  ;;  %v3109_v8 = vld [vmem:[%s3821_s3 + $0x10] sm:$0xff]  }
  0xab   :  { %2796 = vmatpush3.bf16.msra.mxu0 %v3072_v7  ;;  %v3108_v7 = vld [vmem:[%s3821_s3 + $0x18] sm:$0xff]  }
  0xac   :  { %2797 = vmatprep.subr.bf16.mxu0 %v3075_v10  ;;  %v3111_v10 = vld [vmem:[%s3821_s3] sm:$0xff]  }
  0xad   :  { %2818 = vmatpush3.bf16.msra.mxu1 %v3074_v9  ;;  %v3110_v9 = vld [vmem:[%s3821_s3 + $0x8] sm:$0xff]  }
  0xae   :  { %2819 = vmatprep.subr.bf16.mxu1 %v3077_v12 }
  0xaf   :  { %2798 = vmatpush3.bf16.msra.mxu0 %v3076_v11 }
  0xb0   :  { %2799 = vmatprep.subr.bf16.mxu0 %v3079_v14 }
  0xb1   :  { %2820 = vmatpush3.bf16.msra.mxu1 %v3078_v13 }
  0xb2   :  { %2821 = vmatprep.subr.bf16.mxu1 %v3081_v16 }
  0xb3   :  { %2800 = vmatpush3.bf16.msra.mxu0 %v3080_v15 }
  0xb4   :  { %2801 = vmatprep.subr.bf16.mxu0 %v3083_v18 }
  0xb5   :  { %2822 = vmatpush3.bf16.msra.mxu1 %v3082_v17 }
  0xb6   :  { %2823 = vmatprep.subr.bf16.mxu1 %v3085_v20 }
  0xb7   :  { %2802 = vmatpush3.bf16.msra.mxu0 %v3084_v19 }
  0xb8   :  { %2803 = vmatprep.subr.bf16.mxu0 %v3087_v22 }
  0xb9   :  { %2824 = vmatpush3.bf16.msra.mxu1 %v3086_v21 }
  0xba   :  { %2825 = vmatprep.subr.bf16.mxu1 %v3089_v24 }
  0xbb   :  { %2804 = vmatpush3.bf16.msra.mxu0 %v3088_v23 }
  0xbc   :  { %2805 = vmatprep.subr.bf16.mxu0 %v3091_v26 }
  0xbd   :  { %2826 = vmatpush3.bf16.msra.mxu1 %v3090_v25 }
  0xbe   :  { %2827 = vmatprep.subr.bf16.mxu1 %v3093_v28 }
  0xbf   :  { %2806 = vmatpush3.bf16.msra.mxu0 %v3092_v27 }
  0xc0   :  { %2849 = vmatprep.subr.bf16.mxu0 %v3112_v34 }
  0xc1   :  { %2828 = vmatpush3.bf16.msra.mxu1 %v3096_v32 }
  0xc2   :  { %2133 = vmatmul.mubr.bf16.vlgmr.msra.gmra.mxu0 %v2360_v30  ;;  %2861 = vmatprep.subr.bf16.mxu1 %v3112_v34 }
  0xc3   :  { %2850 = vmatpush3.bf16.msra.mxu0 %v3099_v37  ;;  %2857 = vmatprep.mubr.msk.bf16.mxu0 %vm3113_vm0, %v3112_v34 }
  0xc4   :  { %2173 = vmatmul.mubr.bf16.vlgmr.msra.gmra.mxu1 %v2362_v35  ;;  %2851 = vmatprep.subr.bf16.mxu0 %v3112_v34 }
  0xc5   :  { %2877 = vmatprep.mubr.msk.bf16.mxu1 %vm3113_vm0, %v3112_v34  ;;  %2862 = vmatpush3.bf16.msra.mxu1 %v3104_v55 }
  0xc6   :  { %2863 = vmatprep.subr.bf16.mxu1 %v3112_v34 }
  0xc7   :  { %2852 = vmatpush3.bf16.msra.mxu0 %v3100_v38 }
  0xc8   :  { %2853 = vmatprep.subr.bf16.mxu0 %v3112_v34 }
  0xc9   :  { %2864 = vmatpush3.bf16.msra.mxu1 %v3105_v56 }
  0xca   :  { %2865 = vmatprep.subr.bf16.mxu1 %v3112_v34 }
  0xcb   :  { %2854 = vmatpush3.bf16.msra.mxu0 %v3101_v39 }
  0xcc   :  { %2855 = vmatprep.subr.bf16.mxu0 %v3112_v34 }
  0xcd   :  { %2866 = vmatpush3.bf16.msra.mxu1 %v3106_v58 }
  0xce   :  { %2867 = vmatprep.subr.bf16.mxu1 %v3112_v34 }
  0xcf   :  { %2856 = vmatpush3.bf16.msra.mxu0 %v3102_v40 }
  0xd1   :  { %2868 = vmatpush3.bf16.msra.mxu1 %v3107_v1 }
  0xd2   :  { %2858 = vmatmul.mubr.msk.bf16.vlgmr.msra.gmra.mxu0 %vm1696_vm1, %v3103_v41  ;;  %2869 = vmatprep.subr.bf16.mxu1 %v3112_v34 }
  0xd5   :  { %2870 = vmatpush3.bf16.msra.mxu1 %v3108_v7 }
  0xd6   :  { %2871 = vmatprep.subr.bf16.mxu1 %v3112_v34 }
  0xd9   :  { %2872 = vmatpush3.bf16.msra.mxu1 %v3109_v8 }
  0xda   :  { %2873 = vmatprep.subr.bf16.mxu1 %v3112_v34 }
  0xdd   :  { %2874 = vmatpush3.bf16.msra.mxu1 %v3110_v9 }
  0xde   :  { %2875 = vmatprep.subr.bf16.mxu1 %v3112_v34 }
  0xe1   :  { %2876 = vmatpush3.bf16.msra.mxu1 %v3111_v10 }
  0xe2   :  { %v2587_v42 = vpop.f32.mrf.mxu0 }
  0xe4   :  { %v2588_v44 = vpop.f32.mrf.mxu0  ;;  %v2609_v45 = vpop.f32.mrf.mxu1 }
  0xe5   :  { %v2589_v46 = vadd.f32 %v2588_v44, %v2587_v42 }
  0xe6   :  { %v2590_v47 = vpop.f32.mrf.mxu0  ;;  %v2610_v48 = vpop.f32.mrf.mxu1 }
  0xe7   :  { %v1735_v49 = vadd.f32 %v2589_v46, %v2339_v43  ;;  %v2611_v50 = vadd.f32 %v2610_v48, %v2609_v45 }
  0xe8   :  { %v2591_v51 = vpop.f32.mrf.mxu0  ;;  %v2612_v52 = vpop.f32.mrf.mxu1 }
  0xe9   :  { %v1775_v53 = vadd.f32 %v2611_v50, %v1735_v49 }
  0xea   :  { %v2613_v54 = vpop.f32.mrf.mxu1 }
 0x102   :  { %v2631_v57 = vpop.f32.mrf.mxu0 }
 0x104   :  { %v2632_v59 = vpop.f32.mrf.mxu0  ;;  %v2653_v61 = vpop.f32.mrf.mxu1 }
 0x105   :  { %v2633_v60 = vadd.f32 %v2632_v59, %v2631_v57 }
 0x106   :  { %v2634_v62 = vpop.f32.mrf.mxu0  ;;  %v2654_v0 = vpop.f32.mrf.mxu1 }
 0x107   :  { %v1815_v63 = vadd.f32 %v2633_v60, %v1775_v53  ;;  %v2655_v2 = vadd.f32 %v2654_v0, %v2653_v61 }
 0x108   :  { %v2635_v3 = vpop.f32.mrf.mxu0  ;;  %v2656_v4 = vpop.f32.mrf.mxu1 }
 0x109   :  { %v1855_v5 = vadd.f32 %v2655_v2, %v1815_v63  ;;  %v2562_v2 = vld [vmem:[%s3822_s4] ss:$0 sm:$0xff] }
 0x10a   :  { %v2657_v6 = vpop.f32.mrf.mxu1 }
 0x122   :  { %v2675_v11 = vpop.f32.mrf.mxu0 }
 0x124   :  { %v2676_v12 = vpop.f32.mrf.mxu0  ;;  %v2697_v13 = vpop.f32.mrf.mxu1 }
 0x125   :  { %v2677_v14 = vadd.f32 %v2676_v12, %v2675_v11 }
 0x126   :  { %v2678_v15 = vpop.f32.mrf.mxu0  ;;  %v2698_v16 = vpop.f32.mrf.mxu1 }
 0x127   :  { %v1895_v17 = vadd.f32 %v2677_v14, %v1855_v5  ;;  %v2699_v18 = vadd.f32 %v2698_v16, %v2697_v13 }
 0x128   :  { %v2679_v19 = vpop.f32.mrf.mxu0  ;;  %v2700_v20 = vpop.f32.mrf.mxu1 }
 0x129   :  { %v1935_v21 = vadd.f32 %v2699_v18, %v1895_v17 }
 0x12a   :  { %v2701_v22 = vpop.f32.mrf.mxu1 }
 0x142   :  { %v2719_v23 = vpop.f32.mrf.mxu0 }
 0x144   :  { %v2720_v24 = vpop.f32.mrf.mxu0  ;;  %v2741_v25 = vpop.f32.mrf.mxu1 }
 0x145   :  { %v2721_v26 = vadd.f32 %v2720_v24, %v2719_v23 }
 0x146   :  { %v2722_v27 = vpop.f32.mrf.mxu0  ;;  %v2742_v28 = vpop.f32.mrf.mxu1 }
 0x147   :  { %v1975_v29 = vadd.f32 %v2721_v26, %v1935_v21  ;;  %v2743_v30 = vadd.f32 %v2742_v28, %v2741_v25 }
 0x148   :  { %v2723_v31 = vpop.f32.mrf.mxu0  ;;  %v2744_v32 = vpop.f32.mrf.mxu1 }
 0x149   :  { %v2015_v33 = vadd.f32 %v2743_v30, %v1975_v29 }
 0x14a   :  { %v2745_v34 = vpop.f32.mrf.mxu1 }
 0x162   :  { %v2763_v35 = vpop.f32.mrf.mxu0 }
 0x164   :  { %v2764_v36 = vpop.f32.mrf.mxu0  ;;  %v2785_v37 = vpop.f32.mrf.mxu1 }
 0x165   :  { %v2765_v44 = vadd.f32 %v2764_v36, %v2763_v35 }
 0x166   :  { %v2766_v38 = vpop.f32.mrf.mxu0  ;;  %v2786_v39 = vpop.f32.mrf.mxu1 }
 0x167   :  { %v2055_v49 = vadd.f32 %v2765_v44, %v2015_v33  ;;  %v2787_v50 = vadd.f32 %v2786_v39, %v2785_v37 }
 0x168   :  { %v2767_v40 = vpop.f32.mrf.mxu0  ;;  %v2788_v41 = vpop.f32.mrf.mxu1 }
 0x169   :  { %v2095_v55 = vadd.f32 %v2787_v50, %v2055_v49 }
 0x16a   :  { %v2789_v42 = vpop.f32.mrf.mxu1 }
 0x182   :  { %v2807_v43 = vpop.f32.mrf.mxu0 }
 0x184   :  { %v2808_v45 = vpop.f32.mrf.mxu0  ;;  %v2829_v46 = vpop.f32.mrf.mxu1 }
 0x185   :  { %v2809_v53 = vadd.f32 %v2808_v45, %v2807_v43 }
 0x186   :  { %v2810_v47 = vpop.f32.mrf.mxu0  ;;  %v2830_v48 = vpop.f32.mrf.mxu1 }
 0x187   :  { %v2135_v56 = vadd.f32 %v2809_v53, %v2095_v55  ;;  %v2831_v57 = vadd.f32 %v2830_v48, %v2829_v46 }
 0x188   :  { %v2811_v51 = vpop.f32.mrf.mxu0  ;;  %v2832_v52 = vpop.f32.mrf.mxu1 }
 0x189   :  { %v2175_v58 = vadd.f32 %v2831_v57, %v2135_v56 }
 0x18a   :  { %v2833_v54 = vpop.f32.mrf.mxu1 }
 0x192   :  { %v2214_v59 = vpop.f32.mrf.mxu0 }
 0x193   :  { %v2215_v60 = vadd.f32 %v2214_v59, %v2175_v58 }
 0x194   :  { %v2859_v61 = vpop.f32.mrf.mxu0 }
 0x195   :  { %v2220_v62 = vmax.f32 %v2215_v60, 0.0 }
 0x196   :  { %v2217_v63 = vpop.f32.mrf.mxu0 }
 0x197   :  { %v2221_v0 = vpack.c.bf16 %v2220_v62, %v2220_v62 }
 0x198   :  { %v2860_v1 = vpop.f32.mrf.mxu0 }
 0x199   :  { %2878 = vmatmul.mubr.bf16.vlgmr.msra.gmra.mxu1 %v2221_v0 }
 0x259   :  { %v2327_v3 = vpop.f32.mrf.mxu1 }
 0x25a   :  { %v2328_v4 = vadd.f32 %v2562_v2, %v2327_v3 }
 0x25b   :  { %v2879_v5 = vpop.f32.mrf.mxu1 }
 0x25c   :  { %2334 = vst.msk [vmem:[%s3823_s5] sm:$0xff] %vm2333_vm2, %v2328_v4 }
 0x25d   :  { %v2330_v6 = vpop.f32.mrf.mxu1 }
 0x25f   :  { %v2880_v7 = vpop.f32.mrf.mxu1 }

// kernel: digit_classifier_forward.2
= control target key start
LH: loop header
LB: loop body
LE: loop exit
PB: predicated region body
PF: predicated region fallthrough
CT: control target
= control target key end

     0   :  { %s7232_s18 = smov 0   ;;  %s9869_s0 = inlined_call_operand.vmem [shape: bf16[2,784,16], index: 0, kind: input, shape index: {}]   ;;  %s9870_s1 = inlined_call_operand.vmem [shape: bf16[16,32], index: 1, kind: input, shape index: {}]   ;;  %s9871_s2 = inlined_call_operand.vmem [shape: f32[1,32], index: 2, kind: input, shape index: {}]   ;;  %s9872_s3 = inlined_call_operand.vmem [shape: bf16[288,64], index: 3, kind: input, shape index: {}]   ;;  %s9873_s4 = inlined_call_operand.vmem [shape: f32[1,64], index: 4, kind: input, shape index: {}]   ;;  %s9874_s5 = inlined_call_operand.vmem [shape: bf16[2,208,64], index: 5, kind: output, shape index: {}]  }
   0x1 LB: > { %s5579_s19 = sadd.s32 4294967295, %s7197_s18   ;;  %p5583_p0 = scmp.ge.s32.totalorder %s7197_s18, 1  ;;  %s7197_s18 = sphi %s7232_s18, %s15_s18  }
   0x2   : > { %p187_p1 = scmp.lt.s32.totalorder %s7197_s18, 3 }
   0x4   : > { %p188_p2 = pnand %p5583_p0, %p187_p1 }
   0x6   : > { %191 = sbr.rel (%p188_p2) target bundleno = 1495 (0x5d7), region = 40 }
   0xb   : > { %v7017_v0 = vld [vmem:[%s9870_s1] sm:$0xff]   ;;  %v9875_v1 = vmov 0.0   ;;  %p215_p3 = scmp.lt.s32.totalorder %s5579_s19, 1  ;;  %vm7200_vm0 = vmmov 0   ;;  %vm584_vm1 = vcmask 130048   ;;  %vm1280_vm2 = vcmask 1043456  }
   0xc   : > { %6228 = vmatprep.subr.bf16.mxu0 %v9875_v1  ;;  %7002 = vmatprep.subr.bf16.mxu1 %v9875_v1  ;;  %vm1529_vm3 = vcmask 257024   ;;  %vm1606_vm4 = vsmask.f32 7938  ;;  %vm1584_vm5 = vsmask.f32 256 }
   0xd   : > { %6229 = vmatpush3.bf16.msra.mxu0 %v7017_v0  ;;  %6230 = vmatprep.mubr.msk.bf16.mxu0 %vm7200_vm0, %v9875_v1  ;;  %s10135_s19 = smov (!%p215_p3, %s5579_s19), 1  ;;  %vm1585_vm6 = vsmask.f32 4368  ;;  %vm1611_vm7 = vsmask.f32 3328  ;;  %vm7843_vm10 = vmand %vm1529_vm3, %vm1606_vm4  ;;  %vm2291_vm4 = vcmask 261120  }
   0xe   : > { %7003 = vmatpush3.bf16.msra.mxu1 %v7017_v0  ;;  %6418 = vmatprep.mubr.msk.bf16.mxu1 %vm7200_vm0, %v9875_v1  ;;  %s7004_s22 = smul.u32 392, %s10135_s19  ;;  %vm1621_vm8 = vsmask.f32 1280  ;;  %vm1622_vm9 = vsmask.f32 5392  ;;  %vm7862_vm11 = vmor %vm1584_vm5, %vm1585_vm6 }
   0xf   : > { %6426 = vmatprep.subr.bf16.mxu1 %v9875_v1  ;;  %6682 = vmatprep.subr.bf16.mxu0 %v9875_v1  ;;  %vm7871_vm12 = vmand %vm1529_vm3, %vm1611_vm7  ;;  %vm1660_vm14 = vsmask.f32 2304  ;;  %vm1661_vm15 = vsmask.f32 6416  ;;  %vm2154_vm5 = vsmask.f32 7424 }
  0x10   : > { %s7257_s25 = scalar_lea.vmem %s9869_s0, %s7004_s22  ;;  %vm7892_vm13 = vmor %vm1621_vm8, %vm1622_vm9  ;;  %s7005_s24 = smul.u32 104, %s10135_s19 }
  0x11   : > { %v7018_v2 = vld [vmem:[%s7257_s25] sm:$0xff]   ;;  %v7019_v3 = vld [vmem:[%s7257_s25 + $0x8] sm:$0xff]   ;;  %v7020_v4 = vld [vmem:[%s7257_s25 + $0x10] sm:$0xff]  }
  0x12   : > { %6231 = vmatmul.mubr.msk.bf16.vlgmr.msra.gmra.mxu0 %vm584_vm1, %v7018_v2  ;;  %v7021_v5 = vld [vmem:[%s7257_s25 + $0x18] sm:$0xff]   ;;  %v7022_v6 = vld [vmem:[%s7257_s25 + $0x20] sm:$0xff]   ;;  %v7023_v7 = vld [vmem:[%s7257_s25 + $0x28] sm:$0xff]   ;;  %s9697_s19 = scalar_lea.vmem %s9874_s5, %s7005_s24 }
  0x13   : > { %6234 = vmatprep.mubr.msk.bf16.mxu0 %vm7200_vm0, %v9875_v1  ;;  %v7024_v8 = vld [vmem:[%s7257_s25 + $0x30] sm:$0xff]   ;;  %v7025_v9 = vld [vmem:[%s7257_s25 + $0x38] sm:$0xff]   ;;  %v7026_v10 = vld [vmem:[%s7257_s25 + $0x40] sm:$0xff]  }
  0x14   : > { %v7027_v11 = vld [vmem:[%s7257_s25 + $0x48] sm:$0xff]   ;;  %v7028_v12 = vld [vmem:[%s7257_s25 + $0x50] sm:$0xff]   ;;  %v7029_v13 = vld [vmem:[%s7257_s25 + $0x58] sm:$0xff]  }
  0x15   : > { %v7030_v14 = vld [vmem:[%s7257_s25 + $0x60] sm:$0xff]   ;;  %v7031_v15 = vld [vmem:[%s7257_s25 + $0x68] sm:$0xff]   ;;  %v7032_v16 = vld [vmem:[%s7257_s25 + $0x70] sm:$0xff]  }
  0x16   : > { %v7033_v17 = vld [vmem:[%s7257_s25 + $0x78] sm:$0xff]   ;;  %v7034_v18 = vld [vmem:[%s7257_s25 + $0x80] sm:$0xff]   ;;  %v7035_v19 = vld [vmem:[%s7257_s25 + $0x88] sm:$0xff]  }
  0x17   : > { %v7036_v20 = vld [vmem:[%s7257_s25 + $0x90] sm:$0xff]   ;;  %v7053_v21 = vld [vmem:[%s7257_s25 + $0x178] sm:$0xff]   ;;  %v7055_v23 = vld [vmem:[%s7257_s25 + $0x180] sm:$0xff]  }
  0x18   : > { %6419 = vmatmul.mubr.msk.bf16.vlgmr.msra.gmra.mxu1 %vm584_vm1, %v7053_v21  ;;  %v7037_v22 = vld [vmem:[%s7257_s25 + $0x98] sm:$0xff]   ;;  %v7038_v24 = vld [vmem:[%s7257_s25 + $0xa0] sm:$0xff]   ;;  %v7039_v25 = vld [vmem:[%s7257_s25 + $0xa8] sm:$0xff]  }
  0x19   : > { %6422 = vmatprep.mubr.msk.bf16.mxu1 %vm7200_vm0, %v9875_v1  ;;  %v7040_v26 = vld [vmem:[%s7257_s25 + $0xb0] sm:$0xff]   ;;  %v7041_v27 = vld [vmem:[%s7257_s25 + $0xb8] sm:$0xff]   ;;  %v7042_v28 = vld [vmem:[%s7257_s25 + $0xc0] sm:$0xff]  }
  0x1a   : > { %6235 = vmatmul.mubr.msk.bf16.gmra.mxu0 %vm584_vm1, %v7019_v3  ;;  %v7043_v32 = vld [vmem:[%s7257_s25 + $0xc8] sm:$0xff]   ;;  %v7044_v37 = vld [vmem:[%s7257_s25 + $0xd0] sm:$0xff]   ;;  %v7045_v42 = vld [vmem:[%s7257_s25 + $0xd8] sm:$0xff]  }
  0x1b   : > { %6238 = vmatprep.mubr.msk.bf16.mxu0 %vm7200_vm0, %v9875_v1  ;;  %v7046_v47 = vld [vmem:[%s7257_s25 + $0xe0] sm:$0xff]   ;;  %v7047_v52 = vld [vmem:[%s7257_s25 + $0xe8] sm:$0xff]   ;;  %v7048_v57 = vld [vmem:[%s7257_s25 + $0xf0] sm:$0xff]  }
  0x1c   : > { %v7049_v62 = vld [vmem:[%s7257_s25 + $0xf8] sm:$0xff]  }
  0x20   : > { %6423 = vmatmul.mubr.msk.bf16.gmra.mxu1 %vm584_vm1, %v7055_v23 }
  0x21   : > { %6430 = vmatprep.mubr.msk.bf16.mxu1 %vm7200_vm0, %v9875_v1 }
  0x22   : > { %6239 = vmatmul.mubr.msk.bf16.gmra.mxu0 %vm584_vm1, %v7020_v4  ;;  %v7050_v4 = vld [vmem:[%s7257_s25 + $0x100] sm:$0xff]  }
  0x23   : > { %6242 = vmatprep.mubr.msk.bf16.mxu0 %vm7200_vm0, %v9875_v1 }
  0x2a   : > { %6243 = vmatmul.mubr.msk.bf16.gmra.mxu0 %vm584_vm1, %v7021_v5 }
  0x2b   : > { %6246 = vmatprep.mubr.msk.bf16.mxu0 %vm7200_vm0, %v9875_v1 }
  0x32   : > { %6247 = vmatmul.mubr.msk.bf16.gmra.mxu0 %vm584_vm1, %v7022_v6 }
  0x33   : > { %6250 = vmatprep.mubr.msk.bf16.mxu0 %vm7200_vm0, %v9875_v1 }
  0x3a   : > { %6251 = vmatmul.mubr.msk.bf16.gmra.mxu0 %vm584_vm1, %v7023_v7 }
  0x3b   : > { %6254 = vmatprep.mubr.msk.bf16.mxu0 %vm7200_vm0, %v9875_v1 }
  0x42   : > { %6255 = vmatmul.mubr.msk.bf16.gmra.mxu0 %vm584_vm1, %v7024_v8 }
  0x43   : > { %6258 = vmatprep.mubr.msk.bf16.mxu0 %vm7200_vm0, %v9875_v1 }
  0x4a   : > { %6259 = vmatmul.mubr.msk.bf16.gmra.mxu0 %vm584_vm1, %v7025_v9  ;;  %v7051_v9 = vld [vmem:[%s7257_s25 + $0x108] sm:$0xff]  }
  0x4b   : > { %6262 = vmatprep.mubr.msk.bf16.mxu0 %vm7200_vm0, %v9875_v1 }
  0x52   : > { %6263 = vmatmul.mubr.msk.bf16.gmra.mxu0 %vm584_vm1, %v7026_v10 }
  0x53   : > { %6266 = vmatprep.mubr.msk.bf16.mxu0 %vm7200_vm0, %v9875_v1 }
  0x5a   : > { %6267 = vmatmul.mubr.msk.bf16.gmra.mxu0 %vm584_vm1, %v7027_v11 }
  0x5b   : > { %6270 = vmatprep.mubr.msk.bf16.mxu0 %vm7200_vm0, %v9875_v1 }
  0x62   : > { %6271 = vmatmul.mubr.msk.bf16.gmra.mxu0 %vm584_vm1, %v7028_v12 }
  0x63   : > { %6274 = vmatprep.mubr.msk.bf16.mxu0 %vm7200_vm0, %v9875_v1 }
  0x6a   : > { %6275 = vmatmul.mubr.msk.bf16.gmra.mxu0 %vm584_vm1, %v7029_v13 }
  0x6b   : > { %6278 = vmatprep.mubr.msk.bf16.mxu0 %vm7200_vm0, %v9875_v1 }
  0x72   : > { %6279 = vmatmul.mubr.msk.bf16.gmra.mxu0 %vm584_vm1, %v7030_v14  ;;  %v7052_v14 = vld [vmem:[%s7257_s25 + $0x110] sm:$0xff]  }
  0x73   : > { %6282 = vmatprep.mubr.msk.bf16.mxu0 %vm7200_vm0, %v9875_v1 }
  0x7a   : > { %6283 = vmatmul.mubr.msk.bf16.gmra.mxu0 %vm584_vm1, %v7031_v15 }
  0x7b   : > { %6286 = vmatprep.mubr.msk.bf16.mxu0 %vm7200_vm0, %v9875_v1 }
  0x82   : > { %6287 = vmatmul.mubr.msk.bf16.gmra.mxu0 %vm584_vm1, %v7032_v16 }
  0x83   : > { %6290 = vmatprep.mubr.msk.bf16.mxu0 %vm7200_vm0, %v9875_v1 }
  0x8a   : > { %6291 = vmatmul.mubr.msk.bf16.gmra.mxu0 %vm584_vm1, %v7033_v17 }
  0x8b   : > { %6294 = vmatprep.mubr.msk.bf16.mxu0 %vm7200_vm0, %v9875_v1 }
  0x92   : > { %6295 = vmatmul.mubr.msk.bf16.gmra.mxu0 %vm584_vm1, %v7034_v18 }
  0x93   : > { %6298 = vmatprep.mubr.msk.bf16.mxu0 %vm7200_vm0, %v9875_v1 }
  0x9a   : > { %6299 = vmatmul.mubr.msk.bf16.gmra.mxu0 %vm584_vm1, %v7035_v19  ;;  %v7054_v19 = vld [vmem:[%s7257_s25 + $0x118] sm:$0xff]  }
  0x9b   : > { %6302 = vmatprep.mubr.msk.bf16.mxu0 %vm7200_vm0, %v9875_v1 }
  0xa2   : > { %6303 = vmatmul.mubr.msk.bf16.gmra.mxu0 %vm584_vm1, %v7036_v20 }
  0xa3   : > { %6306 = vmatprep.mubr.msk.bf16.mxu0 %vm7200_vm0, %v9875_v1 }
  0xaa   : > { %6307 = vmatmul.mubr.msk.bf16.gmra.mxu0 %vm584_vm1, %v7037_v22 }
  0xab   : > { %6310 = vmatprep.mubr.msk.bf16.mxu0 %vm7200_vm0, %v9875_v1 }
  0xb2   : > { %6311 = vmatmul.mubr.msk.bf16.gmra.mxu0 %vm584_vm1, %v7038_v24  ;;  %v7056_v24 = vld [vmem:[%s7257_s25 + $0x120] sm:$0xff]  }
  0xb3   : > { %6314 = vmatprep.mubr.msk.bf16.mxu0 %vm7200_vm0, %v9875_v1 }
  0xba   : > { %6315 = vmatmul.mubr.msk.bf16.gmra.mxu0 %vm584_vm1, %v7039_v25 }
  0xbb   : > { %6318 = vmatprep.mubr.msk.bf16.mxu0 %vm7200_vm0, %v9875_v1 }
  0xc2   : > { %6319 = vmatmul.mubr.msk.bf16.gmra.mxu0 %vm584_vm1, %v7040_v26  ;;  %v7463_v26 = vld [vmem:[%s9871_s2] ss:$0 sm:$0xff] }
  0xc3   : > { %6322 = vmatprep.mubr.msk.bf16.mxu0 %vm7200_vm0, %v9875_v1 }
  0xca   : > { %6323 = vmatmul.mubr.msk.bf16.gmra.mxu0 %vm584_vm1, %v7041_v27 }
  0xcb   : > { %6326 = vmatprep.mubr.msk.bf16.mxu0 %vm7200_vm0, %v9875_v1 }
  0xd2   : > { %v7364_v29 = vpop.f32.mrf.mxu0  ;;  %6327 = vmatmul.mubr.msk.bf16.gmra.mxu0 %vm584_vm1, %v7042_v28 }
  0xd3   : > { %6330 = vmatprep.mubr.msk.bf16.mxu0 %vm7200_vm0, %v9875_v1 }
  0xd4   : > { %v6232_v30 = vpop.f32.mrf.mxu0 }
  0xd6   : > { %v7369_v31 = vpop.f32.mrf.mxu0 }
  0xd8   : > { %v6233_v33 = vpop.f32.mrf.mxu0 }
  0xd9   : > { %v7057_v33 = vld [vmem:[%s7257_s25 + $0x128] sm:$0xff]  }
  0xda   : > { %v7372_v34 = vpop.f32.mrf.mxu0  ;;  %6331 = vmatmul.mubr.msk.bf16.gmra.mxu0 %vm584_vm1, %v7043_v32 }
  0xdb   : > { %6334 = vmatprep.mubr.msk.bf16.mxu0 %vm7200_vm0, %v9875_v1 }
  0xdc   : > { %v6236_v35 = vpop.f32.mrf.mxu0 }
  0xde   : > { %v7377_v36 = vpop.f32.mrf.mxu0 }
  0xe0   : > { %v6237_v38 = vpop.f32.mrf.mxu0 }
  0xe1   : > { %v767_v38 = vadd.f32 %v7463_v26, %v7364_v29  ;;  %v770_v29 = vadd.f32 %v7463_v26, %v7369_v31 }
  0xe2   : > { %v7380_v39 = vpop.f32.mrf.mxu0  ;;  %6335 = vmatmul.mubr.msk.bf16.gmra.mxu0 %vm584_vm1, %v7044_v37 }
  0xe3   : > { %6338 = vmatprep.mubr.msk.bf16.mxu0 %vm7200_vm0, %v9875_v1 }
  0xe4   : > { %v6240_v40 = vpop.f32.mrf.mxu0 }
  0xe6   : > { %v7385_v41 = vpop.f32.mrf.mxu0 }
  0xe8   : > { %v6241_v43 = vpop.f32.mrf.mxu0 }
  0xea   : > { %v7388_v44 = vpop.f32.mrf.mxu0  ;;  %6339 = vmatmul.mubr.msk.bf16.gmra.mxu0 %vm584_vm1, %v7045_v42 }
  0xeb   : > { %6342 = vmatprep.mubr.msk.bf16.mxu0 %vm7200_vm0, %v9875_v1 }
  0xec   : > { %v6244_v45 = vpop.f32.mrf.mxu0 }
  0xee   : > { %v7393_v46 = vpop.f32.mrf.mxu0 }
  0xf0   : > { %v6245_v48 = vpop.f32.mrf.mxu0 }
  0xf2   : > { %v7396_v49 = vpop.f32.mrf.mxu0  ;;  %6343 = vmatmul.mubr.msk.bf16.gmra.mxu0 %vm584_vm1, %v7046_v47 }
  0xf3   : > { %6346 = vmatprep.mubr.msk.bf16.mxu0 %vm7200_vm0, %v9875_v1 }
  0xf4   : > { %v6248_v50 = vpop.f32.mrf.mxu0 }
  0xf5   : > { %v1157_v50 = vmax.f32 %v767_v38, 0.0 }
  0xf6   : > { %v7401_v51 = vpop.f32.mrf.mxu0 }
  0xf8   : > { %v6249_v53 = vpop.f32.mrf.mxu0 }
  0xfa   : > { %v7404_v54 = vpop.f32.mrf.mxu0  ;;  %6347 = vmatmul.mubr.msk.bf16.gmra.mxu0 %vm584_vm1, %v7047_v52 }
  0xfb   : > { %6350 = vmatprep.mubr.msk.bf16.mxu0 %vm7200_vm0, %v9875_v1 }
  0xfc   : > { %v6252_v55 = vpop.f32.mrf.mxu0 }
  0xfe   : > { %v7409_v56 = vpop.f32.mrf.mxu0 }
 0x100   : > { %v6253_v58 = vpop.f32.mrf.mxu0 }
 0x102   : > { %v7412_v59 = vpop.f32.mrf.mxu0  ;;  %6351 = vmatmul.mubr.msk.bf16.gmra.mxu0 %vm584_vm1, %v7048_v57 }
 0x103   : > { %6354 = vmatprep.mubr.msk.bf16.mxu0 %vm7200_vm0, %v9875_v1 }
 0x104   : > { %v6256_v60 = vpop.f32.mrf.mxu0 }
 0x105   : > { %v7058_v60 = vld [vmem:[%s7257_s25 + $0x130] sm:$0xff]  }
 0x106   : > { %v7417_v61 = vpop.f32.mrf.mxu0 }
 0x108   : > { %v6257_v63 = vpop.f32.mrf.mxu0 }
 0x10a   : > { %v7420_v0 = vpop.f32.mrf.mxu0  ;;  %6355 = vmatmul.mubr.msk.bf16.gmra.mxu0 %vm584_vm1, %v7049_v62 }
 0x10b   : > { %6358 = vmatprep.mubr.msk.bf16.mxu0 %vm7200_vm0, %v9875_v1 }
 0x10c   : > { %v6260_v2 = vpop.f32.mrf.mxu0 }
 0x10d   : > { %v1158_v2 = vmax.f32 %v770_v29, 0.0 }
 0x10e   : > { %v7425_v3 = vpop.f32.mrf.mxu0 }
 0x110   : > { %v6261_v5 = vpop.f32.mrf.mxu0 }
 0x112   : > { %v7428_v6 = vpop.f32.mrf.mxu0  ;;  %6359 = vmatmul.mubr.msk.bf16.gmra.mxu0 %vm584_vm1, %v7050_v4  ;;  %v775_v4 = vadd.f32 %v7463_v26, %v7372_v34  ;;  %v778_v34 = vadd.f32 %v7463_v26, %v7377_v36 }
 0x113   : > { %6362 = vmatprep.mubr.msk.bf16.mxu0 %vm7200_vm0, %v9875_v1 }
 0x114   : > { %v6264_v7 = vpop.f32.mrf.mxu0 }
 0x116   : > { %v7433_v8 = vpop.f32.mrf.mxu0 }
 0x118   : > { %v6265_v10 = vpop.f32.mrf.mxu0 }
 0x11a   : > { %v7436_v11 = vpop.f32.mrf.mxu0  ;;  %6363 = vmatmul.mubr.msk.bf16.gmra.mxu0 %vm584_vm1, %v7051_v9 }
 0x11b   : > { %6366 = vmatprep.mubr.msk.bf16.mxu0 %vm7200_vm0, %v9875_v1 }
 0x11c   : > { %v6268_v12 = vpop.f32.mrf.mxu0 }
 0x11e   : > { %v7441_v13 = vpop.f32.mrf.mxu0 }
 0x120   : > { %v6269_v15 = vpop.f32.mrf.mxu0 }
 0x121   : > { %v1159_v15 = vmax.f32 %v775_v4, 0.0 }
 0x122   : > { %v7444_v16 = vpop.f32.mrf.mxu0  ;;  %6367 = vmatmul.mubr.msk.bf16.gmra.mxu0 %vm584_vm1, %v7052_v14 }
 0x123   : > { %6370 = vmatprep.mubr.msk.bf16.mxu0 %vm7200_vm0, %v9875_v1 }
 0x124   : > { %v6272_v17 = vpop.f32.mrf.mxu0 }
 0x126   : > { %v7449_v18 = vpop.f32.mrf.mxu0 }
 0x128   : > { %v6273_v20 = vpop.f32.mrf.mxu0 }
 0x12a   : > { %v7452_v21 = vpop.f32.mrf.mxu0  ;;  %6371 = vmatmul.mubr.msk.bf16.gmra.mxu0 %vm584_vm1, %v7054_v19 }
 0x12b   : > { %6374 = vmatprep.mubr.msk.bf16.mxu0 %vm7200_vm0, %v9875_v1 }
 0x12c   : > { %v6276_v22 = vpop.f32.mrf.mxu0 }
 0x12e   : > { %v7457_v23 = vpop.f32.mrf.mxu0 }
 0x130   : > { %v6277_v25 = vpop.f32.mrf.mxu0 }
 0x131   : > { %v7059_v25 = vld [vmem:[%s7257_s25 + $0x138] sm:$0xff]  }
 0x132   : > { %v862_v27 = vpop.f32.mrf.mxu0  ;;  %6375 = vmatmul.mubr.msk.bf16.gmra.mxu0 %vm584_vm1, %v7056_v24 }
 0x133   : > { %v7467_v28 = vadd.f32 %v7463_v26, %v862_v27  ;;  %6378 = vmatprep.mubr.msk.bf16.mxu0 %vm7200_vm0, %v9875_v1 }
 0x134   : > { %v6280_v30 = vpop.f32.mrf.mxu0 }
 0x135   : > { %v1181_v35 = vmax.f32 %v7467_v28, 0.0  ;;  %v7069_v28 = vld [vmem:[%s9872_s3 + $0x10] sm:$0xff]  }
 0x136   : > { %v865_v32 = vpop.f32.mrf.mxu0 }
 0x137   : > { %v866_v37 = vadd.f32 %v7463_v26, %v865_v32  ;;  %v1281_v45 = vrot.slane %v1181_v35, 4  ;;  %v1160_v32 = vmax.f32 %v778_v34, 0.0 }
 0x138   : > { %v6281_v40 = vpop.f32.mrf.mxu0 }
 0x139   : > { %v1182_v42 = vmax.f32 %v866_v37, 0.0 }
 0x13a   : > { %v870_v43 = vpop.f32.mrf.mxu0  ;;  %6379 = vmatmul.mubr.msk.bf16.gmra.mxu0 %vm584_vm1, %v7057_v33  ;;  %v783_v33 = vadd.f32 %v7463_v26, %v7380_v39  ;;  %v786_v39 = vadd.f32 %v7463_v26, %v7385_v41 }
 0x13b   : > { %v1282_v47 = vrot.slane %v1182_v42, 4  ;;  %v871_v48 = vadd.f32 %v7463_v26, %v870_v43  ;;  %6382 = vmatprep.mubr.msk.bf16.mxu0 %vm7200_vm0, %v9875_v1 }
 0x13c   : > { %v6284_v52 = vpop.f32.mrf.mxu0 }
 0x13d   : > { %v1283_v53 = vsel %vm1280_vm2, %v1281_v45, %v1282_v47  ;;  %v1183_v55 = vmax.f32 %v871_v48, 0.0 }
 0x13e   : > { %v7485_v57 = vmax.f32 %v1157_v50, %v1283_v53  ;;  %v873_v58 = vpop.f32.mrf.mxu0 }
 0x13f   : > { %v1284_v62 = vrot.slane %v1183_v55, 4  ;;  %v874_v63 = vadd.f32 %v7463_v26, %v873_v58  ;;  %v7060_v55 = vld [vmem:[%s7257_s25 + $0x140] sm:$0xff]  }
 0x140   : > { %v6285_v5 = vpop.f32.mrf.mxu0 }
 0x141   : > { %v1285_v7 = vsel %vm1280_vm2, %v1282_v47, %v1284_v62  ;;  %v1184_v31 = vmax.f32 %v874_v63, 0.0  ;;  %v1161_v47 = vmax.f32 %v783_v33, 0.0  ;;  %v791_v63 = vadd.f32 %v7463_v26, %v7388_v44 }
 0x142   : > { %v7492_v9 = vmax.f32 %v1158_v2, %v1285_v7  ;;  %v878_v10 = vpop.f32.mrf.mxu0  ;;  %6383 = vmatmul.mubr.msk.bf16.gmra.mxu0 %vm584_vm1, %v7058_v60  ;;  %v794_v44 = vadd.f32 %v7463_v26, %v7393_v46 }
 0x143   : > { %v1286_v12 = vrot.slane %v1184_v31, 4  ;;  %v879_v14 = vadd.f32 %v7463_v26, %v878_v10  ;;  %6386 = vmatprep.mubr.msk.bf16.mxu0 %vm7200_vm0, %v9875_v1 }
 0x144   : > { %v6288_v17 = vpop.f32.mrf.mxu0 }
 0x145   : > { %v1287_v19 = vsel %vm1280_vm2, %v1284_v62, %v1286_v12  ;;  %v1185_v20 = vmax.f32 %v879_v14, 0.0  ;;  %v1162_v62 = vmax.f32 %v786_v39, 0.0 }
 0x146   : > { %v7501_v22 = vmax.f32 %v1159_v15, %v1287_v19  ;;  %v881_v24 = vpop.f32.mrf.mxu0 }
 0x147   : > { %v1288_v27 = vrot.slane %v1185_v20, 4  ;;  %v882_v30 = vadd.f32 %v7463_v26, %v881_v24  ;;  %v7061_v20 = vld [vmem:[%s7257_s25 + $0x148] sm:$0xff]  }
 0x148   : > { %v6289_v37 = vpop.f32.mrf.mxu0 }
 0x149   : > { %v1289_v38 = vsel %vm1280_vm2, %v1286_v12, %v1288_v27  ;;  %v1186_v36 = vmax.f32 %v882_v30, 0.0  ;;  %v1163_v12 = vmax.f32 %v791_v63, 0.0  ;;  %v799_v30 = vadd.f32 %v7463_v26, %v7396_v49 }
 0x14a   : > { %v7508_v40 = vmax.f32 %v1160_v32, %v1289_v38  ;;  %v886_v42 = vpop.f32.mrf.mxu0  ;;  %6387 = vmatmul.mubr.msk.bf16.gmra.mxu0 %vm584_vm1, %v7059_v25  ;;  %v802_v49 = vadd.f32 %v7463_v26, %v7401_v51 }
 0x14b   : > { %v1290_v43 = vrot.slane %v1186_v36, 4  ;;  %v887_v45 = vadd.f32 %v7463_v26, %v886_v42  ;;  %6390 = vmatprep.mubr.msk.bf16.mxu0 %vm7200_vm0, %v9875_v1 }
 0x14c   : > { %v6292_v48 = vpop.f32.mrf.mxu0 }
 0x14d   : > { %v1291_v50 = vsel %vm1280_vm2, %v1288_v27, %v1290_v43  ;;  %v1187_v29 = vmax.f32 %v887_v45, 0.0  ;;  %v1164_v27 = vmax.f32 %v794_v44, 0.0 }
 0x14e   : > { %v7517_v52 = vmax.f32 %v1161_v47, %v1291_v50  ;;  %v889_v53 = vpop.f32.mrf.mxu0 }
 0x14f   : > { %v1292_v58 = vrot.slane %v1187_v29, 4  ;;  %v890_v60 = vadd.f32 %v7463_v26, %v889_v53  ;;  %v7062_v29 = vld [vmem:[%s7257_s25 + $0x150] sm:$0xff]  }
 0x150   : > { %v6293_v2 = vpop.f32.mrf.mxu0 }
 0x151   : > { %v1293_v4 = vsel %vm1280_vm2, %v1290_v43, %v1292_v58  ;;  %v1188_v41 = vmax.f32 %v890_v60, 0.0  ;;  %v1165_v43 = vmax.f32 %v799_v30, 0.0  ;;  %v807_v60 = vadd.f32 %v7463_v26, %v7404_v54 }
 0x152   : > { %v7524_v5 = vmax.f32 %v1162_v62, %v1293_v4  ;;  %v894_v7 = vpop.f32.mrf.mxu0  ;;  %6391 = vmatmul.mubr.msk.bf16.gmra.mxu0 %vm584_vm1, %v7060_v55  ;;  %v810_v54 = vadd.f32 %v7463_v26, %v7409_v56 }
 0x153   : > { %v1294_v31 = vrot.slane %v1188_v41, 4  ;;  %v895_v10 = vadd.f32 %v7463_v26, %v894_v7  ;;  %6394 = vmatprep.mubr.msk.bf16.mxu0 %vm7200_vm0, %v9875_v1 }
 0x154   : > { %v6296_v14 = vpop.f32.mrf.mxu0  ;;  %v1168_v30 = vmax.f32 %v810_v54, 0.0  ;;  %v823_v54 = vadd.f32 %v7463_v26, %v7420_v0 }
 0x155   : > { %v1295_v15 = vsel %vm1280_vm2, %v1292_v58, %v1294_v31  ;;  %v1189_v34 = vmax.f32 %v895_v10, 0.0  ;;  %v1166_v58 = vmax.f32 %v802_v49, 0.0  ;;  %v1167_v10 = vmax.f32 %v807_v60, 0.0 }
 0x156   : > { %v7533_v17 = vmax.f32 %v1163_v12, %v1295_v15  ;;  %v897_v19 = vpop.f32.mrf.mxu0  ;;  %v818_v49 = vadd.f32 %v7463_v26, %v7417_v61  ;;  %v7064_v61 = vld [vmem:[%s7257_s25 + $0x160] sm:$0xff]  }
 0x157   : > { %v1296_v24 = vrot.slane %v1189_v34, 4  ;;  %v898_v25 = vadd.f32 %v7463_v26, %v897_v19 }
 0x158   : > { %v6297_v32 = vpop.f32.mrf.mxu0 }
 0x159   : > { %v1297_v33 = vsel %vm1280_vm2, %v1294_v31, %v1296_v24  ;;  %v1190_v46 = vmax.f32 %v898_v25, 0.0  ;;  %v7562_v31 = vpop.f32.mrf.mxu1  ;;  %v815_v32 = vadd.f32 %v7463_v26, %v7412_v59 }
 0x15a   : > { %v7540_v37 = vmax.f32 %v1164_v27, %v1297_v33  ;;  %v902_v38 = vpop.f32.mrf.mxu0  ;;  %6395 = vmatmul.mubr.msk.bf16.gmra.mxu0 %vm584_vm1, %v7061_v20  ;;  %v7063_v20 = vld [vmem:[%s7257_s25 + $0x158] sm:$0xff]  }
 0x15b   : > { %v1298_v36 = vrot.slane %v1190_v46, 4  ;;  %v903_v42 = vadd.f32 %v7463_v26, %v902_v38  ;;  %6398 = vmatprep.mubr.msk.bf16.mxu0 %vm7200_vm0, %v9875_v1  ;;  %v6420_v15 = vpop.f32.mrf.mxu1 }
 0x15c   : > { %v6300_v45 = vpop.f32.mrf.mxu0 }
 0x15d   : > { %v1299_v47 = vsel %vm1280_vm2, %v1296_v24, %v1298_v36  ;;  %v1191_v39 = vmax.f32 %v903_v42, 0.0  ;;  %v1145_v27 = vpop.f32.mrf.mxu1 }
 0x15e   : > { %v7549_v48 = vmax.f32 %v1165_v43, %v1299_v47  ;;  %v905_v50 = vpop.f32.mrf.mxu0  ;;  %v1146_v56 = vadd.f32 %v7463_v26, %v1145_v27 }
 0x15f   : > { %v1300_v53 = vrot.slane %v1191_v39, 4  ;;  %v906_v55 = vadd.f32 %v7463_v26, %v905_v50  ;;  %v1169_v39 = vmax.f32 %v815_v32, 0.0 }
 0x160   : > { %v6301_v62 = vpop.f32.mrf.mxu0 }
 0x161   : > { %v1301_v63 = vsel %vm1280_vm2, %v1298_v36, %v1300_v53  ;;  %v1192_v2 = vmax.f32 %v906_v55, 0.0  ;;  %v6421_v36 = vpop.f32.mrf.mxu1 }
 0x162   : > { %v7556_v51 = vmax.f32 %v1166_v58, %v1301_v63  ;;  %v910_v4 = vpop.f32.mrf.mxu0  ;;  %6399 = vmatmul.mubr.msk.bf16.gmra.mxu0 %vm584_vm1, %v7062_v29  ;;  %v1252_v29 = vmax.f32 %v1146_v56, 0.0 }
 0x163   : > { %v1302_v41 = vrot.slane %v1192_v2, 4  ;;  %v911_v7 = vadd.f32 %v7463_v26, %v910_v4  ;;  %6402 = vmatprep.mubr.msk.bf16.mxu0 %vm7200_vm0, %v9875_v1  ;;  %v1150_v59 = vpop.f32.mrf.mxu1  ;;  %v1170_v4 = vmax.f32 %v818_v49, 0.0 }
 0x164   : > { %v6304_v12 = vpop.f32.mrf.mxu0 }
 0x165   : > { %v1303_v44 = vsel %vm1280_vm2, %v1300_v53, %v1302_v41  ;;  %v1193_v14 = vmax.f32 %v911_v7, 0.0  ;;  %v1151_v53 = vadd.f32 %v7463_v26, %v1150_v59  ;;  %v6424_v60 = vpop.f32.mrf.mxu1 }
 0x166   : > { %v7567_v34 = vmax.f32 %v1167_v10, %v1303_v44  ;;  %v913_v19 = vpop.f32.mrf.mxu0  ;;  %v7591_v44 = vrot.slane %v1252_v29, 4 }
 0x167   : > { %v1304_v24 = vrot.slane %v1193_v14, 4  ;;  %v914_v25 = vadd.f32 %v7463_v26, %v913_v19  ;;  %v1253_v2 = vmax.f32 %v1151_v53, 0.0  ;;  %v1153_v10 = vpop.f32.mrf.mxu1 }
 0x168   : > { %v6305_v33 = vpop.f32.mrf.mxu0  ;;  %v1154_v15 = vadd.f32 %v7463_v26, %v1153_v10 }
 0x169   : > { %v1305_v46 = vsel %vm1280_vm2, %v1302_v41, %v1304_v24  ;;  %v1194_v38 = vmax.f32 %v914_v25, 0.0  ;;  %v1450_v14 = vrot.slane %v1253_v2, 4 }
 0x16a   : > { %v7575_v42 = vmax.f32 %v1168_v30, %v1305_v46  ;;  %v918_v43 = vpop.f32.mrf.mxu0  ;;  %6403 = vmatmul.mubr.msk.bf16.gmra.mxu0 %vm584_vm1, %v7063_v20  ;;  %v7201_v30 = vmov 0   ;;  %v1254_v32 = vmax.f32 %v1154_v15, 0.0  ;;  %v1171_v46 = vmax.f32 %v823_v54, 0.0 }
 0x16b   : > { %v1306_v45 = vrot.slane %v1194_v38, 4  ;;  %v919_v47 = vadd.f32 %v7463_v26, %v918_v43  ;;  %6406 = vmatprep.mubr.msk.bf16.mxu0 %vm7200_vm0, %v9875_v1  ;;  %1556 = vst.msk [vmem:[#allocation2 + $0x68] sm:$0xf] %vm1529_vm3, %v7201_v30  ;;  %1530 = vst.msk [vmem:[#allocation2] sm:$0xf] %vm1529_vm3, %v7201_v30  ;;  %v7635_v0 = vsel %vm1280_vm2, %v7591_v44, %v1450_v14 }
 0x16c   : > { %v6308_v50 = vpop.f32.mrf.mxu0  ;;  %1531 = vst.msk [vmem:[#allocation2 + $0x4] sm:$0xf] %vm1529_vm3, %v7201_v30  ;;  %1532 = vst.msk [vmem:[#allocation2 + $0x8] sm:$0xf] %vm1529_vm3, %v7201_v30  ;;  %v826_v38 = vadd.f32 %v7463_v26, %v7425_v3  ;;  %v7642_v43 = vrot.slane %v1254_v32, 4  ;;  %v831_v3 = vadd.f32 %v7463_v26, %v7428_v6 }
 0x16d   : > { %v1307_v55 = vsel %vm1280_vm2, %v1304_v24, %v1306_v45  ;;  %v1195_v58 = vmax.f32 %v919_v47, 0.0  ;;  %v6425_v24 = vpop.f32.mrf.mxu1  ;;  %1533 = vst.msk [vmem:[#allocation2 + $0xc] sm:$0xf] %vm1529_vm3, %v7201_v30  ;;  %1534 = vst.msk [vmem:[#allocation2 + $0x10] sm:$0xf] %vm1529_vm3, %v7201_v30 }
 0x16e   : > { %v7585_v62 = vmax.f32 %v1169_v39, %v1307_v55  ;;  %v921_v63 = vpop.f32.mrf.mxu0  ;;  %1535 = vst.msk [vmem:[#allocation2 + $0x14] sm:$0xf] %vm1529_vm3, %v7201_v30  ;;  %1536 = vst.msk [vmem:[#allocation2 + $0x18] sm:$0xf] %vm1529_vm3, %v7201_v30  ;;  %v7065_v39 = vld [vmem:[%s7257_s25 + $0x168] sm:$0xff]   ;;  %v7650_v50 = vsel %vm1280_vm2, %v1450_v14, %v7642_v43  ;;  %v1172_v55 = vmax.f32 %v826_v38, 0.0 }
 0x16f   : > { %v1308_v41 = vrot.slane %v1195_v58, 4  ;;  %v922_v7 = vadd.f32 %v7463_v26, %v921_v63  ;;  %1537 = vst.msk [vmem:[#allocation2 + $0x1c] sm:$0xf] %vm1529_vm3, %v7201_v30  ;;  %1538 = vst.msk [vmem:[#allocation2 + $0x20] sm:$0xf] %vm1529_vm3, %v7201_v30  ;;  %v1173_v6 = vmax.f32 %v831_v3, 0.0 }
 0x170   : > { %v6309_v12 = vpop.f32.mrf.mxu0  ;;  %1539 = vst.msk [vmem:[#allocation2 + $0x24] sm:$0xf] %vm1529_vm3, %v7201_v30  ;;  %1540 = vst.msk [vmem:[#allocation2 + $0x28] sm:$0xf] %vm1529_vm3, %v7201_v30 }
 0x171   : > { %v1309_v19 = vsel %vm1280_vm2, %v1306_v45, %v1308_v41  ;;  %v1196_v20 = vmax.f32 %v922_v7, 0.0  ;;  %1541 = vst.msk [vmem:[#allocation2 + $0x2c] sm:$0xf] %vm1529_vm3, %v7201_v30  ;;  %1542 = vst.msk [vmem:[#allocation2 + $0x30] sm:$0xf] %vm1529_vm3, %v7201_v30 }
 0x172   : > { %v7595_v25 = vmax.f32 %v1170_v4, %v1309_v19  ;;  %v926_v27 = vpop.f32.mrf.mxu0  ;;  %6407 = vmatmul.mubr.msk.bf16.gmra.mxu0 %vm584_vm1, %v7064_v61  ;;  %1543 = vst.msk [vmem:[#allocation2 + $0x34] sm:$0xf] %vm1529_vm3, %v7201_v30  ;;  %1544 = vst.msk [vmem:[#allocation2 + $0x38] sm:$0xf] %vm1529_vm3, %v7201_v30  ;;  %v834_v4 = vadd.f32 %v7463_v26, %v7433_v8  ;;  %v7066_v19 = vld [vmem:[%s7257_s25 + $0x170] sm:$0xff]   ;;  %v839_v8 = vadd.f32 %v7463_v26, %v7436_v11 }
 0x173   : > { %1545 = vst.msk [vmem:[#allocation2 + $0x3c] sm:$0xf] %vm1529_vm3, %v7201_v30  ;;  %1546 = vst.msk [vmem:[#allocation2 + $0x40] sm:$0xf] %vm1529_vm3, %v7201_v30  ;;  %v1310_v33 = vrot.slane %v1196_v20, 4  ;;  %v927_v56 = vadd.f32 %v7463_v26, %v926_v27  ;;  %6410 = vmatprep.mubr.msk.bf16.mxu0 %vm7200_vm0, %v9875_v1 }
 0x174   : > { %1547 = vst.msk [vmem:[#allocation2 + $0x44] sm:$0xf] %vm1529_vm3, %v7201_v30  ;;  %1548 = vst.msk [vmem:[#allocation2 + $0x48] sm:$0xf] %vm1529_vm3, %v7201_v30  ;;  %v6312_v36 = vpop.f32.mrf.mxu0  ;;  %v1174_v20 = vmax.f32 %v834_v4, 0.0 }
 0x175   : > { %1549 = vst.msk [vmem:[#allocation2 + $0x4c] sm:$0xf] %vm1529_vm3, %v7201_v30  ;;  %1550 = vst.msk [vmem:[#allocation2 + $0x50] sm:$0xf] %vm1529_vm3, %v7201_v30  ;;  %v1311_v49 = vsel %vm1280_vm2, %v1308_v41, %v1310_v33  ;;  %v1197_v45 = vmax.f32 %v927_v56, 0.0 }
 0x176   : > { %1551 = vst.msk [vmem:[#allocation2 + $0x54] sm:$0xf] %vm1529_vm3, %v7201_v30  ;;  %1552 = vst.msk [vmem:[#allocation2 + $0x58] sm:$0xf] %vm1529_vm3, %v7201_v30  ;;  %v7645_v47 = vmax.f32 %v1171_v46, %v1311_v49  ;;  %v929_v59 = vpop.f32.mrf.mxu0  ;;  %v1175_v49 = vmax.f32 %v839_v8, 0.0 }
 0x177   : > { %1553 = vst.msk [vmem:[#allocation2 + $0x5c] sm:$0xf] %vm1529_vm3, %v7201_v30  ;;  %1554 = vst.msk [vmem:[#allocation2 + $0x60] sm:$0xf] %vm1529_vm3, %v7201_v30  ;;  %v1312_v29 = vrot.slane %v1197_v45, 4  ;;  %v930_v53 = vadd.f32 %v7463_v26, %v929_v59  ;;  %v842_v45 = vadd.f32 %v7463_v26, %v7441_v13 }
 0x178   : > { %1555 = vst.msk [vmem:[#allocation2 + $0x64] sm:$0xf] %vm1529_vm3, %v7201_v30  ;;  %1557 = vst.msk [vmem:[#allocation2 + $0x6c] sm:$0xf] %vm1529_vm3, %v7201_v30  ;;  %v6313_v58 = vpop.f32.mrf.mxu0 }
 0x179   : > { %1558 = vst.msk [vmem:[#allocation2 + $0x70] sm:$0xf] %vm1529_vm3, %v7201_v30  ;;  %1559 = vst.msk [vmem:[#allocation2 + $0x74] sm:$0xf] %vm1529_vm3, %v7201_v30  ;;  %v1313_v60 = vsel %vm1280_vm2, %v1310_v33, %v1312_v29  ;;  %v1198_v63 = vmax.f32 %v930_v53, 0.0  ;;  %v1176_v58 = vmax.f32 %v842_v45, 0.0 }
 0x17a   : > { %1560 = vst.msk [vmem:[#allocation2 + $0x78] sm:$0xf] %vm1529_vm3, %v7201_v30  ;;  %1561 = vst.msk [vmem:[#allocation2 + $0x7c] sm:$0xf] %vm1529_vm3, %v7201_v30  ;;  %v7656_v61 = vmax.f32 %v1172_v55, %v1313_v60  ;;  %v934_v2 = vpop.f32.mrf.mxu0  ;;  %6411 = vmatmul.mubr.msk.bf16.gmra.mxu0 %vm584_vm1, %v7065_v39  ;;  %v847_v60 = vadd.f32 %v7463_v26, %v7444_v16 }
 0x17b   : > { %1562 = vst.msk [vmem:[#allocation2 + $0x80] sm:$0xf] %vm1529_vm3, %v7201_v30  ;;  %1563 = vst.msk [vmem:[#allocation2 + $0x84] sm:$0xf] %vm1529_vm3, %v7201_v30  ;;  %v1314_v41 = vrot.slane %v1198_v63, 4  ;;  %v935_v7 = vadd.f32 %v7463_v26, %v934_v2  ;;  %6414 = vmatprep.mubr.msk.bf16.mxu0 %vm7200_vm0, %v9875_v1 }
 0x17c   : > { %1564 = vst.msk [vmem:[#allocation2 + $0x88] sm:$0xf] %vm1529_vm3, %v7201_v30  ;;  %9885 = vst [vmem:[#allocation3_spill] sm:$0xff] %v7656_v61  ;;  %v6316_v10 = vpop.f32.mrf.mxu0  ;;  %v1613_v61 = vld [vmem:[#allocation2 + $0xc] sm:$0xf] }
 0x17d   : > { %v1315_v54 = vsel %vm1280_vm2, %v1312_v29, %v1314_v41  ;;  %v1199_v12 = vmax.f32 %v935_v7, 0.0  ;;  %v1177_v10 = vmax.f32 %v847_v60, 0.0  ;;  %vm7996_vm3 = vmor %vm1660_vm14, %vm1661_vm15 }
 0x17e   : > { %v7665_v14 = vmax.f32 %v1173_v6, %v1315_v54  ;;  %v937_v15 = vpop.f32.mrf.mxu0  ;;  %v850_v54 = vadd.f32 %v7463_v26, %v7449_v18 }
 0x17f   : > { %v1316_v24 = vrot.slane %v1199_v12, 4  ;;  %v938_v27 = vadd.f32 %v7463_v26, %v937_v15 }
 0x180   : > { %9886 = vst [vmem:[#allocation4_spill] sm:$0xff] %v7665_v14  ;;  %v6317_v30 = vpop.f32.mrf.mxu0  ;;  %v1178_v8 = vmax.f32 %v850_v54, 0.0 }
 0x181   : > { %v1317_v32 = vsel %vm1280_vm2, %v1314_v41, %v1316_v24  ;;  %v1200_v33 = vmax.f32 %v938_v27, 0.0  ;;  %v855_v30 = vadd.f32 %v7463_v26, %v7452_v21 }
 0x182   : > { %v7672_v56 = vmax.f32 %v1174_v20, %v1317_v32  ;;  %v942_v46 = vpop.f32.mrf.mxu0  ;;  %6415 = vmatmul.mubr.msk.bf16.gmra.mxu0 %vm584_vm1, %v7066_v19  ;;  %vm1697_vm1 = vsmask.f32 7440 }
 0x183   : > { %v1318_v38 = vrot.slane %v1200_v33, 4  ;;  %v943_v36 = vadd.f32 %v7463_v26, %v942_v46  ;;  %6686 = vmatprep.mubr.msk.bf16.mxu0 %vm7200_vm0, %v9875_v1  ;;  %v1179_v45 = vmax.f32 %v855_v30, 0.0  ;;  %vm8018_vm6 = vmor %vm1611_vm7, %vm1697_vm1 }
 0x184   : > { %9887 = vst [vmem:[#allocation5_spill] sm:$0xff] %v7672_v56  ;;  %v6320_v11 = vpop.f32.mrf.mxu0 }
 0x185   : > { %v1319_v59 = vsel %vm1280_vm2, %v1316_v24, %v1318_v38  ;;  %v1201_v39 = vmax.f32 %v943_v36, 0.0  ;;  %v858_v11 = vadd.f32 %v7463_v26, %v7457_v23 }
 0x186   : > { %v7681_v29 = vmax.f32 %v1175_v49, %v1319_v59  ;;  %v945_v53 = vpop.f32.mrf.mxu0 }
 0x187   : > { %v1320_v55 = vrot.slane %v1201_v39, 4  ;;  %v946_v3 = vadd.f32 %v7463_v26, %v945_v53 }
 0x188   : > { %9888 = vst [vmem:[#allocation6_spill] sm:$0xff] %v7681_v29  ;;  %v6321_v63 = vpop.f32.mrf.mxu0 }
 0x189   : > { %v1321_v2 = vsel %vm1280_vm2, %v1318_v38, %v1320_v55  ;;  %v1202_v4 = vmax.f32 %v946_v3, 0.0 }
 0x18a   : > { %v7687_v41 = vmax.f32 %v1176_v58, %v1321_v2  ;;  %v950_v13 = vpop.f32.mrf.mxu0  ;;  %v1180_v58 = vmax.f32 %v858_v11, 0.0 }
 0x18b   : > { %v1322_v7 = vrot.slane %v1202_v4, 4  ;;  %v951_v6 = vadd.f32 %v7463_v26, %v950_v13 }
 0x18c   : > { %9889 = vst [vmem:[#allocation7_spill] sm:$0xff] %v7687_v41  ;;  %v6324_v12 = vpop.f32.mrf.mxu0 }
 0x18d   : > { %v1323_v15 = vsel %vm1280_vm2, %v1320_v55, %v1322_v7  ;;  %v1203_v19 = vmax.f32 %v951_v6, 0.0  ;;  %v7068_v12 = vld [vmem:[%s9872_s3 + $0x48] sm:$0xff]  }
 0x18e   : > { %v7693_v20 = vmax.f32 %v1177_v10, %v1323_v15  ;;  %v953_v16 = vpop.f32.mrf.mxu0  ;;  %6683 = vmatpush3.bf16.msra.mxu0 %v7068_v12 }
 0x18f   : > { %v1324_v24 = vrot.slane %v1203_v19, 4  ;;  %v954_v27 = vadd.f32 %v7463_v26, %v953_v16  ;;  %6684 = vmatprep.subr.bf16.mxu0 %v9875_v1 }
 0x190   : > { %9890 = vst [vmem:[#allocation8_spill] sm:$0xff] %v7693_v20  ;;  %v6325_v32 = vpop.f32.mrf.mxu0 }
 0x191   : > { %v1325_v33 = vsel %vm1280_vm2, %v1322_v7, %v1324_v24  ;;  %v1204_v46 = vmax.f32 %v954_v27, 0.0  ;;  %v7067_v7 = vld [vmem:[%s9872_s3 + $0x18] sm:$0xff]  }
 0x192   : > { %v958_v38 = vpop.f32.mrf.mxu0  ;;  %v7699_v18 = vmax.f32 %v1178_v8, %v1325_v33  ;;  %6427 = vmatpush3.bf16.msra.mxu1 %v7067_v7  ;;  %v7073_v8 = vld [vmem:[%s9872_s3 + $0x40] sm:$0xff]  }
 0x193   : > { %v1326_v36 = vrot.slane %v1204_v46, 4  ;;  %v959_v49 = vadd.f32 %v7463_v26, %v958_v38  ;;  %6428 = vmatprep.subr.bf16.mxu1 %v9875_v1  ;;  %6685 = vmatpush3.bf16.msra.mxu0 %v7073_v8 }
 0x194   : > { %v6328_v59 = vpop.f32.mrf.mxu0  ;;  %6810 = vmatprep.subr.bf16.mxu0 %v9875_v1 }
 0x195   : > { %v1327_v39 = vsel %vm1280_vm2, %v1324_v24, %v1326_v36  ;;  %v1205_v53 = vmax.f32 %v959_v49, 0.0 }
 0x196   : > { %v7705_v55 = vpop.f32.mrf.mxu0  ;;  %v7707_v21 = vmax.f32 %v1179_v45, %v1327_v39  ;;  %6429 = vmatpush3.bf16.msra.mxu1 %v7069_v28 }
 0x197   : > { %v1328_v3 = vrot.slane %v1205_v53, 4  ;;  %6490 = vmatprep.subr.bf16.mxu1 %v9875_v1 }
 0x198   : > { %v6329_v60 = vpop.f32.mrf.mxu0 }
 0x199   : > { %v1329_v63 = vsel %vm1280_vm2, %v1326_v36, %v1328_v3  ;;  %v7712_v2 = vmax.f32 %v1181_v35, %v1328_v3 }
 0x19a   : > { %v7714_v4 = vpop.f32.mrf.mxu0  ;;  %v7716_v23 = vmax.f32 %v1180_v58, %v1329_v63 }
 0x19c   : > { %v6332_v13 = vpop.f32.mrf.mxu0 }
 0x19e   : > { %v7721_v6 = vpop.f32.mrf.mxu0 }
 0x1a0   : > { %v6333_v10 = vpop.f32.mrf.mxu0 }
 0x1a2   : > { %v7724_v54 = vpop.f32.mrf.mxu0 }
 0x1a4   : > { %v6336_v35 = vpop.f32.mrf.mxu0 }
 0x1a6   : > { %v7733_v15 = vpop.f32.mrf.mxu0 }
 0x1a8   : > { %v6337_v19 = vpop.f32.mrf.mxu0 }
 0x1aa   : > { %v7736_v16 = vpop.f32.mrf.mxu0 }
 0x1ac   : > { %v6340_v24 = vpop.f32.mrf.mxu0 }
 0x1ae   : > { %v7738_v27 = vpop.f32.mrf.mxu0 }
 0x1b0   : > { %v6341_v30 = vpop.f32.mrf.mxu0 }
 0x1b1   : > { %v1143_v30 = vadd.f32 %v7463_v26, %v7562_v31 }
 0x1b2   : > { %v7743_v32 = vpop.f32.mrf.mxu0 }
 0x1b4   : > { %v6344_v33 = vpop.f32.mrf.mxu0 }
 0x1b6   : > { %v7746_v46 = vpop.f32.mrf.mxu0 }
 0x1b8   : > { %v6345_v38 = vpop.f32.mrf.mxu0 }
 0x1b9   : > { %v1251_v38 = vmax.f32 %v1143_v30, 0.0  ;;  %v7784_v30 = vadd.f32 %v7463_v26, %v7705_v55  ;;  %v7798_v55 = vadd.f32 %v7463_v26, %v7724_v54 }
 0x1ba   : > { %v7748_v36 = vpop.f32.mrf.mxu0 }
 0x1bc   : > { %v6348_v49 = vpop.f32.mrf.mxu0 }
 0x1be   : > { %v7750_v45 = vpop.f32.mrf.mxu0 }
 0x1c0   : > { %v6349_v11 = vpop.f32.mrf.mxu0 }
 0x1c2   : > { %v7752_v59 = vpop.f32.mrf.mxu0 }
 0x1c4   : > { %v6352_v39 = vpop.f32.mrf.mxu0 }
 0x1c5   : > { %v2037_v39 = vld [vmem:[#allocation2] sm:$0xf] }
 0x1c6   : > { %v7754_v53 = vpop.f32.mrf.mxu0 }
 0x1c8   : > { %v6353_v3 = vpop.f32.mrf.mxu0 }
 0x1c9   : > { %v2038_v3 = vld [vmem:[#allocation2 + $0x4] sm:$0xf] }
 0x1ca   : > { %v7756_v58 = vpop.f32.mrf.mxu0 }
 0x1cc   : > { %v6356_v60 = vpop.f32.mrf.mxu0 }
 0x1cd   : > { %v7774_v60 = vrot.slane %v1251_v38, 4 }
 0x1ce   : > { %v7758_v63 = vpop.f32.mrf.mxu0 }
 0x1cf   : > { %9891 = vst [vmem:[#allocation9_spill] sm:$0xff] %v7774_v60  ;;  %v1449_v31 = vsel %vm1280_vm2, %v7774_v60, %v7591_v44 }
 0x1d0   : > { %v6357_v13 = vpop.f32.mrf.mxu0 }
 0x1d2   : > { %v7760_v7 = vpop.f32.mrf.mxu0 }
 0x1d4   : > { %v6360_v10 = vpop.f32.mrf.mxu0 }
 0x1d6   : > { %v7762_v28 = vpop.f32.mrf.mxu0 }
 0x1d8   : > { %v6361_v35 = vpop.f32.mrf.mxu0 }
 0x1d9   : > { %v7776_v35 = vcombine.low %v2037_v39, %v2038_v3 }
 0x1da   : > { %v7764_v12 = vpop.f32.mrf.mxu0 }
 0x1db   : > { %9892 = vst [vmem:[#allocation10_spill] sm:$0xff] %v7776_v35  ;;  %v2158_v38 = vshll.u32 %v7776_v35, 16 }
 0x1dc   : > { %v6364_v19 = vpop.f32.mrf.mxu0 }
 0x1de   : > { %v7766_v24 = vpop.f32.mrf.mxu0 }
 0x1e0   : > { %v6365_v8 = vpop.f32.mrf.mxu0 }
 0x1e2   : > { %v7770_v33 = vpop.f32.mrf.mxu0 }
 0x1e4   : > { %v6368_v49 = vpop.f32.mrf.mxu0 }
 0x1e6   : > { %v7772_v11 = vpop.f32.mrf.mxu0 }
 0x1e8   : > { %v6369_v13 = vpop.f32.mrf.mxu0 }
 0x1e9   : > { %v7789_v13 = vadd.f32 %v7463_v26, %v7714_v4 }
 0x1ea   : > { %v1046_v10 = vpop.f32.mrf.mxu0 }
 0x1eb   : > { %v1047_v19 = vadd.f32 %v7463_v26, %v1046_v10  ;;  %v7794_v10 = vadd.f32 %v7463_v26, %v7721_v6 }
 0x1ec   : > { %v6372_v8 = vpop.f32.mrf.mxu0 }
 0x1ed   : > { %v1227_v1 = vmax.f32 %v1047_v19, 0.0 }
 0x1ee   : > { %v1049_v49 = vpop.f32.mrf.mxu0 }
 0x1ef   : > { %v1500_v39 = vmax.f32 %v1227_v1, %v1449_v31  ;;  %v1050_v3 = vadd.f32 %v7463_v26, %v1049_v49  ;;  %v7804_v1 = vadd.f32 %v7463_v26, %v7733_v15  ;;  %v2156_v31 = vshrl.u32 %v7776_v35, 16 }
 0x1f0   : > { %v6373_v44 = vpop.f32.mrf.mxu0  ;;  %v2160_v49 = vrot.slane %v2158_v38, 1  ;;  %v7817_v15 = vadd.f32 %v7463_v26, %v7738_v27  ;;  %v7821_v38 = vadd.f32 %v7463_v26, %v7743_v32 }
 0x1f1   : > { %v1525_v19 = vmax.f32 %v7699_v18, %v1500_v39  ;;  %v1228_v8 = vmax.f32 %v1050_v3, 0.0  ;;  %v7813_v3 = vadd.f32 %v7463_v26, %v7736_v16  ;;  %v7828_v16 = vadd.f32 %v7463_v26, %v7746_v46 }
 0x1f2   : > { %v1054_v6 = vpop.f32.mrf.mxu0  ;;  %v7830_v35 = vor.u32 %v2160_v49, %v2156_v31  ;;  %v7839_v46 = vadd.f32 %v7463_v26, %v7748_v36  ;;  %v1995_v49 = vld [vmem:[#allocation2 + $0x68] sm:$0xf]  ;;  %v7854_v36 = vadd.f32 %v7463_v26, %v7752_v59 }
 0x1f3   : > { %v5995_v54 = vpack.c.bf16 %v1525_v19, %v1525_v19  ;;  %v1501_v20 = vmax.f32 %v1228_v8, %v7635_v0  ;;  %v1055_v18 = vadd.f32 %v7463_v26, %v1054_v6 }
 0x1f4   : > { %v6376_v44 = vpop.f32.mrf.mxu0 }
 0x1f5   : > { %v1978_v0 = vshrl.u32 %v5995_v54, 16  ;;  %v1526_v8 = vmax.f32 %v7707_v21, %v1501_v20  ;;  %v1229_v6 = vmax.f32 %v1055_v18, 0.0  ;;  %v1981_v4 = vshll.u32 %v5995_v54, 16 }
 0x1f6   : > { %v1057_v27 = vpop.f32.mrf.mxu0  ;;  %v7849_v54 = vadd.f32 %v7463_v26, %v7750_v45 }
 0x1f7   : > { %v1980_v32 = vrot.slane %v1978_v0, 7  ;;  %v5996_v44 = vpack.c.bf16 %v1526_v8, %v1526_v8  ;;  %v1502_v19 = vmax.f32 %v1229_v6, %v7650_v50  ;;  %v1058_v41 = vadd.f32 %v7463_v26, %v1057_v27 }
 0x1f8   : > { %v6377_v50 = vpop.f32.mrf.mxu0 }
 0x1f9   : > { %v1983_v0 = vor.u32 %v1981_v4, %v1980_v32  ;;  %v1986_v8 = vshrl.u32 %v5996_v44, 16  ;;  %v1989_v6 = vshll.u32 %v5996_v44, 16  ;;  %v1527_v18 = vmax.f32 %v7716_v23, %v1502_v19  ;;  %v1998_v4 = vld [vmem:[#allocation2 + $0x6c] sm:$0xf] }
 0x1fa   : > { %v1230_v21 = vmax.f32 %v1058_v41, 0.0  ;;  %v1062_v20 = vpop.f32.mrf.mxu0 }
 0x1fb   : > { %v1996_v50 = vsel %vm7843_vm10, %v1983_v0, %v1995_v49  ;;  %v1988_v39 = vrot.slane %v1986_v8, 7  ;;  %v2006_v60 = vrot.slane %v1986_v8, 6  ;;  %v2007_v45 = vrot.slane %v1989_v6, 7 }
 0x1fc   : > { %1997 = vst [vmem:[#allocation2 + $0x68] sm:$0xf] %v1996_v50  ;;  %v5997_v59 = vpack.c.bf16 %v1527_v18, %v1527_v18  ;;  %v1503_v23 = vmax.f32 %v1230_v21, %v7642_v43  ;;  %v1063_v41 = vadd.f32 %v7463_v26, %v1062_v20  ;;  %v6380_v19 = vpop.f32.mrf.mxu0  ;;  %v1984_v0 = vrot.slane %v1980_v32, 4 }
 0x1fd   : > { %v1991_v50 = vor.u32 %v1989_v6, %v1988_v39  ;;  %v2008_v27 = vor.u32 %v2007_v45, %v2006_v60  ;;  %v7879_v32 = vadd.f32 %v7463_v26, %v7754_v53 }
 0x1fe   : > { %v2011_v29 = vshrl.u32 %v5997_v59, 16  ;;  %v2014_v56 = vshll.u32 %v5997_v59, 16  ;;  %v1528_v18 = vmax.f32 %v7712_v2, %v1503_v23  ;;  %v1231_v43 = vmax.f32 %v1063_v41, 0.0  ;;  %v1065_v14 = vpop.f32.mrf.mxu0 }
 0x1ff   : > { %v1992_v19 = vsel %vm7862_vm11, %v1984_v0, %v1991_v50  ;;  %v1066_v49 = vadd.f32 %v7463_v26, %v1065_v14  ;;  %v7888_v59 = vadd.f32 %v7463_v26, %v7756_v58  ;;  %v1405_v23 = vrot.slane %v1230_v21, 4 }
 0x200   : > { %v1999_v60 = vsel %vm7871_vm12, %v1992_v19, %v1998_v4  ;;  %v2013_v39 = vrot.slane %v2011_v29, 6  ;;  %v2016_v6 = vrot.slane %v2014_v56, 7  ;;  %v5998_v45 = vpack.c.bf16 %v1528_v18, %v1528_v18  ;;  %v6381_v2 = vpop.f32.mrf.mxu0  ;;  %v2031_v29 = vld [vmem:[#allocation2 + $0x70] sm:$0xf] }
 0x201   : > { %2000 = vst [vmem:[#allocation2 + $0x6c] sm:$0xf] %v1999_v60  ;;  %v1406_v14 = vrot.slane %v1231_v43, 4  ;;  %v1232_v41 = vmax.f32 %v1066_v49, 0.0  ;;  %v2009_v0 = vrot.slane %v2008_v27, 4  ;;  %v7898_v58 = vadd.f32 %v7463_v26, %v7758_v63 }
 0x202   : > { %v2017_v4 = vor.u32 %v2016_v6, %v2013_v39  ;;  %v2021_v56 = vshrl.u32 %v5998_v45, 16  ;;  %v2024_v50 = vshll.u32 %v5998_v45, 16  ;;  %v1070_v18 = vpop.f32.mrf.mxu0  ;;  %v7904_v21 = vadd.f32 %v7463_v26, %v7760_v7 }
 0x203   : > { %v1407_v19 = vsel %vm1280_vm2, %v1405_v23, %v1406_v14  ;;  %v1408_v60 = vrot.slane %v1232_v41, 4  ;;  %v1071_v2 = vadd.f32 %v7463_v26, %v1070_v18  ;;  %v9901_v63 = vmax.f32 %v7784_v30, 0.0  ;;  %v7916_v26 = vld [vmem:[%s9871_s2] ss:$0 sm:$0xff] }
 0x204   : > { %v2018_v27 = vsel %vm7892_vm13, %v2009_v0, %v2017_v4  ;;  %v2023_v49 = vrot.slane %v2021_v56, 6  ;;  %v2026_v43 = vrot.slane %v2024_v50, 7  ;;  %v6384_v39 = vpop.f32.mrf.mxu0  ;;  %v7920_v7 = vadd.f32 %v7916_v26, %v7762_v28  ;;  %v2034_v50 = vld [vmem:[#allocation2 + $0x74] sm:$0xf] }
 0x205   : > { %v2032_v6 = vsel %vm7843_vm10, %v2018_v27, %v2031_v29  ;;  %v1479_v45 = vmax.f32 %v9901_v63, %v1407_v19  ;;  %v1409_v23 = vsel %vm1280_vm2, %v1406_v14, %v1408_v60  ;;  %v1233_v41 = vmax.f32 %v1071_v2, 0.0 }
 0x206   : > { %v2019_v0 = vrot.slane %v2017_v4, 4  ;;  %2033 = vst [vmem:[#allocation2 + $0x70] sm:$0xf] %v2032_v6  ;;  %v2027_v56 = vor.u32 %v2026_v43, %v2023_v49  ;;  %v9902_v29 = vmax.f32 %v7789_v13, 0.0  ;;  %v1073_v18 = vpop.f32.mrf.mxu0 }
 0x207   : > { %v1504_v19 = vmax.f32 %v7485_v57, %v1479_v45  ;;  %v1410_v2 = vrot.slane %v1233_v41, 4  ;;  %v1074_v27 = vadd.f32 %v7916_v26, %v1073_v18 }
 0x208   : > { %v1480_v30 = vmax.f32 %v9902_v29, %v1409_v23  ;;  %v2028_v4 = vsel %vm7892_vm13, %v2019_v0, %v2027_v56  ;;  %v6385_v43 = vpop.f32.mrf.mxu0  ;;  %v9903_v29 = vmax.f32 %v7794_v10, 0.0 }
 0x209   : > { %v2035_v13 = vsel %vm7871_vm12, %v2028_v4, %v2034_v50  ;;  %v5974_v6 = vpack.c.bf16 %v1504_v19, %v1504_v19  ;;  %v1411_v63 = vsel %vm1280_vm2, %v1408_v60, %v1410_v2  ;;  %v1234_v57 = vmax.f32 %v1074_v27, 0.0  ;;  %v1608_v19 = vld [vmem:[#allocation2 + $0x8] sm:$0xf] }
 0x20a   : > { %v1505_v49 = vmax.f32 %v7492_v9, %v1480_v30  ;;  %2036 = vst [vmem:[#allocation2 + $0x74] sm:$0xf] %v2035_v13  ;;  %v1481_v18 = vmax.f32 %v9903_v29, %v1411_v63  ;;  %v1078_v0 = vpop.f32.mrf.mxu0  ;;  %v7941_v9 = vadd.f32 %v7916_v26, %v7764_v12  ;;  %v7946_v60 = vadd.f32 %v7916_v26, %v7766_v24 }
 0x20b   : > { %v1588_v56 = vshrl.u32 %v5974_v6, 16  ;;  %v1412_v50 = vrot.slane %v1234_v57, 4  ;;  %v1079_v30 = vadd.f32 %v7916_v26, %v1078_v0  ;;  %v1591_v13 = vshll.u32 %v5974_v6, 16 }
 0x20c   : > { %v5975_v41 = vpack.c.bf16 %v1505_v49, %v1505_v49  ;;  %v1506_v49 = vmax.f32 %v7501_v22, %v1481_v18  ;;  %v6388_v10 = vpop.f32.mrf.mxu0  ;;  %v9904_v24 = vmax.f32 %v7798_v55, 0.0  ;;  %v7959_v55 = vadd.f32 %v7916_v26, %v7770_v33 }
 0x20d   : > { %v1590_v43 = vrot.slane %v1588_v56, 7  ;;  %v1413_v63 = vsel %vm1280_vm2, %v1410_v2, %v1412_v50  ;;  %v1235_v12 = vmax.f32 %v1079_v30, 0.0  ;;  %v1223_v33 = vmax.f32 %v7941_v9, 0.0 }
 0x20e   : > { %v1596_v27 = vshrl.u32 %v5975_v41, 16  ;;  %v1599_v4 = vshll.u32 %v5975_v41, 16  ;;  %v5976_v45 = vpack.c.bf16 %v1506_v49, %v1506_v49  ;;  %v1081_v0 = vpop.f32.mrf.mxu0  ;;  %v1482_v14 = vmax.f32 %v9904_v24, %v1413_v63  ;;  %v1649_v63 = vld [vmem:[#allocation2 + $0x10] sm:$0xf] }
 0x20f   : > { %v1593_v28 = vor.u32 %v1591_v13, %v1590_v43  ;;  %v1594_v39 = vrot.slane %v1590_v43, 4  ;;  %v1414_v20 = vrot.slane %v1235_v12, 4  ;;  %v1082_v49 = vadd.f32 %v7916_v26, %v1081_v0 }
 0x210   : > { %v1598_v29 = vrot.slane %v1596_v27, 7  ;;  %v1624_v23 = vrot.slane %v1596_v27, 6  ;;  %v1625_v57 = vrot.slane %v1599_v4, 7  ;;  %v1629_v18 = vshrl.u32 %v5976_v45, 16  ;;  %v6389_v6 = vpop.f32.mrf.mxu0 }
 0x211   : > { %v1632_v56 = vshll.u32 %v5976_v45, 16  ;;  %v1609_v2 = vsel %vm7843_vm10, %v1593_v28, %v1608_v19  ;;  %v1507_v30 = vmax.f32 %v7508_v40, %v1482_v14  ;;  %v1415_v27 = vsel %vm1280_vm2, %v1412_v50, %v1414_v20 }
 0x212   : > { %v1601_v41 = vor.u32 %v1599_v4, %v1598_v29  ;;  %v1626_v22 = vor.u32 %v1625_v57, %v1624_v23  ;;  %1610 = vst [vmem:[#allocation2 + $0x8] sm:$0xf] %v1609_v2  ;;  %v1631_v4 = vrot.slane %v1629_v18, 6  ;;  %v1086_v10 = vpop.f32.mrf.mxu0  ;;  %v9905_v28 = vmax.f32 %v7804_v1, 0.0 }
 0x213   : > { %v1634_v45 = vrot.slane %v1632_v56, 7  ;;  %v5977_v14 = vpack.c.bf16 %v1507_v30, %v1507_v30  ;;  %v1236_v19 = vmax.f32 %v1082_v49, 0.0  ;;  %v1225_v1 = vmax.f32 %v7959_v55, 0.0 }
 0x214   : > { %v1602_v23 = vsel %vm7862_vm11, %v1594_v39, %v1601_v41  ;;  %v1483_v50 = vmax.f32 %v9905_v28, %v1415_v27  ;;  %v1627_v43 = vrot.slane %v1626_v22, 4  ;;  %v1087_v39 = vadd.f32 %v7916_v26, %v1086_v10  ;;  %v6392_v12 = vpop.f32.mrf.mxu0 }
 0x215   : > { %v1614_v40 = vsel %vm7871_vm12, %v1602_v23, %v1613_v61  ;;  %v1635_v13 = vor.u32 %v1634_v45, %v1631_v4  ;;  %v1639_v29 = vshrl.u32 %v5977_v14, 16  ;;  %v1642_v57 = vshll.u32 %v5977_v14, 16 }
 0x216   : > { %1615 = vst [vmem:[#allocation2 + $0xc] sm:$0xf] %v1614_v40  ;;  %v1508_v0 = vmax.f32 %v7517_v52, %v1483_v50  ;;  %v1416_v24 = vrot.slane %v1236_v19, 4  ;;  %v1224_v61 = vmax.f32 %v7946_v60, 0.0  ;;  %v1237_v18 = vmax.f32 %v1087_v39, 0.0  ;;  %v1089_v56 = vpop.f32.mrf.mxu0 }
 0x217   : > { %v1636_v41 = vsel %vm7892_vm13, %v1627_v43, %v1635_v13  ;;  %v1641_v6 = vrot.slane %v1639_v29, 6  ;;  %v1644_v2 = vrot.slane %v1642_v57, 7  ;;  %v1663_v30 = vrot.slane %v1639_v29, 5  ;;  %v1652_v40 = vld [vmem:[#allocation2 + $0x14] sm:$0xf] }
 0x218   : > { %v1650_v22 = vsel %vm7843_vm10, %v1636_v41, %v1649_v63  ;;  %v1664_v27 = vrot.slane %v1642_v57, 6  ;;  %v5978_v49 = vpack.c.bf16 %v1508_v0, %v1508_v0  ;;  %v1417_v52 = vsel %vm1280_vm2, %v1414_v20, %v1416_v24  ;;  %v6393_v4 = vpop.f32.mrf.mxu0 }
 0x219   : > { %1651 = vst [vmem:[#allocation2 + $0x10] sm:$0xf] %v1650_v22  ;;  %v1418_v23 = vrot.slane %v1237_v18, 4  ;;  %v1637_v45 = vrot.slane %v1635_v13, 4  ;;  %v1645_v10 = vor.u32 %v1644_v2, %v1641_v6  ;;  %v9906_v14 = vmax.f32 %v7813_v3, 0.0 }
 0x21a   : > { %v1090_v50 = vadd.f32 %v7916_v26, %v1089_v56  ;;  %v1665_v19 = vor.u32 %v1664_v27, %v1663_v30  ;;  %v1668_v43 = vshrl.u32 %v5978_v49, 16  ;;  %v1671_v63 = vshll.u32 %v5978_v49, 16  ;;  %v1094_v12 = vpop.f32.mrf.mxu0  ;;  %v1688_v49 = vld [vmem:[#allocation2 + $0x18] sm:$0xf] }
 0x21b   : > { %v1484_v28 = vmax.f32 %v9906_v14, %v1417_v52  ;;  %v1419_v39 = vsel %vm1280_vm2, %v1416_v24, %v1418_v23  ;;  %v1646_v20 = vsel %vm7892_vm13, %v1637_v45, %v1645_v10  ;;  %v9907_v13 = vmax.f32 %v7817_v15, 0.0 }
 0x21c   : > { %v1238_v0 = vmax.f32 %v1090_v50, 0.0  ;;  %v7990_v41 = vadd.f32 %v7916_v26, %v7772_v11  ;;  %v1653_v24 = vsel %vm7871_vm12, %v1646_v20, %v1652_v40  ;;  %v1670_v18 = vrot.slane %v1668_v43, 5  ;;  %v6396_v22 = vpop.f32.mrf.mxu0 }
 0x21d   : > { %v1509_v29 = vmax.f32 %v7524_v5, %v1484_v28  ;;  %v1485_v57 = vmax.f32 %v9907_v13, %v1419_v39  ;;  %v7986_v3 = vld [vmem:[#allocation2 + $0x8] sm:$0xff]   ;;  %v1673_v56 = vrot.slane %v1671_v63, 6  ;;  %1654 = vst [vmem:[#allocation2 + $0x14] sm:$0xf] %v1653_v24  ;;  %v1095_v11 = vadd.f32 %v7916_v26, %v1094_v12 }
 0x21e   : > { %v1420_v2 = vrot.slane %v1238_v0, 4  ;;  %v1666_v30 = vrot.slane %v1665_v19, 4  ;;  %v1097_v52 = vpop.f32.mrf.mxu0  ;;  %v2163_v4 = vshll.u32 %v7986_v3, 16  ;;  %v2167_v45 = vshrl.u32 %v7986_v3, 16 }
 0x21f   : > { %v5979_v15 = vpack.c.bf16 %v1509_v29, %v1509_v29  ;;  %v1510_v6 = vmax.f32 %v7533_v17, %v1485_v57  ;;  %v1674_v27 = vor.u32 %v1673_v56, %v1670_v18  ;;  %v9910_v43 = vmax.f32 %v7821_v38, 0.0  ;;  %v1691_v38 = vld [vmem:[#allocation2 + $0x1c] sm:$0xf] }
 0x220   : > { %v1421_v28 = vsel %vm1280_vm2, %v1418_v23, %v1420_v2  ;;  %v1239_v19 = vmax.f32 %v1095_v11, 0.0  ;;  %v6397_v39 = vpop.f32.mrf.mxu0 }
 0x221   : > { %v1678_v10 = vshrl.u32 %v5979_v15, 16  ;;  %v1681_v40 = vshll.u32 %v5979_v15, 16  ;;  %v5980_v14 = vpack.c.bf16 %v1510_v6, %v1510_v6  ;;  %v1675_v50 = vsel %vm7996_vm3, %v1666_v30, %v1674_v27  ;;  %v1718_v39 = vld [vmem:[#allocation2 + $0x24] sm:$0xf] }
 0x222   : > { %v1676_v17 = vrot.slane %v1674_v27, 4  ;;  %v1486_v63 = vmax.f32 %v9910_v43, %v1421_v28  ;;  %v1689_v12 = vsel %vm7843_vm10, %v1675_v50, %v1688_v49  ;;  %v1102_v18 = vpop.f32.mrf.mxu0  ;;  %v1422_v22 = vrot.slane %v1239_v19, 4  ;;  %v1715_v49 = vld [vmem:[#allocation2 + $0x20] sm:$0xf] }
 0x223   : > { %v1680_v20 = vrot.slane %v1678_v10, 5  ;;  %v1683_v29 = vrot.slane %v1681_v40, 6  ;;  %v1699_v13 = vrot.slane %v1678_v10, 4  ;;  %1690 = vst [vmem:[#allocation2 + $0x18] sm:$0xf] %v1689_v12  ;;  %v1700_v57 = vrot.slane %v1681_v40, 5 }
 0x224   : > { %v1704_v0 = vshll.u32 %v5980_v14, 16  ;;  %v1708_v23 = vshrl.u32 %v5980_v14, 16  ;;  %v1511_v24 = vmax.f32 %v7540_v37, %v1486_v63  ;;  %v1098_v15 = vadd.f32 %v7916_v26, %v1097_v52  ;;  %v6400_v28 = vpop.f32.mrf.mxu0 }
 0x225   : > { %v1684_v56 = vor.u32 %v1683_v29, %v1680_v20  ;;  %v1103_v6 = vadd.f32 %v7916_v26, %v1102_v18  ;;  %v1701_v11 = vor.u32 %v1700_v57, %v1699_v13  ;;  %v1423_v14 = vsel %vm1280_vm2, %v1420_v2, %v1422_v22  ;;  %v3309_v29 = vld [vmem:[#allocation2 + $0xc] sm:$0xf]  ;;  %v1744_v13 = vld [vmem:[#allocation2 + $0x28] sm:$0xf] }
 0x226   : > { %v1706_v30 = vrot.slane %v1704_v0, 5  ;;  %v1710_v27 = vrot.slane %v1708_v23, 4  ;;  %v5981_v10 = vpack.c.bf16 %v1511_v24, %v1511_v24  ;;  %v1240_v52 = vmax.f32 %v1098_v15, 0.0  ;;  %v1105_v20 = vpop.f32.mrf.mxu0  ;;  %v7072_v15 = vld [vmem:[%s9872_s3 + $0x8] sm:$0xff]  }
 0x227   : > { %v1685_v40 = vsel %vm7996_vm3, %v1676_v17, %v1684_v56  ;;  %v1241_v50 = vmax.f32 %v1103_v6, 0.0  ;;  %v1702_v63 = vrot.slane %v1701_v11, 4  ;;  %v9913_v57 = vmax.f32 %v7828_v16, 0.0  ;;  %v3308_v11 = vld [vmem:[#allocation2 + $0x8] sm:$0xf] }
 0x228   : > { %v1692_v43 = vsel %vm7871_vm12, %v1685_v40, %v1691_v38  ;;  %v1711_v19 = vor.u32 %v1710_v27, %v1706_v30  ;;  %v1727_v12 = vshrl.u32 %v5981_v10, 16  ;;  %v1730_v17 = vshll.u32 %v5981_v10, 16  ;;  %v6401_v6 = vpop.f32.mrf.mxu0 }
 0x229   : > { %1693 = vst [vmem:[#allocation2 + $0x1c] sm:$0xf] %v1692_v43  ;;  %v1487_v0 = vmax.f32 %v9913_v57, %v1423_v14  ;;  %v1424_v23 = vrot.slane %v1240_v52, 4  ;;  %v8027_v24 = vrot.slane %v1241_v50, 4  ;;  %v1707_v2 = vsel %vm8018_vm6, %v1702_v63, %v1706_v30  ;;  %v8047_v50 = vld [vmem:[#allocation2 + $0x10] sm:$0xff]  }
 0x22a   : > { %v1712_v18 = vrot.slane %v1711_v19, 4  ;;  %v8031_v56 = vrot.slane %v1727_v12, 7  ;;  %v2165_v38 = vrot.slane %v2163_v4, 1  ;;  %v1716_v16 = vsel %vm7843_vm10, %v1707_v2, %v1715_v49  ;;  %v1110_v52 = vpop.f32.mrf.mxu0 }
 0x22b   : > { %v1512_v27 = vmax.f32 %v7549_v48, %v1487_v0  ;;  %v1425_v10 = vsel %vm1280_vm2, %v1422_v22, %v1424_v23  ;;  %v1427_v30 = vsel %vm1280_vm2, %v1424_v23, %v8027_v24  ;;  %1717 = vst [vmem:[#allocation2 + $0x20] sm:$0xf] %v1716_v16  ;;  %v9914_v40 = vmax.f32 %v7839_v46, 0.0  ;;  %v1747_v16 = vld [vmem:[#allocation2 + $0x2c] sm:$0xf] }
 0x22c   : > { %v1719_v4 = vsel %vm7871_vm12, %v1712_v18, %v1718_v39  ;;  %v1732_v28 = vor.u32 %v1730_v17, %v8031_v56  ;;  %v8049_v49 = vcombine.low %v3308_v11, %v3309_v29  ;;  %v9915_v22 = vmax.f32 %v7849_v54, 0.0  ;;  %v6404_v17 = vpop.f32.mrf.mxu0 }
 0x22d   : > { %v1488_v14 = vmax.f32 %v9914_v40, %v1425_v10  ;;  %1720 = vst [vmem:[#allocation2 + $0x24] sm:$0xf] %v1719_v4  ;;  %v5982_v48 = vpack.c.bf16 %v1512_v27, %v1512_v27  ;;  %v2166_v63 = vsel %vm2154_vm5, %v7830_v35, %v2165_v38  ;;  %v1106_v19 = vadd.f32 %v7916_v26, %v1105_v20  ;;  %v8081_v17 = vld [vmem:[#allocation2 + $0x10] sm:$0xff]  }
 0x22e   : > { %v1489_v43 = vmax.f32 %v9915_v22, %v1427_v30  ;;  %v1733_v39 = vrot.slane %v8031_v56, 4  ;;  %v1745_v46 = vsel %vm7843_vm10, %v1732_v28, %v1744_v13  ;;  %6431 = vmatmul.mubr.msk.bf16.vlgmr.msra.gmra.mxu1 %vm2291_vm4, %v2166_v63  ;;  %v1111_v29 = vadd.f32 %v7916_v26, %v1110_v52  ;;  %v7089_v13 = vld [vmem:[%s9872_s3] sm:$0xff]   ;;  %v1113_v56 = vpop.f32.mrf.mxu0 }
 0x22f   : > { %v1513_v12 = vmax.f32 %v7556_v51, %v1488_v14  ;;  %1746 = vst [vmem:[#allocation2 + $0x28] sm:$0xf] %v1745_v46  ;;  %v1735_v54 = vshrl.u32 %v5982_v48, 16  ;;  %v1738_v57 = vshll.u32 %v5982_v48, 16  ;;  %6491 = vmatpush3.bf16.msra.mxu1 %v7072_v15  ;;  %v1242_v35 = vmax.f32 %v1106_v19, 0.0 }
 0x230   : > { %v1514_v0 = vmax.f32 %v7567_v34, %v1489_v43  ;;  %v9916_v20 = vmov 0.0   ;;  %v1243_v23 = vmax.f32 %v1111_v29, 0.0  ;;  %v2169_v2 = vor.u32 %v2167_v45, %v2165_v38  ;;  %v6405_v28 = vpop.f32.mrf.mxu0  ;;  %v1780_v48 = vld [vmem:[#allocation2 + $0x30] sm:$0xf] }
 0x231   : > { %6434 = vmatprep.mubr.msk.bf16.mxu1 %vm7200_vm0, %v9916_v20  ;;  %v5983_v51 = vpack.c.bf16 %v1513_v12, %v1513_v12  ;;  %v2171_v18 = vshll.u32 %v8047_v50, 16  ;;  %6492 = vmatprep.subr.bf16.mxu1 %v9916_v20  ;;  %v1737_v34 = vrot.slane %v1735_v54, 7  ;;  %v1755_v15 = vrot.slane %v1735_v54, 6 }
 0x232   : > { %v1756_v6 = vrot.slane %v1738_v57, 7  ;;  %v5984_v11 = vpack.c.bf16 %v1514_v0, %v1514_v0  ;;  %v1428_v30 = vrot.slane %v1242_v35, 4  ;;  %v8072_v4 = vrot.slane %v1243_v23, 4  ;;  %v1118_v63 = vpop.f32.mrf.mxu0 }
 0x233   : > { %v1760_v27 = vshrl.u32 %v5983_v51, 16  ;;  %v1763_v10 = vshll.u32 %v5983_v51, 16  ;;  %v1740_v40 = vor.u32 %v1738_v57, %v1737_v34  ;;  %6493 = vmatpush3.bf16.msra.mxu1 %v7089_v13  ;;  %v9917_v51 = vmax.f32 %v7854_v36, 0.0 }
 0x234   : > { %v1757_v14 = vor.u32 %v1756_v6, %v1755_v15  ;;  %v1770_v3 = vshrl.u32 %v5984_v11, 16  ;;  %v1773_v45 = vshll.u32 %v5984_v11, 16  ;;  %v1429_v22 = vsel %vm1280_vm2, %v8027_v24, %v1428_v30  ;;  %6554 = vmatprep.subr.bf16.mxu1 %v9916_v20  ;;  %v6408_v35 = vpop.f32.mrf.mxu0 }
 0x235   : > { %v1762_v38 = vrot.slane %v1760_v27, 6  ;;  %v1765_v52 = vrot.slane %v1763_v10, 7  ;;  %v1431_v43 = vsel %vm1280_vm2, %v1428_v30, %v8072_v4  ;;  %v1741_v19 = vsel %vm7862_vm11, %v1733_v39, %v1740_v40  ;;  %v1783_v27 = vld [vmem:[#allocation2 + $0x34] sm:$0xf] }
 0x236   : > { %v1758_v46 = vrot.slane %v1757_v14, 4  ;;  %v1772_v12 = vrot.slane %v1770_v3, 6  ;;  %v1775_v29 = vrot.slane %v1773_v45, 7  ;;  %v1748_v54 = vsel %vm7871_vm12, %v1741_v19, %v1747_v16  ;;  %v8094_v30 = vpop.f32.mrf.mxu0 }
 0x237   : > { %v1766_v57 = vor.u32 %v1765_v52, %v1762_v38  ;;  %v1791_v0 = vrot.slane %v1770_v3, 5  ;;  %v1792_v24 = vrot.slane %v1773_v45, 6  ;;  %1749 = vst [vmem:[#allocation2 + $0x2c] sm:$0xf] %v1748_v54  ;;  %v1490_v23 = vmax.f32 %v9917_v51, %v1429_v22 }
 0x238   : > { %v1776_v13 = vor.u32 %v1775_v29, %v1772_v12  ;;  %v9918_v34 = vmax.f32 %v7879_v32, 0.0  ;;  %v8089_v15 = vrot.slane %v2171_v18, 1  ;;  %v3424_v10 = vshll.u32 %v8049_v49, 16  ;;  %v6409_v38 = vpop.f32.mrf.mxu0  ;;  %v7106_v29 = vld [vmem:[%s9872_s3 + $0x68] sm:$0xff]  }
 0x239   : > { %v1767_v6 = vsel %vm7892_vm13, %v1758_v46, %v1766_v57  ;;  %v1768_v11 = vrot.slane %v1766_v57, 4  ;;  %v1793_v16 = vor.u32 %v1792_v24, %v1791_v0  ;;  %v1515_v36 = vmax.f32 %v7575_v42, %v1490_v23  ;;  %v8115_v46 = vld [vmem:[#allocation2 + $0x18] sm:$0xff]  }
 0x23a   : > { %v1491_v39 = vmax.f32 %v9918_v34, %v1431_v43  ;;  %v1781_v28 = vsel %vm7843_vm10, %v1767_v6, %v1780_v48  ;;  %v2174_v18 = vsel %vm2154_vm5, %v2169_v2, %v8089_v15  ;;  %v3422_v14 = vshrl.u32 %v8049_v49, 16  ;;  %v8112_v2 = vld [vmem:[#allocation2 + $0x18] sm:$0xff]   ;;  %v1126_v12 = vpop.f32.mrf.mxu0 }
 0x23b   : > { %1782 = vst [vmem:[#allocation2 + $0x30] sm:$0xf] %v1781_v28  ;;  %v1777_v40 = vsel %vm7892_vm13, %v1768_v11, %v1776_v13  ;;  %6435 = vmatmul.mubr.msk.bf16.gmra.mxu1 %vm2291_vm4, %v2174_v18  ;;  %v3426_v3 = vrot.slane %v3424_v10, 1  ;;  %v3429_v45 = vshll.u32 %v8081_v17, 16  ;;  %v5985_v52 = vpack.c.bf16 %v1515_v36, %v1515_v36  ;;  %v1816_v6 = vld [vmem:[#allocation2 + $0x38] sm:$0xf] }
 0x23c   : > { %v1516_v32 = vmax.f32 %v7585_v62, %v1491_v39  ;;  %v1784_v42 = vsel %vm7871_vm12, %v1777_v40, %v1783_v27  ;;  %v1114_v48 = vadd.f32 %v7916_v26, %v1113_v56  ;;  %6438 = vmatprep.mubr.msk.bf16.mxu1 %vm7200_vm0, %v9916_v20  ;;  %v1794_v22 = vrot.slane %v1793_v16, 4  ;;  %v6412_v23 = vpop.f32.mrf.mxu0  ;;  %v1819_v40 = vld [vmem:[#allocation2 + $0x3c] sm:$0xf] }
 0x23d   : > { %1785 = vst [vmem:[#allocation2 + $0x34] sm:$0xf] %v1784_v42  ;;  %v3427_v43 = vor.u32 %v3426_v3, %v3422_v14  ;;  %v3431_v49 = vrot.slane %v3429_v45, 1  ;;  %v1119_v19 = vadd.f32 %v7916_v26, %v1118_v63  ;;  %v1796_v54 = vshrl.u32 %v5985_v52, 16  ;;  %v7107_v63 = vld [vmem:[%s9872_s3 + $0x60] sm:$0xff]  }
 0x23e   : > { %v5986_v62 = vpack.c.bf16 %v1516_v32, %v1516_v32  ;;  %v1799_v56 = vshll.u32 %v5985_v52, 16  ;;  %v1244_v35 = vmax.f32 %v1114_v48, 0.0  ;;  %v2175_v51 = vshrl.u32 %v8047_v50, 16  ;;  %v8130_v50 = vpop.f32.mrf.mxu0 }
 0x23f   : > { %v3432_v24 = vsel %vm2154_vm5, %v3427_v43, %v3431_v49  ;;  %v1245_v13 = vmax.f32 %v1119_v19, 0.0  ;;  %v1798_v34 = vrot.slane %v1796_v54, 5  ;;  %v2179_v14 = vshll.u32 %v8112_v2, 16 }
 0x240   : > { %v1806_v57 = vshrl.u32 %v5986_v62, 16  ;;  %v1809_v0 = vshll.u32 %v5986_v62, 16  ;;  %v1801_v39 = vrot.slane %v1799_v56, 6  ;;  %6687 = vmatmul.mubr.msk.bf16.vlgmr.msra.gmra.mxu0 %vm2291_vm4, %v3432_v24  ;;  %v1432_v28 = vrot.slane %v1244_v35, 4  ;;  %v6413_v62 = vpop.f32.mrf.mxu0  ;;  %v8149_v24 = vld [vmem:[#allocation2 + $0x20] sm:$0xff]  }
 0x241   : > { %v8126_v36 = vrot.slane %v1245_v13, 4  ;;  %6690 = vmatprep.mubr.msk.bf16.mxu0 %vm7200_vm0, %v9916_v20  ;;  %6811 = vmatpush3.bf16.msra.mxu0 %v7106_v29  ;;  %v3433_v3 = vshrl.u32 %v8081_v17, 16  ;;  %v3437_v52 = vshll.u32 %v8115_v46, 16  ;;  %v9919_v19 = vmax.f32 %v7888_v59, 0.0 }
 0x242   : > { %v1808_v11 = vrot.slane %v1806_v57, 5  ;;  %v1811_v27 = vrot.slane %v1809_v0, 6  ;;  %v1824_v16 = vrot.slane %v1806_v57, 4  ;;  %v1825_v10 = vrot.slane %v1809_v0, 5  ;;  %6812 = vmatprep.subr.bf16.mxu0 %v9916_v20  ;;  %v1134_v35 = vpop.f32.mrf.mxu0 }
 0x243   : > { %v1802_v32 = vor.u32 %v1801_v39, %v1798_v34  ;;  %v1433_v38 = vsel %vm1280_vm2, %v8072_v4, %v1432_v28  ;;  %v1435_v42 = vsel %vm1280_vm2, %v1432_v28, %v8126_v36  ;;  %v9920_v17 = vmax.f32 %v7898_v58, 0.0 }
 0x244   : > { %v1812_v18 = vor.u32 %v1811_v27, %v1808_v11  ;;  %v1826_v45 = vor.u32 %v1825_v10, %v1824_v16  ;;  %v1492_v29 = vmax.f32 %v9919_v19, %v1433_v38  ;;  %v2177_v4 = vor.u32 %v2175_v51, %v8089_v15  ;;  %v1843_v19 = vld [vmem:[#allocation2 + $0x44] sm:$0xf]  ;;  %v8233_v9 = vld [vmem:[#allocation2 + $0x30] sm:$0xff]  }
 0x245   : > { %v1803_v48 = vsel %vm7996_vm3, %v1794_v22, %v1802_v32  ;;  %v1804_v43 = vrot.slane %v1802_v32, 4  ;;  %v1493_v54 = vmax.f32 %v9920_v17, %v1435_v42  ;;  %v2181_v57 = vrot.slane %v2179_v14, 1  ;;  %6813 = vmatpush3.bf16.msra.mxu0 %v7107_v63  ;;  %v6416_v63 = vpop.f32.mrf.mxu0 }
 0x246   : > { %v1817_v56 = vsel %vm7843_vm10, %v1803_v48, %v1816_v6  ;;  %v3435_v0 = vor.u32 %v3433_v3, %v3431_v49  ;;  %v1517_v59 = vmax.f32 %v7595_v25, %v1492_v29  ;;  %v3439_v13 = vrot.slane %v3437_v52, 1  ;;  %6938 = vmatprep.subr.bf16.mxu0 %v9916_v20  ;;  %v8164_v6 = vld [vmem:[#allocation2 + $0x20] sm:$0xff]   ;;  %v1869_v48 = vld [vmem:[#allocation2 + $0x48] sm:$0xf] }
 0x247   : > { %1818 = vst [vmem:[#allocation2 + $0x38] sm:$0xf] %v1817_v56  ;;  %v1813_v22 = vsel %vm7996_vm3, %v1804_v43, %v1812_v18  ;;  %v1518_v58 = vmax.f32 %v7645_v47, %v1493_v54  ;;  %v2182_v49 = vsel %vm2154_vm5, %v2177_v4, %v2181_v57  ;;  %v1122_v51 = vadd.f32 %v7916_v26, %v8094_v30  ;;  %v8171_v16 = vpop.f32.mrf.mxu0 }
 0x248   : > { %v1820_v15 = vsel %vm7871_vm12, %v1813_v22, %v1819_v40  ;;  %v1127_v23 = vadd.f32 %v7916_v26, %v1126_v12  ;;  %v1827_v34 = vrot.slane %v1826_v45, 4  ;;  %v5987_v39 = vpack.c.bf16 %v1517_v59, %v1517_v59  ;;  %6439 = vmatmul.mubr.msk.bf16.gmra.mxu1 %vm2291_vm4, %v2182_v49  ;;  %v1840_v40 = vld [vmem:[#allocation2 + $0x40] sm:$0xf]  ;;  %v8186_v59 = vld [vmem:[#allocation2 + $0x28] sm:$0xff]  }
 0x249   : > { %1821 = vst [vmem:[#allocation2 + $0x3c] sm:$0xf] %v1820_v15  ;;  %v5988_v25 = vpack.c.bf16 %v1518_v58, %v1518_v58  ;;  %v3440_v47 = vsel %vm2154_vm5, %v3435_v0, %v3439_v13  ;;  %v1246_v11 = vmax.f32 %v1122_v51, 0.0  ;;  %6442 = vmatprep.mubr.msk.bf16.mxu1 %vm7200_vm0, %v9916_v20  ;;  %v2183_v30 = vshrl.u32 %v8112_v2, 16  ;;  %v6417_v42 = vpop.f32.mrf.mxu0 }
 0x24a   : > { %6691 = vmatmul.mubr.msk.bf16.gmra.mxu0 %vm2291_vm4, %v3440_v47  ;;  %v1247_v27 = vmax.f32 %v1127_v23, 0.0  ;;  %v2187_v12 = vshll.u32 %v8149_v24, 16  ;;  %v1829_v10 = vshll.u32 %v5987_v39, 16  ;;  %v1833_v28 = vshrl.u32 %v5987_v39, 16  ;;  %v8200_v39 = vld [vmem:[#allocation2 + $0x28] sm:$0xff]  }
 0x24b   : > { %v1852_v32 = vshrl.u32 %v5988_v25, 16  ;;  %6694 = vmatprep.mubr.msk.bf16.mxu0 %vm7200_vm0, %v9916_v20  ;;  %v3441_v18 = vshrl.u32 %v8115_v46, 16  ;;  %v1855_v14 = vshll.u32 %v5988_v25, 16  ;;  %v1436_v3 = vrot.slane %v1246_v11, 4 }
 0x24c   : > { %v1438_v45 = vrot.slane %v1247_v27, 4  ;;  %v2189_v38 = vrot.slane %v2187_v12, 1  ;;  %v1831_v52 = vrot.slane %v1829_v10, 5  ;;  %v1835_v2 = vrot.slane %v1833_v28, 4 }
 0x24d   : > { %v8176_v62 = vrot.slane %v1852_v32, 7  ;;  %v2185_v43 = vor.u32 %v2183_v30, %v2181_v57  ;;  %v1437_v29 = vsel %vm1280_vm2, %v8126_v36, %v1436_v3  ;;  %v3443_v54 = vor.u32 %v3441_v18, %v3439_v13 }
 0x24e   : > { %v1439_v17 = vsel %vm1280_vm2, %v1436_v3, %v1438_v45  ;;  %v3445_v46 = vshll.u32 %v8164_v6, 16  ;;  %v1832_v56 = vsel %vm8018_vm6, %v1827_v34, %v1831_v52  ;;  %v1836_v4 = vor.u32 %v1835_v2, %v1831_v52 }
 0x24f   : > { %v1857_v0 = vor.u32 %v1855_v14, %v8176_v62  ;;  %v2190_v22 = vsel %vm2154_vm5, %v2185_v43, %v2189_v38  ;;  %v1841_v57 = vsel %vm7843_vm10, %v1832_v56, %v1840_v40  ;;  %v9921_v36 = vmax.f32 %v7904_v21, 0.0  ;;  %v9923_v21 = vld [vmem:[#allocation3_spill] sm:$0xff] }
 0x250   : > { %v9922_v13 = vmax.f32 %v7920_v7, 0.0  ;;  %v3447_v49 = vrot.slane %v3445_v46, 1  ;;  %v1837_v51 = vrot.slane %v1836_v4, 4  ;;  %1842 = vst [vmem:[#allocation2 + $0x40] sm:$0xf] %v1841_v57  ;;  %6443 = vmatmul.mubr.msk.bf16.gmra.mxu1 %vm2291_vm4, %v2190_v22  ;;  %v1130_v63 = vadd.f32 %v7916_v26, %v8130_v50  ;;  %v9924_v7 = vld [vmem:[#allocation4_spill] sm:$0xff] }
 0x251   : > { %v1494_v58 = vmax.f32 %v9921_v36, %v1437_v29  ;;  %v1870_v23 = vsel %vm7843_vm10, %v1857_v0, %v1869_v48  ;;  %v1135_v34 = vadd.f32 %v7916_v26, %v1134_v35  ;;  %6446 = vmatprep.mubr.msk.bf16.mxu1 %vm7200_vm0, %v9916_v20  ;;  %v2191_v27 = vshrl.u32 %v8149_v24, 16 }
 0x252   : > { %v1495_v15 = vmax.f32 %v9922_v13, %v1439_v17  ;;  %1871 = vst [vmem:[#allocation2 + $0x48] sm:$0xf] %v1870_v23  ;;  %v3448_v11 = vsel %vm2154_vm5, %v3443_v54, %v3447_v49  ;;  %v1844_v30 = vsel %vm7871_vm12, %v1837_v51, %v1843_v19  ;;  %v1248_v26 = vmax.f32 %v1130_v63, 0.0 }
 0x253   : > { %v1519_v25 = vmax.f32 %v9923_v21, %v1494_v58  ;;  %6695 = vmatmul.mubr.msk.bf16.gmra.mxu0 %vm2291_vm4, %v3448_v11  ;;  %v1249_v50 = vmax.f32 %v1135_v34, 0.0  ;;  %v2195_v35 = vshll.u32 %v8186_v59, 16  ;;  %1845 = vst [vmem:[#allocation2 + $0x44] sm:$0xf] %v1844_v30  ;;  %v2193_v28 = vor.u32 %v2191_v27, %v2189_v38  ;;  %v1872_v38 = vld [vmem:[#allocation2 + $0x4c] sm:$0xf] }
 0x254   : > { %v1520_v47 = vmax.f32 %v9924_v7, %v1495_v15  ;;  %6698 = vmatprep.mubr.msk.bf16.mxu0 %vm7200_vm0, %v9916_v20  ;;  %v3449_v32 = vshrl.u32 %v8164_v6, 16  ;;  %v1440_v18 = vrot.slane %v1248_v26, 4  ;;  %v3453_v14 = vshll.u32 %v8200_v39, 16  ;;  %v7167_v58 = vld [vmem:[%s9871_s2] ss:$0 sm:$0xff]  ;;  %v8251_v26 = vld [vmem:[#allocation2 + $0x30] sm:$0xff]  }
 0x255   : > { %v5989_v12 = vpack.c.bf16 %v1519_v25, %v1519_v25  ;;  %v1442_v24 = vrot.slane %v1249_v50, 4  ;;  %v2197_v40 = vrot.slane %v2195_v35, 1  ;;  %v1858_v22 = vrot.slane %v8176_v62, 4 }
 0x256   : > { %v5990_v10 = vpack.c.bf16 %v1520_v47, %v1520_v47  ;;  %v1441_v48 = vsel %vm1280_vm2, %v1438_v45, %v1440_v18  ;;  %v3451_v29 = vor.u32 %v3449_v32, %v3447_v49  ;;  %v8224_v45 = vrot.slane %v3453_v14, 1  ;;  %v9926_v49 = vld [vmem:[#allocation6_spill] sm:$0xff] }
 0x257   : > { %v1860_v3 = vshrl.u32 %v5989_v12, 16  ;;  %v1863_v42 = vshll.u32 %v5989_v12, 16  ;;  %v1443_v43 = vsel %vm1280_vm2, %v1440_v18, %v1442_v24  ;;  %v2198_v19 = vsel %vm2154_vm5, %v2193_v28, %v2197_v40  ;;  %v9927_v18 = vld [vmem:[#allocation9_spill] sm:$0xff] }
 0x258   : > { %v1885_v52 = vshrl.u32 %v5990_v10, 16  ;;  %v1888_v2 = vshll.u32 %v5990_v10, 16  ;;  %v1496_v4 = vmax.f32 %v1223_v33, %v1441_v48  ;;  %v1497_v0 = vmax.f32 %v1224_v61, %v1443_v43  ;;  %6447 = vmatmul.mubr.msk.bf16.gmra.mxu1 %vm2291_vm4, %v2198_v19  ;;  %v1905_v33 = vld [vmem:[#allocation2 + $0x50] sm:$0xf]  ;;  %v9925_v61 = vld [vmem:[#allocation5_spill] sm:$0xff]  ;;  %v8255_v10 = vld [vmem:[#allocation2 + $0x38] sm:$0xff]  }
 0x259   : > { %v1862_v17 = vrot.slane %v1860_v3, 7  ;;  %v1880_v54 = vrot.slane %v1860_v3, 6  ;;  %v1881_v6 = vrot.slane %v1863_v42, 7  ;;  %v1138_v13 = vadd.f32 %v7167_v58, %v8171_v16  ;;  %6450 = vmatprep.mubr.msk.bf16.mxu1 %vm7200_vm0, %v9916_v20 }
 0x25a   : > { %v1887_v46 = vrot.slane %v1885_v52, 6  ;;  %v1890_v56 = vrot.slane %v1888_v2, 7  ;;  %v1521_v15 = vmax.f32 %v9925_v61, %v1496_v4  ;;  %v1522_v51 = vmax.f32 %v9926_v49, %v1497_v0  ;;  %v9928_v4 = vld [vmem:[#allocation7_spill] sm:$0xff]  ;;  %v8276_v49 = vld [vmem:[#allocation2 + $0x38] sm:$0xff]  }
 0x25b   : > { %v1865_v57 = vor.u32 %v1863_v42, %v1862_v17  ;;  %v1882_v36 = vor.u32 %v1881_v6, %v1880_v54  ;;  %v3456_v62 = vsel %vm2154_vm5, %v3451_v29, %v8224_v45  ;;  %v1250_v16 = vmax.f32 %v1138_v13, 0.0  ;;  %v1908_v54 = vld [vmem:[#allocation2 + $0x54] sm:$0xf] }
 0x25c   : > { %v1891_v60 = vor.u32 %v1890_v56, %v1887_v46  ;;  %6699 = vmatmul.mubr.msk.bf16.gmra.mxu0 %vm2291_vm4, %v3456_v62  ;;  %v2199_v34 = vshrl.u32 %v8186_v59, 16  ;;  %v1226_v21 = vmax.f32 %v7990_v41, 0.0  ;;  %v5991_v7 = vpack.c.bf16 %v1521_v15, %v1521_v15  ;;  %v1941_v56 = vld [vmem:[#allocation2 + $0x58] sm:$0xf] }
 0x25d   : > { %v1866_v23 = vsel %vm7862_vm11, %v1858_v22, %v1865_v57  ;;  %v1883_v63 = vrot.slane %v1882_v36, 4  ;;  %v5992_v47 = vpack.c.bf16 %v1522_v51, %v1522_v51  ;;  %6702 = vmatprep.mubr.msk.bf16.mxu0 %vm7200_vm0, %v9916_v20  ;;  %v1444_v11 = vrot.slane %v1250_v16, 4  ;;  %v9929_v22 = vld [vmem:[#allocation8_spill] sm:$0xff] }
 0x25e   : > { %v1873_v25 = vsel %vm7871_vm12, %v1866_v23, %v1872_v38  ;;  %v2201_v27 = vor.u32 %v2199_v34, %v2197_v40  ;;  %v2203_v30 = vshll.u32 %v8233_v9, 16  ;;  %v1895_v50 = vshrl.u32 %v5991_v7, 16 }
 0x25f   : > { %1874 = vst [vmem:[#allocation2 + $0x4c] sm:$0xf] %v1873_v25  ;;  %v1892_v44 = vsel %vm7892_vm13, %v1883_v63, %v1891_v60  ;;  %v1898_v35 = vshll.u32 %v5991_v7, 16  ;;  %v1921_v12 = vshrl.u32 %v5992_v47, 16  ;;  %v1924_v28 = vshll.u32 %v5992_v47, 16  ;;  %v8283_v25 = vld [vmem:[#allocation2 + $0x40] sm:$0xff]  }
 0x260   : > { %v1906_v41 = vsel %vm7843_vm10, %v1892_v44, %v1905_v33  ;;  %v1445_v32 = vsel %vm1280_vm2, %v1442_v24, %v1444_v11  ;;  %v1447_v14 = vsel %vm1280_vm2, %v1444_v11, %v9927_v18  ;;  %v2205_v40 = vrot.slane %v2203_v30, 1  ;;  %v1944_v30 = vld [vmem:[#allocation2 + $0x5c] sm:$0xf] }
 0x261   : > { %1907 = vst [vmem:[#allocation2 + $0x50] sm:$0xf] %v1906_v41  ;;  %v1897_v3 = vrot.slane %v1895_v50, 6  ;;  %v1900_v42 = vrot.slane %v1898_v35, 7  ;;  %v1916_v52 = vrot.slane %v1895_v50, 5  ;;  %v1917_v2 = vrot.slane %v1898_v35, 6 }
 0x262   : > { %v1923_v48 = vrot.slane %v1921_v12, 5  ;;  %v1926_v43 = vrot.slane %v1924_v28, 6  ;;  %v1498_v19 = vmax.f32 %v1225_v1, %v1445_v32  ;;  %v1499_v29 = vmax.f32 %v1226_v21, %v1447_v14 }
 0x263   : > { %v1893_v17 = vrot.slane %v1891_v60, 4  ;;  %v1901_v38 = vor.u32 %v1900_v42, %v1897_v3  ;;  %v1918_v6 = vor.u32 %v1917_v2, %v1916_v52  ;;  %v2206_v24 = vsel %vm2154_vm5, %v2201_v27, %v2205_v40  ;;  %v8293_v3 = vld [vmem:[#allocation2 + $0x40] sm:$0xff]  }
 0x264   : > { %v1927_v46 = vor.u32 %v1926_v43, %v1923_v48  ;;  %v1523_v0 = vmax.f32 %v9928_v4, %v1498_v19  ;;  %v1524_v57 = vmax.f32 %v9929_v22, %v1499_v29  ;;  %6451 = vmatmul.mubr.msk.bf16.gmra.mxu1 %vm2291_vm4, %v2206_v24  ;;  %v3461_v36 = vshll.u32 %v8251_v26, 16  ;;  %v1966_v52 = vld [vmem:[#allocation2 + $0x60] sm:$0xf]  ;;  %v1969_v2 = vld [vmem:[#allocation2 + $0x64] sm:$0xf] }
 0x265   : > { %v1902_v55 = vsel %vm7892_vm13, %v1893_v17, %v1901_v38  ;;  %v1919_v1 = vrot.slane %v1918_v6, 4  ;;  %v3457_v58 = vshrl.u32 %v8200_v39, 16  ;;  %6454 = vmatprep.mubr.msk.bf16.mxu1 %vm7200_vm0, %v9916_v20  ;;  %v2211_v13 = vshll.u32 %v8255_v10, 16 }
 0x266   : > { %v1909_v60 = vsel %vm7871_vm12, %v1902_v55, %v1908_v54  ;;  %v5993_v33 = vpack.c.bf16 %v1523_v0, %v1523_v0  ;;  %v5994_v61 = vpack.c.bf16 %v1524_v57, %v1524_v57  ;;  %v2207_v15 = vshrl.u32 %v8233_v9, 16  ;;  %v8301_v38 = vld [vmem:[#allocation2 + $0x48] sm:$0xff]  }
 0x267   : > { %1910 = vst [vmem:[#allocation2 + $0x54] sm:$0xf] %v1909_v60  ;;  %v1928_v53 = vsel %vm7996_vm3, %v1919_v1, %v1927_v46  ;;  %v3459_v51 = vor.u32 %v3457_v58, %v8224_v45  ;;  %v3463_v62 = vrot.slane %v3461_v36, 1  ;;  %v2213_v23 = vrot.slane %v2211_v13, 1  ;;  %v8322_v55 = vld [vmem:[#allocation2 + $0x48] sm:$0xff]  }
 0x268   : > { %v1942_v63 = vsel %vm7843_vm10, %v1928_v53, %v1941_v56  ;;  %v1931_v16 = vshrl.u32 %v5993_v33, 16  ;;  %v1934_v34 = vshll.u32 %v5993_v33, 16  ;;  %v1955_v21 = vshll.u32 %v5994_v61, 16 }
 0x269   : > { %1943 = vst [vmem:[#allocation2 + $0x58] sm:$0xf] %v1942_v63  ;;  %v1959_v7 = vshrl.u32 %v5994_v61, 16  ;;  %v3464_v47 = vsel %vm2154_vm5, %v3459_v51, %v3463_v62  ;;  %v2209_v44 = vor.u32 %v2207_v15, %v2205_v40  ;;  %v3469_v28 = vshll.u32 %v8276_v49, 16 }
 0x26a   : > { %v1933_v11 = vrot.slane %v1931_v16, 5  ;;  %v1936_v27 = vrot.slane %v1934_v34, 6  ;;  %v1950_v41 = vrot.slane %v1931_v16, 4  ;;  %v1951_v45 = vrot.slane %v1934_v34, 5  ;;  %6703 = vmatmul.mubr.msk.bf16.gmra.mxu0 %vm2291_vm4, %v3464_v47 }
 0x26b   : > { %v1957_v50 = vrot.slane %v1955_v21, 5  ;;  %v1961_v35 = vrot.slane %v1959_v7, 4  ;;  %6706 = vmatprep.mubr.msk.bf16.mxu0 %vm7200_vm0, %v9916_v20  ;;  %v2214_v12 = vsel %vm2154_vm5, %v2209_v44, %v2213_v23  ;;  %v1929_v32 = vrot.slane %v1927_v46, 4 }
 0x26c   : > { %v1937_v18 = vor.u32 %v1936_v27, %v1933_v11  ;;  %v1952_v14 = vor.u32 %v1951_v45, %v1950_v41  ;;  %6455 = vmatmul.mubr.msk.bf16.gmra.mxu1 %vm2291_vm4, %v2214_v12  ;;  %v2219_v40 = vshll.u32 %v8283_v25, 16  ;;  %v3465_v48 = vshrl.u32 %v8251_v26, 16  ;;  %v8346_v27 = vld [vmem:[#allocation2 + $0x68] sm:$0xff]   ;;  %v8353_v45 = vld [vmem:[#allocation2 + $0x70] sm:$0xff]  }
 0x26d   : > { %v1962_v42 = vor.u32 %v1961_v35, %v1957_v50  ;;  %v3471_v43 = vrot.slane %v3469_v28, 1  ;;  %6458 = vmatprep.mubr.msk.bf16.mxu1 %vm7200_vm0, %v9916_v20  ;;  %v2215_v17 = vshrl.u32 %v8255_v10, 16  ;;  %v3477_v4 = vshll.u32 %v8293_v3, 16 }
 0x26e   : > { %v1938_v19 = vsel %vm7996_vm3, %v1929_v32, %v1937_v18  ;;  %v1953_v29 = vrot.slane %v1952_v14, 4  ;;  %v3467_v24 = vor.u32 %v3465_v48, %v3463_v62  ;;  %v2221_v46 = vrot.slane %v2219_v40, 1  ;;  %v8324_v1 = vld [vmem:[#allocation2 + $0x50] sm:$0xff]  }
 0x26f   : > { %v1945_v54 = vsel %vm7871_vm12, %v1938_v19, %v1944_v30  ;;  %v1963_v6 = vrot.slane %v1962_v42, 4  ;;  %v2217_v57 = vor.u32 %v2215_v17, %v2213_v23  ;;  %v2227_v36 = vshll.u32 %v8301_v38, 16  ;;  %v8335_v62 = vld [vmem:[#allocation2 + $0x50] sm:$0xff]   ;;  %v8364_v42 = vld [vmem:[#allocation2 + $0x68] sm:$0xff]  }
 0x270   : > { %1946 = vst [vmem:[#allocation2 + $0x5c] sm:$0xf] %v1945_v54  ;;  %v1958_v56 = vsel %vm8018_vm6, %v1953_v29, %v1957_v50  ;;  %v3472_v22 = vsel %vm2154_vm5, %v3467_v24, %v3471_v43  ;;  %v3473_v31 = vshrl.u32 %v8276_v49, 16  ;;  %v3479_v8 = vrot.slane %v3477_v4, 1 }
 0x271   : > { %v1967_v5 = vsel %vm7843_vm10, %v1958_v56, %v1966_v52  ;;  %v1970_v0 = vsel %vm7871_vm12, %v1963_v6, %v1969_v2  ;;  %v2222_v37 = vsel %vm2154_vm5, %v2217_v57, %v2221_v46  ;;  %v2223_v13 = vshrl.u32 %v8283_v25, 16  ;;  %v8376_v6 = vld [vmem:[#allocation2 + $0x78] ss:$0 sps:$4 sm:$0x11]  }
 0x272   : > { %1968 = vst [vmem:[#allocation2 + $0x60] sm:$0xf] %v1967_v5  ;;  %1971 = vst [vmem:[#allocation2 + $0x64] sm:$0xf] %v1970_v0  ;;  %6707 = vmatmul.mubr.msk.bf16.gmra.mxu0 %vm2291_vm4, %v3472_v22  ;;  %v3475_v58 = vor.u32 %v3473_v31, %v3471_v43  ;;  %v2229_v60 = vrot.slane %v2227_v36, 1  ;;  %v3485_v15 = vshll.u32 %v8322_v55, 16 }
 0x273   : > { %6710 = vmatprep.mubr.msk.bf16.mxu0 %vm7200_vm0, %v9916_v20  ;;  %v2225_v61 = vor.u32 %v2223_v13, %v2221_v46  ;;  %v2235_v51 = vshll.u32 %v8324_v1, 16  ;;  %v3481_v23 = vshrl.u32 %v8293_v3, 16  ;;  %v2231_v16 = vshrl.u32 %v8301_v38, 16  ;;  %v8384_v5 = vld [vmem:[#allocation2 + $0x70] sm:$0xff]  }
 0x274   : > { %6459 = vmatmul.mubr.msk.bf16.gmra.mxu1 %vm2291_vm4, %v2222_v37  ;;  %v3480_v33 = vsel %vm2154_vm5, %v3475_v58, %v3479_v8  ;;  %v3487_v63 = vrot.slane %v3485_v15, 1  ;;  %v3493_v11 = vshll.u32 %v8335_v62, 16  ;;  %v3489_v50 = vshrl.u32 %v8322_v55, 16 }
 0x275   : > { %6462 = vmatprep.mubr.msk.bf16.mxu1 %vm7200_vm0, %v9916_v20  ;;  %v2230_v53 = vsel %vm2154_vm5, %v2225_v61, %v2229_v60  ;;  %v3483_v34 = vor.u32 %v3481_v23, %v3479_v8  ;;  %v2237_v21 = vrot.slane %v2235_v51, 1  ;;  %v2233_v44 = vor.u32 %v2231_v16, %v2229_v60  ;;  %v8390_v8 = vld [vmem:[#allocation2 + $0x14] sm:$0xf]  ;;  %v4407_v51 = vld [vmem:[#allocation2 + $0x10] sm:$0xf] }
 0x276   : > { %v3495_v35 = vrot.slane %v3493_v11, 1  ;;  %v2259_v32 = vshll.u32 %v8346_v27, 16  ;;  %v3491_v18 = vor.u32 %v3489_v50, %v3487_v63  ;;  %v2239_v14 = vshrl.u32 %v8324_v1, 16 }
 0x277   : > { %v8341_v7 = vld [vmem:[#allocation2 + $0x58] sm:$0xff]   ;;  %v3488_v47 = vsel %vm2154_vm5, %v3483_v34, %v3487_v63  ;;  %v2238_v30 = vsel %vm2154_vm5, %v2233_v44, %v2237_v21  ;;  %v2267_v52 = vshll.u32 %v8353_v45, 16  ;;  %v3517_v46 = vshll.u32 %v8364_v42, 16 }
 0x278   : > { %v2243_v41 = vshll.u32 %v8341_v7, 16  ;;  %v8358_v12 = vld [vmem:[#allocation2 + $0x58] sm:$0xff]   ;;  %v3496_v2 = vsel %vm2154_vm5, %v3491_v18, %v3495_v35  ;;  %v2241_v48 = vor.u32 %v2239_v14, %v2237_v21  ;;  %v2261_v29 = vrot.slane %v2259_v32, 1 }
 0x279   : > { %v8360_v28 = vld [vmem:[#allocation2 + $0x60] sm:$0xff]   ;;  %v3501_v43 = vshll.u32 %v8358_v12, 16  ;;  %v2247_v24 = vshrl.u32 %v8341_v7, 16  ;;  %v2263_v56 = vshrl.u32 %v8346_v27, 16  ;;  %v8382_v4 = vrot.slane %v2267_v52, 1  ;;  %v8415_v32 = vld [vmem:[#allocation2 + $0x18] sm:$0xff]  }
 0x27a   : > { %6711 = vmatmul.mubr.msk.bf16.gmra.mxu0 %vm2291_vm4, %v3480_v33  ;;  %v2245_v40 = vrot.slane %v2243_v41, 1  ;;  %v2251_v19 = vshll.u32 %v8360_v28, 16  ;;  %v8374_v54 = vld [vmem:[#allocation2 + $0x60] sm:$0xff]   ;;  %v3497_v0 = vshrl.u32 %v8335_v62, 16  ;;  %v2275_v31 = vshll.u32 %v8376_v6, 16 }
 0x27b   : > { %6714 = vmatprep.mubr.msk.bf16.mxu0 %vm7200_vm0, %v9916_v20  ;;  %9930 = vst [vmem:[#allocation3_spill] sm:$0xff] %v8374_v54  ;;  %v3503_v22 = vrot.slane %v3501_v43, 1  ;;  %v2265_v36 = vor.u32 %v2263_v56, %v2261_v29  ;;  %v3505_v13 = vshrl.u32 %v8358_v12, 16  ;;  %v3509_v60 = vshll.u32 %v8374_v54, 16  ;;  %v8444_v43 = vld [vmem:[#allocation2 + $0x30] sm:$0xff]   ;;  %v8454_v56 = vld [vmem:[#allocation2 + $0x38] sm:$0xff]  }
 0x27c   : > { %6463 = vmatmul.mubr.msk.bf16.gmra.mxu1 %vm2291_vm4, %v2230_v53  ;;  %v2246_v17 = vsel %vm2154_vm5, %v2241_v48, %v2245_v40  ;;  %v2249_v57 = vor.u32 %v2247_v24, %v2245_v40  ;;  %v2253_v37 = vrot.slane %v2251_v19, 1  ;;  %v3499_v58 = vor.u32 %v3497_v0, %v3495_v35  ;;  %v8432_v40 = vld [vmem:[#allocation2 + $0x28] sm:$0xff]  }
 0x27d   : > { %6466 = vmatprep.mubr.msk.bf16.mxu1 %vm7200_vm0, %v9916_v20  ;;  %vm2691_vm2 = vcmask 1046528   ;;  %v8394_v33 = vrot.slane %v3517_v46, 1  ;;  %v8398_v61 = vsel %vm2154_vm5, %v2265_v36, %v8382_v4  ;;  %v3525_v53 = vshll.u32 %v8384_v5, 16 }
 0x27e   : > { %v3504_v23 = vsel %vm2154_vm5, %v3499_v58, %v3503_v22  ;;  %v3507_v63 = vor.u32 %v3505_v13, %v3503_v22  ;;  %v2255_v16 = vshrl.u32 %v8360_v28, 16  ;;  %v5894_v34 = vcombine.low %v4407_v51, %v8390_v8 }
 0x27f   : > { %v2254_v21 = vsel %vm2154_vm5, %v2249_v57, %v2253_v37  ;;  %v3800_v44 = vrot.slane %v8251_v26, 1  ;;  %v3802_v11 = vrot.slane %v8276_v49, 1  ;;  %v3804_v50 = vrot.slane %v8293_v3, 1 }
 0x280   : > { %v2257_v41 = vor.u32 %v2255_v16, %v2253_v37  ;;  %v3806_v35 = vrot.slane %v8322_v55, 1  ;;  %v3808_v49 = vrot.slane %v8335_v62, 1  ;;  %v3810_v14 = vrot.slane %v8358_v12, 1  ;;  %v8430_v55 = vld [vmem:[#allocation2 + $0x20] sm:$0xff]  }
 0x281   : > { %v8423_v26 = vsel %vm2691_vm2, %v3800_v44, %v3802_v11  ;;  %v8435_v52 = vsel %vm2691_vm2, %v3802_v11, %v3804_v50  ;;  %v9879_v48 = vrot.slane %v8374_v54, 1  ;;  %v3513_v62 = vshrl.u32 %v8374_v54, 16  ;;  %v8461_v37 = vld [vmem:[#allocation2 + $0x40] sm:$0xff]  }
 0x282   : > { %6715 = vmatmul.mubr.msk.bf16.gmra.mxu0 %vm2291_vm4, %v3488_v47  ;;  %v9880_v47 = vrot.slane %v8200_v39, 1  ;;  %9931 = vst [vmem:[#allocation4_spill] sm:$0xff] %v8435_v52  ;;  %v8442_v12 = vrot.slane %v3525_v53, 1  ;;  %v8447_v19 = vsel %vm2691_vm2, %v3806_v35, %v3808_v49  ;;  %v2262_v46 = vsel %vm2154_vm5, %v2257_v41, %v2261_v29 }
 0x283   : > { %6718 = vmatprep.mubr.msk.bf16.mxu0 %vm7200_vm0, %v9916_v20  ;;  %9933 = vst [vmem:[#allocation6_spill] sm:$0xff] %v8447_v19  ;;  %v8459_v0 = vsel %vm2691_vm2, %v3810_v14, %v9879_v48  ;;  %v4523_v22 = vshll.u32 %v5894_v34, 16  ;;  %v4521_v36 = vshrl.u32 %v5894_v34, 16  ;;  %v4528_v58 = vshll.u32 %v8415_v32, 16  ;;  %v8495_v48 = vld [vmem:[#allocation2 + $0x68] sm:$0xff]  }
 0x284   : > { %6467 = vmatmul.mubr.msk.bf16.gmra.mxu1 %vm2291_vm4, %v2238_v30  ;;  %v3511_v30 = vrot.slane %v3509_v60, 1  ;;  %v8420_v18 = vsel %vm2691_vm2, %v9880_v47, %v3800_v44  ;;  %9935 = vst [vmem:[#allocation7_spill] sm:$0xff] %v8459_v0  ;;  %v4532_v13 = vshrl.u32 %v8415_v32, 16  ;;  %v4536_v53 = vshll.u32 %v8430_v55, 16 }
 0x285   : > { %6470 = vmatprep.mubr.msk.bf16.mxu1 %vm7200_vm0, %v9916_v20  ;;  %v4525_v60 = vrot.slane %v4523_v22, 1  ;;  %v4540_v29 = vshrl.u32 %v8430_v55, 16  ;;  %v4544_v51 = vshll.u32 %v8432_v40, 16  ;;  %v4552_v16 = vshll.u32 %v8444_v43, 16 }
 0x286   : > { %v3512_v24 = vsel %vm2154_vm5, %v3507_v63, %v3511_v30  ;;  %v3515_v57 = vor.u32 %v3513_v62, %v3511_v30  ;;  %v4548_v63 = vshrl.u32 %v8432_v40, 16  ;;  %v4556_v34 = vshrl.u32 %v8444_v43, 16 }
 0x287   : > { %v4526_v44 = vor.u32 %v4525_v60, %v4521_v36  ;;  %v4538_v11 = vrot.slane %v4536_v53, 1  ;;  %v4546_v30 = vrot.slane %v4544_v51, 1  ;;  %v4560_v41 = vshll.u32 %v8454_v56, 16 }
 0x288   : > { %v4568_v62 = vshll.u32 %v8461_v37, 16 }
 0x289   : > { %v4542_v36 = vor.u32 %v4540_v29, %v4538_v11  ;;  %v4562_v60 = vrot.slane %v4560_v41, 1 }
 0x28a   : > { %6719 = vmatmul.mubr.msk.bf16.gmra.mxu0 %vm2291_vm4, %v3496_v2  ;;  %v8438_v2 = vsel %vm2691_vm2, %v3804_v50, %v3806_v35  ;;  %v8478_v50 = vld [vmem:[#allocation2 + $0x50] sm:$0xff]   ;;  %v4570_v51 = vrot.slane %v4568_v62, 1 }
 0x28b   : > { %6722 = vmatprep.mubr.msk.bf16.mxu0 %vm7200_vm0, %v9916_v20  ;;  %9932 = vst [vmem:[#allocation5_spill] sm:$0xff] %v8438_v2  ;;  %v8498_v47 = vsel %vm2154_vm5, %v4542_v36, %v4546_v30 }
 0x28c   : > { %6471 = vmatmul.mubr.msk.bf16.gmra.mxu1 %vm2291_vm4, %v2246_v17  ;;  %v8450_v17 = vsel %vm2691_vm2, %v3808_v49, %v3810_v14  ;;  %v4554_v49 = vrot.slane %v4552_v16, 1  ;;  %v4564_v14 = vshrl.u32 %v8454_v56, 16  ;;  %v4572_v16 = vshrl.u32 %v8461_v37, 16  ;;  %9938 = vst [vmem:[#allocation12_spill] sm:$0xff] %v8498_v47 }
 0x28d   : > { %6474 = vmatprep.mubr.msk.bf16.mxu1 %vm7200_vm0, %v9916_v20  ;;  %9934 = vst [vmem:[#allocation9_spill] sm:$0xff] %v8450_v17 }
 0x28e   : > { %v4558_v53 = vor.u32 %v4556_v34, %v4554_v49  ;;  %v4566_v29 = vor.u32 %v4564_v14, %v4562_v60  ;;  %v4574_v41 = vor.u32 %v4572_v16, %v4570_v51 }
 0x290   : > { %v8509_v34 = vsel %vm2154_vm5, %v4558_v53, %v4562_v60 }
 0x291   : > { %9940 = vst [vmem:[#allocation14_spill] sm:$0xff] %v8509_v34 }
 0x292   : > { %6723 = vmatmul.mubr.msk.bf16.gmra.mxu0 %vm2291_vm4, %v3504_v23  ;;  %v4530_v23 = vrot.slane %v4528_v58, 1  ;;  %v4550_v58 = vor.u32 %v4548_v63, %v4546_v30  ;;  %v8513_v30 = vsel %vm2154_vm5, %v4566_v29, %v4570_v51  ;;  %v4608_v29 = vshll.u32 %v8495_v48, 16 }
 0x293   : > { %6726 = vmatprep.mubr.msk.bf16.mxu0 %vm7200_vm0, %v9916_v20  ;;  %9941 = vst [vmem:[#allocation15_spill] sm:$0xff] %v8513_v30 }
 0x294   : > { %6475 = vmatmul.mubr.msk.bf16.gmra.mxu1 %vm2291_vm4, %v2254_v21  ;;  %v8474_v21 = vld [vmem:[#allocation2 + $0x48] sm:$0xff]   ;;  %v4534_v35 = vor.u32 %v4532_v13, %v4530_v23  ;;  %v8487_v22 = vsel %vm2154_vm5, %v4526_v44, %v4530_v23  ;;  %v8501_v23 = vsel %vm2154_vm5, %v4550_v58, %v4554_v49  ;;  %v3520_v44 = vsel %vm2154_vm5, %v3515_v57, %v8394_v33 }
 0x295   : > { %6478 = vmatprep.mubr.msk.bf16.mxu1 %vm7200_vm0, %v9916_v20  ;;  %9936 = vst [vmem:[#allocation8_spill] sm:$0xff] %v8487_v22  ;;  %9939 = vst [vmem:[#allocation13_spill] sm:$0xff] %v8501_v23  ;;  %v4576_v63 = vshll.u32 %v8474_v21, 16  ;;  %v4580_v49 = vshrl.u32 %v8474_v21, 16  ;;  %v4588_v57 = vshrl.u32 %v8478_v50, 16 }
 0x296   : > { %v8492_v13 = vsel %vm2154_vm5, %v4534_v35, %v4538_v11  ;;  %v8506_v11 = vld [vmem:[#allocation2 + $0x70] sm:$0xff]   ;;  %v4584_v35 = vshll.u32 %v8478_v50, 16 }
 0x297   : > { %9937 = vst [vmem:[#allocation11_spill] sm:$0xff] %v8492_v13  ;;  %v4578_v62 = vrot.slane %v4576_v63, 1  ;;  %v4616_v3 = vshll.u32 %v8506_v11, 16 }
 0x298   : > { %v4586_v36 = vrot.slane %v4584_v35, 1 }
 0x299   : > { %v8524_v53 = vsel %vm2154_vm5, %v4574_v41, %v4578_v62  ;;  %v4582_v51 = vor.u32 %v4580_v49, %v4578_v62  ;;  %v4610_v62 = vrot.slane %v4608_v29, 1  ;;  %v4612_v49 = vshrl.u32 %v8495_v48, 16 }
 0x29a   : > { %6727 = vmatmul.mubr.msk.bf16.gmra.mxu0 %vm2291_vm4, %v3512_v24  ;;  %v8484_v24 = vld [vmem:[#allocation2 + $0x58] sm:$0xff]   ;;  %9942 = vst [vmem:[#allocation16_spill] sm:$0xff] %v8524_v53  ;;  %v4590_v63 = vor.u32 %v4588_v57, %v4586_v36  ;;  %v9946_v53 = vshrl.u32 %v8364_v42, 16 }
 0x29b   : > { %6730 = vmatprep.mubr.msk.bf16.mxu0 %vm7200_vm0, %v9916_v20  ;;  %v4592_v14 = vshll.u32 %v8484_v24, 16  ;;  %v4596_v58 = vshrl.u32 %v8484_v24, 16  ;;  %v8534_v15 = vsel %vm2154_vm5, %v4582_v51, %v4586_v36  ;;  %v9947_v36 = vshrl.u32 %v8353_v45, 16  ;;  %v7103_v51 = vld [vmem:[#allocation2 + $0x78] sm:$0xff]  }
 0x29c   : > { %6479 = vmatmul.mubr.msk.bf16.gmra.mxu1 %vm2291_vm4, %v2262_v46  ;;  %v8489_v46 = vld [vmem:[#allocation2 + $0x60] sm:$0xff]   ;;  %9943 = vst [vmem:[#allocation17_spill] sm:$0xff] %v8534_v15  ;;  %v3523_v30 = vor.u32 %v9946_v53, %v8394_v33  ;;  %v4614_v6 = vor.u32 %v4612_v49, %v4610_v62  ;;  %v3529_v33 = vshrl.u32 %v8384_v5, 16 }
 0x29d   : > { %6482 = vmatprep.mubr.msk.bf16.mxu1 %vm7200_vm0, %v9916_v20  ;;  %v4600_v60 = vshll.u32 %v8489_v46, 16  ;;  %v4594_v16 = vrot.slane %v4592_v14, 1  ;;  %v4604_v35 = vshrl.u32 %v8489_v46, 16  ;;  %v2277_v14 = vrot.slane %v2275_v31, 1 }
 0x29e   : > { %v7105_v53 = vld [vmem:[#allocation2 + $0x80] ss:$0 sps:$4 sm:$0x11]  }
 0x29f   : > { %v4598_v41 = vor.u32 %v4596_v58, %v4594_v16  ;;  %v2273_v58 = vor.u32 %v9947_v36, %v8382_v4  ;;  %v8591_v36 = vld [vmem:[#allocation2 + $0x8] sm:$0xff]  }
 0x2a1   : > { %v2278_v4 = vsel %vm2154_vm5, %v2273_v58, %v2277_v14  ;;  %v7115_v14 = vld [vmem:[%s9872_s3 + $0x20] sm:$0xff]   ;;  %v7126_v58 = vld [vmem:[%s9872_s3 + $0x88] sm:$0xff]  }
 0x2a2   : > { %6731 = vmatmul.mubr.msk.bf16.gmra.mxu0 %vm2291_vm4, %v3520_v44  ;;  %v4602_v44 = vrot.slane %v4600_v60, 1  ;;  %v8542_v60 = vrot.slane %v4616_v3, 1  ;;  %v3528_v3 = vsel %vm2154_vm5, %v3523_v30, %v8442_v12 }
 0x2a3   : > { %6734 = vmatprep.mubr.msk.bf16.mxu0 %vm7200_vm0, %v9916_v20 }
 0x2a4   : > { %6483 = vmatmul.mubr.msk.bf16.gmra.mxu1 %vm2291_vm4, %v8398_v61  ;;  %v8540_v61 = vsel %vm2154_vm5, %v4590_v63, %v4594_v16  ;;  %v4606_v57 = vor.u32 %v4604_v35, %v4602_v44  ;;  %9945 = vst [vmem:[#allocation19_spill] sm:$0xff] %v8542_v60  ;;  %v8551_v29 = vsel %vm2154_vm5, %v4598_v41, %v4602_v44  ;;  %v3533_v16 = vshll.u32 %v7103_v51, 16 }
 0x2a5   : > { %6486 = vmatprep.mubr.msk.bf16.mxu1 %vm7200_vm0, %v9916_v20  ;;  %9944 = vst [vmem:[#allocation18_spill] sm:$0xff] %v8540_v61  ;;  %9948 = vst [vmem:[#allocation20_spill] sm:$0xff] %v8551_v29  ;;  %v8560_v42 = vsel %vm2154_vm5, %v4614_v6, %v8542_v60  ;;  %v3531_v63 = vor.u32 %v3529_v33, %v8442_v12  ;;  %v3537_v44 = vshrl.u32 %v7103_v51, 16  ;;  %v3541_v35 = vshll.u32 %v7105_v53, 16  ;;  %v9951_v12 = vld [vmem:[#allocation10_spill] sm:$0xff]  ;;  %v7108_v51 = vld [vmem:[#allocation2 + $0x10] sm:$0xff]  }
 0x2a6   : > { %v8554_v31 = vsel %vm2154_vm5, %v4606_v57, %v4610_v62  ;;  %9950 = vst [vmem:[#allocation22_spill] sm:$0xff] %v8560_v42  ;;  %v3535_v30 = vrot.slane %v3533_v16, 1  ;;  %v7104_v62 = vld [vmem:[%s9872_s3 + $0x28] sm:$0xff]   ;;  %v7127_v6 = vld [vmem:[%s9872_s3 + $0x80] sm:$0xff]   ;;  %v7109_v16 = vld [vmem:[#allocation2 + $0x18] sm:$0xff]  }
 0x2a7   : > { %9949 = vst [vmem:[#allocation21_spill] sm:$0xff] %v8554_v31  ;;  %v3543_v49 = vrot.slane %v3541_v35, 1  ;;  %v7110_v33 = vld [vmem:[#allocation2 + $0x20] sm:$0xff]   ;;  %v7121_v60 = vld [vmem:[#allocation2 + $0x70] sm:$0xff]  }
 0x2a8   : > { %v3536_v41 = vsel %vm2154_vm5, %v3531_v63, %v3535_v30  ;;  %v3539_v5 = vor.u32 %v3537_v44, %v3535_v30  ;;  %v8625_v53 = vld [vmem:[#allocation2 + $0x20] sm:$0xff]   ;;  %v7111_v63 = vld [vmem:[#allocation2 + $0x28] sm:$0xff]   ;;  %v7112_v30 = vld [vmem:[#allocation2 + $0x30] sm:$0xff]  }
 0x2a9   : > { %v7113_v44 = vld [vmem:[#allocation2 + $0x38] sm:$0xff]   ;;  %v4882_v31 = vld [vmem:[#allocation2 + $0x10] sm:$0xe] }
 0x2aa   : > { %6735 = vmatmul.mubr.msk.bf16.gmra.mxu0 %vm2291_vm4, %v3528_v3  ;;  %v3544_v57 = vsel %vm2154_vm5, %v3539_v5, %v3543_v49  ;;  %v8606_v3 = vld [vmem:[#allocation2 + $0x10] sm:$0xff]  }
 0x2ab   : > { %6738 = vmatprep.mubr.msk.bf16.mxu0 %vm7200_vm0, %v9916_v20  ;;  %v7117_v49 = vld [vmem:[#allocation2 + $0x50] sm:$0xff]  }
 0x2ac   : > { %6487 = vmatmul.mubr.msk.bf16.gmra.mxu1 %vm2291_vm4, %v2278_v4  ;;  %v8616_v4 = vld [vmem:[#allocation2 + $0x18] sm:$0xff]  }
 0x2ad   : > { %6494 = vmatprep.mubr.msk.bf16.mxu1 %vm7200_vm0, %v9916_v20 }
 0x2b2   : > { %6739 = vmatmul.mubr.msk.bf16.gmra.mxu0 %vm2291_vm4, %v3536_v41 }
 0x2b3   : > { %6742 = vmatprep.mubr.msk.bf16.mxu0 %vm7200_vm0, %v9916_v20 }
 0x2b4   : > { %6495 = vmatmul.mubr.msk.bf16.vlgmr.msra.gmra.mxu1 %vm2291_vm4, %v9951_v12 }
 0x2b5   : > { %6555 = vmatpush3.bf16.msra.mxu1 %v7104_v62  ;;  %6498 = vmatprep.mubr.msk.bf16.mxu1 %vm7200_vm0, %v9916_v20  ;;  %v7116_v62 = vld [vmem:[#allocation2 + $0x48] sm:$0xff]  }
 0x2b6   : > { %6556 = vmatprep.subr.bf16.mxu1 %v9916_v20 }
 0x2b9   : > { %6557 = vmatpush3.bf16.msra.mxu1 %v7115_v14 }
 0x2ba   : > { %6743 = vmatmul.mubr.msk.bf16.gmra.mxu0 %vm2291_vm4, %v3544_v57  ;;  %6618 = vmatprep.subr.bf16.mxu1 %v9916_v20 }
 0x2bb   : > { %6814 = vmatprep.mubr.msk.bf16.mxu0 %vm7200_vm0, %v9916_v20 }
 0x2bc   : > { %6499 = vmatmul.mubr.msk.bf16.gmra.mxu1 %vm2291_vm4, %v8591_v36 }
 0x2bd   : > { %6502 = vmatprep.mubr.msk.bf16.mxu1 %vm7200_vm0, %v9916_v20 }
 0x2c2   : > { %6815 = vmatmul.mubr.msk.bf16.vlgmr.msra.gmra.mxu0 %vm2291_vm4, %v7108_v51 }
 0x2c3   : > { %6818 = vmatprep.mubr.msk.bf16.mxu0 %vm7200_vm0, %v9916_v20  ;;  %6939 = vmatpush3.bf16.msra.mxu0 %v7126_v58 }
 0x2c4   : > { %6503 = vmatmul.mubr.msk.bf16.gmra.mxu1 %vm2291_vm4, %v8606_v3  ;;  %6940 = vmatprep.subr.bf16.mxu0 %v9916_v20 }
 0x2c5   : > { %6506 = vmatprep.mubr.msk.bf16.mxu1 %vm7200_vm0, %v9916_v20 }
 0x2c7   : > { %6941 = vmatpush3.bf16.msra.mxu0 %v7127_v6  ;;  %v7118_v6 = vld [vmem:[#allocation2 + $0x58] sm:$0xff]  }
 0x2ca   : > { %6819 = vmatmul.mubr.msk.bf16.gmra.mxu0 %vm2291_vm4, %v7109_v16 }
 0x2cb   : > { %6822 = vmatprep.mubr.msk.bf16.mxu0 %vm7200_vm0, %v9916_v20 }
 0x2cc   : > { %6507 = vmatmul.mubr.msk.bf16.gmra.mxu1 %vm2291_vm4, %v8616_v4 }
 0x2cd   : > { %6510 = vmatprep.mubr.msk.bf16.mxu1 %vm7200_vm0, %v9916_v20 }
 0x2d2   : > { %6823 = vmatmul.mubr.msk.bf16.gmra.mxu0 %vm2291_vm4, %v7110_v33 }
 0x2d3   : > { %6826 = vmatprep.mubr.msk.bf16.mxu0 %vm7200_vm0, %v9916_v20 }
 0x2d4   : > { %6511 = vmatmul.mubr.msk.bf16.gmra.mxu1 %vm2291_vm4, %v8625_v53 }
 0x2d5   : > { %6514 = vmatprep.mubr.msk.bf16.mxu1 %vm7200_vm0, %v9916_v20 }
 0x2da   : > { %6827 = vmatmul.mubr.msk.bf16.gmra.mxu0 %vm2291_vm4, %v7111_v63 }
 0x2db   : > { %6830 = vmatprep.mubr.msk.bf16.mxu0 %vm7200_vm0, %v9916_v20 }
 0x2dc   : > { %6515 = vmatmul.mubr.msk.bf16.gmra.mxu1 %vm2291_vm4, %v8186_v59  ;;  %v7114_v59 = vld [vmem:[#allocation2 + $0x40] sm:$0xff]  }
 0x2dd   : > { %6518 = vmatprep.mubr.msk.bf16.mxu1 %vm7200_vm0, %v9916_v20 }
 0x2e2   : > { %6831 = vmatmul.mubr.msk.bf16.gmra.mxu0 %vm2291_vm4, %v7112_v30 }
 0x2e3   : > { %6834 = vmatprep.mubr.msk.bf16.mxu0 %vm7200_vm0, %v9916_v20 }
 0x2e4   : > { %6519 = vmatmul.mubr.msk.bf16.gmra.mxu1 %vm2291_vm4, %v8233_v9 }
 0x2e5   : > { %6522 = vmatprep.mubr.msk.bf16.mxu1 %vm7200_vm0, %v9916_v20 }
 0x2ea   : > { %6835 = vmatmul.mubr.msk.bf16.gmra.mxu0 %vm2291_vm4, %v7113_v44 }
 0x2eb   : > { %6838 = vmatprep.mubr.msk.bf16.mxu0 %vm7200_vm0, %v9916_v20 }
 0x2ec   : > { %6523 = vmatmul.mubr.msk.bf16.gmra.mxu1 %vm2291_vm4, %v8255_v10 }
 0x2ed   : > { %6526 = vmatprep.mubr.msk.bf16.mxu1 %vm7200_vm0, %v9916_v20 }
 0x2ee   : > { %v8652_v35 = vpop.f32.mrf.mxu1 }
 0x2f0   : > { %v6432_v9 = vpop.f32.mrf.mxu1 }
 0x2f2   : > { %6839 = vmatmul.mubr.msk.bf16.gmra.mxu0 %vm2291_vm4, %v7114_v59  ;;  %v8659_v41 = vpop.f32.mrf.mxu1 }
 0x2f3   : > { %6842 = vmatprep.mubr.msk.bf16.mxu0 %vm7200_vm0, %v9916_v20 }
 0x2f4   : > { %6527 = vmatmul.mubr.msk.bf16.gmra.mxu1 %vm2291_vm4, %v8283_v25  ;;  %v6433_v10 = vpop.f32.mrf.mxu1 }
 0x2f5   : > { %6530 = vmatprep.mubr.msk.bf16.mxu1 %vm7200_vm0, %v9916_v20  ;;  %v7119_v10 = vld [vmem:[#allocation2 + $0x60] sm:$0xff]  }
 0x2fa   : > { %6843 = vmatmul.mubr.msk.bf16.gmra.mxu0 %vm2291_vm4, %v7116_v62 }
 0x2fb   : > { %6846 = vmatprep.mubr.msk.bf16.mxu0 %vm7200_vm0, %v9916_v20  ;;  %v8668_v5 = vpop.f32.mrf.mxu1 }
 0x2fc   : > { %6531 = vmatmul.mubr.msk.bf16.gmra.mxu1 %vm2291_vm4, %v8301_v38 }
 0x2fd   : > { %6534 = vmatprep.mubr.msk.bf16.mxu1 %vm7200_vm0, %v9916_v20  ;;  %v6436_v25 = vpop.f32.mrf.mxu1 }
 0x2ff   : > { %v8672_v12 = vpop.f32.mrf.mxu1 }
 0x300   : > { %v8674_v14 = vpop.f32.mrf.mxu0 }
 0x301   : > { %9952 = vst [vmem:[#allocation10_spill] sm:$0xff] %v8674_v14  ;;  %v6437_v57 = vpop.f32.mrf.mxu1 }
 0x302   : > { %6847 = vmatmul.mubr.msk.bf16.gmra.mxu0 %vm2291_vm4, %v7117_v49  ;;  %v6688_v58 = vpop.f32.mrf.mxu0 }
 0x303   : > { %6850 = vmatprep.mubr.msk.bf16.mxu0 %vm7200_vm0, %v9916_v20 }
 0x304   : > { %6535 = vmatmul.mubr.msk.bf16.gmra.mxu1 %vm2291_vm4, %v8324_v1  ;;  %v8681_v38 = vpop.f32.mrf.mxu0 }
 0x305   : > { %9953 = vst [vmem:[#allocation23_spill] sm:$0xff] %v8681_v38  ;;  %6538 = vmatprep.mubr.msk.bf16.mxu1 %vm7200_vm0, %v9916_v20 }
 0x306   : > { %v6689_v51 = vpop.f32.mrf.mxu0 }
 0x308   : > { %v8685_v16 = vpop.f32.mrf.mxu1 }
 0x30a   : > { %6851 = vmatmul.mubr.msk.bf16.gmra.mxu0 %vm2291_vm4, %v7118_v6  ;;  %v8688_v33 = vpop.f32.mrf.mxu0  ;;  %v6440_v63 = vpop.f32.mrf.mxu1 }
 0x30b   : > { %9954 = vst [vmem:[#allocation24_spill] sm:$0xff] %v8688_v33  ;;  %6854 = vmatprep.mubr.msk.bf16.mxu0 %vm7200_vm0, %v9916_v20  ;;  %v2697_v33 = vrot.slane %v8616_v4, 1  ;;  %v4893_v4 = vrot.slane %v8430_v55, 1 }
 0x30c   : > { %6539 = vmatmul.mubr.msk.bf16.gmra.mxu1 %vm2291_vm4, %v8341_v7  ;;  %v6692_v30 = vpop.f32.mrf.mxu0  ;;  %v8694_v44 = vpop.f32.mrf.mxu1 }
 0x30d   : > { %6542 = vmatprep.mubr.msk.bf16.mxu1 %vm7200_vm0, %v9916_v20  ;;  %v7120_v30 = vld [vmem:[#allocation2 + $0x68] sm:$0xff]  }
 0x30e   : > { %v8698_v59 = vpop.f32.mrf.mxu0  ;;  %v6441_v9 = vpop.f32.mrf.mxu1 }
 0x30f   : > { %9955 = vst [vmem:[#allocation25_spill] sm:$0xff] %v8698_v59 }
 0x310   : > { %v6693_v62 = vpop.f32.mrf.mxu0  ;;  %v8700_v25 = vpop.f32.mrf.mxu1 }
 0x312   : > { %6855 = vmatmul.mubr.msk.bf16.gmra.mxu0 %vm2291_vm4, %v7119_v10  ;;  %v6444_v57 = vpop.f32.mrf.mxu1 }
 0x313   : > { %6858 = vmatprep.mubr.msk.bf16.mxu0 %vm7200_vm0, %v9916_v20  ;;  %v8705_v49 = vpop.f32.mrf.mxu0 }
 0x314   : > { %9956 = vst [vmem:[#allocation26_spill] sm:$0xff] %v8705_v49  ;;  %6543 = vmatmul.mubr.msk.bf16.gmra.mxu1 %vm2291_vm4, %v8360_v28  ;;  %v8709_v51 = vpop.f32.mrf.mxu1  ;;  %v2693_v49 = vrot.slane %v8591_v36, 1  ;;  %v7137_v36 = vld [vmem:[%s9872_s3 + $0x30] sm:$0xff]  }
 0x315   : > { %v6696_v58 = vpop.f32.mrf.mxu0  ;;  %6546 = vmatprep.mubr.msk.bf16.mxu1 %vm7200_vm0, %v9916_v20 }
 0x316   : > { %v6445_v63 = vpop.f32.mrf.mxu1 }
 0x317   : > { %v8713_v6 = vpop.f32.mrf.mxu0 }
 0x318   : > { %9957 = vst [vmem:[#allocation27_spill] sm:$0xff] %v8713_v6  ;;  %v8715_v10 = vpop.f32.mrf.mxu1 }
 0x319   : > { %v6697_v9 = vpop.f32.mrf.mxu0 }
 0x31a   : > { %6859 = vmatmul.mubr.msk.bf16.gmra.mxu0 %vm2291_vm4, %v7120_v30  ;;  %v6448_v62 = vpop.f32.mrf.mxu1  ;;  %v2683_v30 = vld [vmem:[#allocation2] sm:$0xe] }
 0x31b   : > { %6862 = vmatprep.mubr.msk.bf16.mxu0 %vm7200_vm0, %v9916_v20 }
 0x31c   : > { %6547 = vmatmul.mubr.msk.bf16.gmra.mxu1 %vm2291_vm4, %v8346_v27  ;;  %v8722_v57 = vpop.f32.mrf.mxu0  ;;  %v8724_v58 = vpop.f32.mrf.mxu1  ;;  %v7172_v27 = vld [vmem:[#allocation2 + $0x4] sm:$0xf] }
 0x31d   : > { %9958 = vst [vmem:[#allocation28_spill] sm:$0xff] %v8722_v57  ;;  %6550 = vmatprep.mubr.msk.bf16.mxu1 %vm7200_vm0, %v9916_v20  ;;  %v5761_v62 = vcombine.low %v2683_v30, %v7172_v27 }
 0x31e   : > { %v6700_v63 = vpop.f32.mrf.mxu0  ;;  %v6449_v9 = vpop.f32.mrf.mxu1 }
 0x31f   : > { %v7122_v63 = vld [vmem:[#allocation2 + $0x78] sm:$0xff]  }
 0x320   : > { %v8728_v6 = vpop.f32.mrf.mxu0 }
 0x321   : > { %9959 = vst [vmem:[#allocation29_spill] sm:$0xff] %v8728_v6  ;;  %v2692_v6 = vrot.slane %v5761_v62, 1 }
 0x322   : > { %6863 = vmatmul.mubr.msk.bf16.gmra.mxu0 %vm2291_vm4, %v7121_v60  ;;  %v6701_v42 = vpop.f32.mrf.mxu0 }
 0x323   : > { %6866 = vmatprep.mubr.msk.bf16.mxu0 %vm7200_vm0, %v9916_v20  ;;  %v7124_v42 = vld [vmem:[%s9872_s3 + $0x38] sm:$0xff]  }
 0x324   : > { %v8733_v57 = vpop.f32.mrf.mxu1  ;;  %6551 = vmatmul.mubr.msk.bf16.gmra.mxu1 %vm2291_vm4, %v8353_v45  ;;  %v2694_v45 = vsel %vm2691_vm2, %v2692_v6, %v2693_v49  ;;  %v2695_v6 = vrot.slane %v8606_v3, 1 }
 0x325   : > { %6558 = vmatprep.mubr.msk.bf16.mxu1 %vm7200_vm0, %v9916_v20 }
 0x326   : > { %v6452_v9 = vpop.f32.mrf.mxu1 }
 0x328   : > { %v8740_v60 = vpop.f32.mrf.mxu1 }
 0x32a   : > { %v8745_v30 = vpop.f32.mrf.mxu0  ;;  %6867 = vmatmul.mubr.msk.bf16.gmra.mxu0 %vm2291_vm4, %v7122_v63  ;;  %v6453_v27 = vpop.f32.mrf.mxu1 }
 0x32b   : > { %9960 = vst [vmem:[#allocation30_spill] sm:$0xff] %v8745_v30  ;;  %6870 = vmatprep.mubr.msk.bf16.mxu0 %vm7200_vm0, %v9916_v20  ;;  %v7125_v27 = vld [vmem:[#allocation2 + $0x80] sm:$0xff]  }
 0x32c   : > { %v6704_v9 = vpop.f32.mrf.mxu0  ;;  %v8751_v62 = vpop.f32.mrf.mxu1  ;;  %6559 = vmatmul.mubr.msk.bf16.vlgmr.msra.gmra.mxu1 %vm2291_vm4, %v2694_v45 }
 0x32d   : > { %6619 = vmatpush3.bf16.msra.mxu1 %v7124_v42  ;;  %6562 = vmatprep.mubr.msk.bf16.mxu1 %vm7200_vm0, %v9916_v20 }
 0x32e   : > { %v8759_v63 = vpop.f32.mrf.mxu0  ;;  %v6456_v30 = vpop.f32.mrf.mxu1  ;;  %6620 = vmatprep.subr.bf16.mxu1 %v9916_v20 }
 0x32f   : > { %9961 = vst [vmem:[#allocation31_spill] sm:$0xff] %v8759_v63  ;;  %v2696_v30 = vsel %vm2691_vm2, %v2693_v49, %v2695_v6  ;;  %v5927_v63 = vcombine.low %v4882_v31, %v8390_v8 }
 0x330   : > { %v6705_v9 = vpop.f32.mrf.mxu0  ;;  %v8763_v59 = vpop.f32.mrf.mxu1 }
 0x331   : > { %6621 = vmatpush3.bf16.msra.mxu1 %v7137_v36  ;;  %v4891_v36 = vrot.slane %v8415_v32, 1  ;;  %v2698_v32 = vsel %vm2691_vm2, %v2695_v6, %v2697_v33 }
 0x332   : > { %v8765_v42 = vpop.f32.mrf.mxu0  ;;  %6871 = vmatmul.mubr.msk.bf16.gmra.mxu0 %vm2291_vm4, %v7125_v27  ;;  %v6457_v45 = vpop.f32.mrf.mxu1  ;;  %6746 = vmatprep.subr.bf16.mxu1 %v9916_v20 }
 0x333   : > { %9962 = vst [vmem:[#allocation32_spill] sm:$0xff] %v8765_v42  ;;  %6942 = vmatprep.mubr.msk.bf16.mxu0 %vm7200_vm0, %v9916_v20  ;;  %v4890_v42 = vrot.slane %v5927_v63, 1  ;;  %v4894_v6 = vsel %vm2691_vm2, %v4891_v36, %v4893_v4 }
 0x334   : > { %v6708_v3 = vpop.f32.mrf.mxu0  ;;  %v8773_v9 = vpop.f32.mrf.mxu1  ;;  %6563 = vmatmul.mubr.msk.bf16.gmra.mxu1 %vm2291_vm4, %v2696_v30 }
 0x335   : > { %6566 = vmatprep.mubr.msk.bf16.mxu1 %vm7200_vm0, %v9916_v20  ;;  %v4892_v8 = vsel %vm2691_vm2, %v4890_v42, %v4891_v36  ;;  %v2699_v42 = vrot.slane %v8625_v53, 1  ;;  %v4895_v53 = vrot.slane %v8432_v40, 1 }
 0x336   : > { %v8779_v27 = vpop.f32.mrf.mxu0  ;;  %v6460_v45 = vpop.f32.mrf.mxu1 }
 0x337   : > { %9963 = vst [vmem:[#allocation33_spill] sm:$0xff] %v8779_v27  ;;  %v2700_v55 = vsel %vm2691_vm2, %v2697_v33, %v2699_v42  ;;  %v4896_v33 = vsel %vm2691_vm2, %v4893_v4, %v4895_v53 }
 0x338   : > { %v6709_v38 = vpop.f32.mrf.mxu0  ;;  %v8782_v49 = vpop.f32.mrf.mxu1 }
 0x33a   : > { %v8785_v31 = vpop.f32.mrf.mxu0  ;;  %6943 = vmatmul.mubr.msk.bf16.vlgmr.msra.gmra.mxu0 %vm2291_vm4, %v4892_v8  ;;  %v6461_v30 = vpop.f32.mrf.mxu1 }
 0x33b   : > { %9964 = vst [vmem:[#allocation34_spill] sm:$0xff] %v8785_v31  ;;  %6946 = vmatprep.mubr.msk.bf16.mxu0 %vm7200_vm0, %v9916_v20 }
 0x33c   : > { %v6712_v3 = vpop.f32.mrf.mxu0  ;;  %v8791_v45 = vpop.f32.mrf.mxu1  ;;  %6567 = vmatmul.mubr.msk.bf16.gmra.mxu1 %vm2291_vm4, %v2698_v32 }
 0x33d   : > { %6570 = vmatprep.mubr.msk.bf16.mxu1 %vm7200_vm0, %v9916_v20 }
 0x33e   : > { %v8797_v38 = vpop.f32.mrf.mxu0  ;;  %v6464_v63 = vpop.f32.mrf.mxu1 }
 0x33f   : > { %9965 = vst [vmem:[#allocation35_spill] sm:$0xff] %v8797_v38 }
 0x340   : > { %v6713_v8 = vpop.f32.mrf.mxu0  ;;  %v8800_v30 = vpop.f32.mrf.mxu1 }
 0x341   : > { %v7173_v8 = vld [vmem:[#allocation2 + $0x28] sm:$0xff]  }
 0x342   : > { %v8803_v3 = vpop.f32.mrf.mxu0  ;;  %6947 = vmatmul.mubr.msk.bf16.gmra.mxu0 %vm2291_vm4, %v4894_v6  ;;  %v6465_v32 = vpop.f32.mrf.mxu1  ;;  %v2701_v6 = vrot.slane %v7173_v8, 1 }
 0x343   : > { %9966 = vst [vmem:[#allocation36_spill] sm:$0xff] %v8803_v3  ;;  %6950 = vmatprep.mubr.msk.bf16.mxu0 %vm7200_vm0, %v9916_v20 }
 0x344   : > { %v6716_v31 = vpop.f32.mrf.mxu0  ;;  %v8809_v38 = vpop.f32.mrf.mxu1  ;;  %6571 = vmatmul.mubr.msk.bf16.gmra.mxu1 %vm2291_vm4, %v2700_v55  ;;  %v2702_v40 = vsel %vm2691_vm2, %v2699_v42, %v2701_v6 }
 0x345   : > { %6574 = vmatprep.mubr.msk.bf16.mxu1 %vm7200_vm0, %v9916_v20 }
 0x346   : > { %v8815_v36 = vpop.f32.mrf.mxu0  ;;  %v6468_v63 = vpop.f32.mrf.mxu1 }
 0x347   : > { %9967 = vst [vmem:[#allocation37_spill] sm:$0xff] %v8815_v36  ;;  %v4897_v63 = vrot.slane %v8444_v43, 1 }
 0x348   : > { %v6717_v32 = vpop.f32.mrf.mxu0  ;;  %v8817_v3 = vpop.f32.mrf.mxu1 }
 0x349   : > { %v7174_v32 = vld [vmem:[#allocation2 + $0x30] sm:$0xff]   ;;  %v4898_v42 = vsel %vm2691_vm2, %v4895_v53, %v4897_v63 }
 0x34a   : > { %v8820_v31 = vpop.f32.mrf.mxu0  ;;  %6951 = vmatmul.mubr.msk.bf16.gmra.mxu0 %vm2291_vm4, %v4896_v33  ;;  %v6469_v55 = vpop.f32.mrf.mxu1  ;;  %v2703_v33 = vrot.slane %v7174_v32, 1 }
 0x34b   : > { %9968 = vst [vmem:[#allocation38_spill] sm:$0xff] %v8820_v31  ;;  %6954 = vmatprep.mubr.msk.bf16.mxu0 %vm7200_vm0, %v9916_v20 }
 0x34c   : > { %v6720_v27 = vpop.f32.mrf.mxu0  ;;  %v8826_v36 = vpop.f32.mrf.mxu1  ;;  %6575 = vmatmul.mubr.msk.bf16.gmra.mxu1 %vm2291_vm4, %v2702_v40  ;;  %v2704_v43 = vsel %vm2691_vm2, %v2701_v6, %v2703_v33 }
 0x34d   : > { %6578 = vmatprep.mubr.msk.bf16.mxu1 %vm7200_vm0, %v9916_v20 }
 0x34e   : > { %v8832_v4 = vpop.f32.mrf.mxu0  ;;  %v6472_v8 = vpop.f32.mrf.mxu1 }
 0x34f   : > { %9969 = vst [vmem:[#allocation39_spill] sm:$0xff] %v8832_v4  ;;  %v4899_v8 = vrot.slane %v8454_v56, 1 }
 0x350   : > { %v6721_v55 = vpop.f32.mrf.mxu0  ;;  %v8834_v31 = vpop.f32.mrf.mxu1 }
 0x351   : > { %v7175_v55 = vld [vmem:[#allocation2 + $0x38] sm:$0xff]   ;;  %v4900_v6 = vsel %vm2691_vm2, %v4897_v63, %v4899_v8 }
 0x352   : > { %v8837_v27 = vpop.f32.mrf.mxu0  ;;  %6955 = vmatmul.mubr.msk.bf16.gmra.mxu0 %vm2291_vm4, %v4898_v42  ;;  %v6473_v40 = vpop.f32.mrf.mxu1  ;;  %v2705_v42 = vrot.slane %v7175_v55, 1 }
 0x353   : > { %9970 = vst [vmem:[#allocation40_spill] sm:$0xff] %v8837_v27  ;;  %6958 = vmatprep.mubr.msk.bf16.mxu0 %vm7200_vm0, %v9916_v20 }
 0x354   : > { %v6724_v29 = vpop.f32.mrf.mxu0  ;;  %v8843_v4 = vpop.f32.mrf.mxu1  ;;  %6579 = vmatmul.mubr.msk.bf16.gmra.mxu1 %vm2291_vm4, %v2704_v43  ;;  %v2706_v56 = vsel %vm2691_vm2, %v2703_v33, %v2705_v42 }
 0x355   : > { %6582 = vmatprep.mubr.msk.bf16.mxu1 %vm7200_vm0, %v9916_v20 }
 0x356   : > { %v8849_v53 = vpop.f32.mrf.mxu0  ;;  %v6476_v32 = vpop.f32.mrf.mxu1 }
 0x357   : > { %9971 = vst [vmem:[#allocation41_spill] sm:$0xff] %v8849_v53  ;;  %v4901_v32 = vrot.slane %v8461_v37, 1 }
 0x358   : > { %v6725_v40 = vpop.f32.mrf.mxu0  ;;  %v8851_v27 = vpop.f32.mrf.mxu1 }
 0x359   : > { %v7176_v40 = vld [vmem:[#allocation2 + $0x40] sm:$0xff]   ;;  %v4902_v33 = vsel %vm2691_vm2, %v4899_v8, %v4901_v32 }
 0x35a   : > { %v8854_v29 = vpop.f32.mrf.mxu0  ;;  %6959 = vmatmul.mubr.msk.bf16.gmra.mxu0 %vm2291_vm4, %v4900_v6  ;;  %v6477_v43 = vpop.f32.mrf.mxu1  ;;  %v2707_v6 = vrot.slane %v7176_v40, 1 }
 0x35b   : > { %9972 = vst [vmem:[#allocation42_spill] sm:$0xff] %v8854_v29  ;;  %6962 = vmatprep.mubr.msk.bf16.mxu0 %vm7200_vm0, %v9916_v20 }
 0x35c   : > { %v6728_v14 = vpop.f32.mrf.mxu0  ;;  %v8860_v53 = vpop.f32.mrf.mxu1  ;;  %6583 = vmatmul.mubr.msk.bf16.gmra.mxu1 %vm2291_vm4, %v2706_v56  ;;  %v2708_v37 = vsel %vm2691_vm2, %v2705_v42, %v2707_v6 }
 0x35d   : > { %9973 = vst [vmem:[#allocation43_spill] sm:$0xff] %v8860_v53  ;;  %6586 = vmatprep.mubr.msk.bf16.mxu1 %vm7200_vm0, %v9916_v20 }
 0x35e   : > { %v8866_v63 = vpop.f32.mrf.mxu0  ;;  %v6480_v55 = vpop.f32.mrf.mxu1 }
 0x35f   : > { %9974 = vst [vmem:[#allocation44_spill] sm:$0xff] %v8866_v63  ;;  %v4903_v55 = vrot.slane %v8474_v21, 1 }
 0x360   : > { %v6729_v43 = vpop.f32.mrf.mxu0  ;;  %v8868_v29 = vpop.f32.mrf.mxu1 }
 0x361   : > { %9975 = vst [vmem:[#allocation45_spill] sm:$0xff] %v8868_v29  ;;  %v7177_v43 = vld [vmem:[#allocation2 + $0x48] sm:$0xff]   ;;  %v4904_v42 = vsel %vm2691_vm2, %v4901_v32, %v4903_v55 }
 0x362   : > { %v8871_v14 = vpop.f32.mrf.mxu0  ;;  %6963 = vmatmul.mubr.msk.bf16.gmra.mxu0 %vm2291_vm4, %v4902_v33  ;;  %v6481_v56 = vpop.f32.mrf.mxu1  ;;  %v2709_v33 = vrot.slane %v7177_v43, 1 }
 0x363   : > { %9976 = vst [vmem:[#allocation46_spill] sm:$0xff] %v8871_v14  ;;  %6966 = vmatprep.mubr.msk.bf16.mxu0 %vm7200_vm0, %v9916_v20 }
 0x364   : > { %v6732_v61 = vpop.f32.mrf.mxu0  ;;  %v8877_v63 = vpop.f32.mrf.mxu1  ;;  %6587 = vmatmul.mubr.msk.bf16.gmra.mxu1 %vm2291_vm4, %v2708_v37  ;;  %v2710_v21 = vsel %vm2691_vm2, %v2707_v6, %v2709_v33 }
 0x365   : > { %9977 = vst [vmem:[#allocation47_spill] sm:$0xff] %v8877_v63  ;;  %6590 = vmatprep.mubr.msk.bf16.mxu1 %vm7200_vm0, %v9916_v20 }
 0x366   : > { %v8883_v8 = vpop.f32.mrf.mxu0  ;;  %v6484_v40 = vpop.f32.mrf.mxu1 }
 0x367   : > { %9978 = vst [vmem:[#allocation48_spill] sm:$0xff] %v8883_v8  ;;  %v4905_v40 = vrot.slane %v8478_v50, 1 }
 0x368   : > { %v6733_v56 = vpop.f32.mrf.mxu0  ;;  %v8885_v14 = vpop.f32.mrf.mxu1 }
 0x369   : > { %9979 = vst [vmem:[#allocation49_spill] sm:$0xff] %v8885_v14  ;;  %v2711_v56 = vrot.slane %v8324_v1, 1  ;;  %v4907_v1 = vrot.slane %v8484_v24, 1 }
 0x36a   : > { %v8888_v61 = vpop.f32.mrf.mxu0  ;;  %6967 = vmatmul.mubr.msk.bf16.gmra.mxu0 %vm2291_vm4, %v4904_v42  ;;  %v6485_v37 = vpop.f32.mrf.mxu1 }
 0x36b   : > { %9980 = vst [vmem:[#allocation50_spill] sm:$0xff] %v8888_v61  ;;  %6970 = vmatprep.mubr.msk.bf16.mxu0 %vm7200_vm0, %v9916_v20  ;;  %v4906_v61 = vsel %vm2691_vm2, %v4903_v55, %v4905_v40  ;;  %v2712_v50 = vsel %vm2691_vm2, %v2709_v33, %v2711_v56  ;;  %v4908_v33 = vsel %vm2691_vm2, %v4905_v40, %v4907_v1 }
 0x36c   : > { %v6736_v15 = vpop.f32.mrf.mxu0  ;;  %v8894_v8 = vpop.f32.mrf.mxu1  ;;  %6591 = vmatmul.mubr.msk.bf16.gmra.mxu1 %vm2291_vm4, %v2710_v21 }
 0x36d   : > { %9981 = vst [vmem:[#allocation51_spill] sm:$0xff] %v8894_v8  ;;  %6594 = vmatprep.mubr.msk.bf16.mxu1 %vm7200_vm0, %v9916_v20 }
 0x36e   : > { %v8900_v32 = vpop.f32.mrf.mxu0  ;;  %v6488_v43 = vpop.f32.mrf.mxu1 }
 0x36f   : > { %9982 = vst [vmem:[#allocation52_spill] sm:$0xff] %v8900_v32 }
 0x370   : > { %v6737_v42 = vpop.f32.mrf.mxu0  ;;  %v2486_v37 = vpop.f32.mrf.mxu1 }
 0x372   : > { %v8904_v6 = vpop.f32.mrf.mxu0  ;;  %6971 = vmatmul.mubr.msk.bf16.gmra.mxu0 %vm2291_vm4, %v4906_v61  ;;  %v6489_v15 = vpop.f32.mrf.mxu1  ;;  %v2713_v61 = vrot.slane %v8341_v7, 1  ;;  %v4909_v7 = vrot.slane %v8489_v46, 1 }
 0x373   : > { %9983 = vst [vmem:[#allocation53_spill] sm:$0xff] %v8904_v6  ;;  %6974 = vmatprep.mubr.msk.bf16.mxu0 %vm7200_vm0, %v9916_v20 }
 0x374   : > { %v6740_v21 = vpop.f32.mrf.mxu0  ;;  %v8910_v34 = vpop.f32.mrf.mxu1  ;;  %6595 = vmatmul.mubr.msk.bf16.gmra.mxu1 %vm2291_vm4, %v2712_v50  ;;  %v2714_v24 = vsel %vm2691_vm2, %v2711_v56, %v2713_v61 }
 0x375   : > { %6598 = vmatprep.mubr.msk.bf16.mxu1 %vm7200_vm0, %v9916_v20 }
 0x376   : > { %v8916_v55 = vpop.f32.mrf.mxu0  ;;  %v6496_v43 = vpop.f32.mrf.mxu1 }
 0x377   : > { %9984 = vst [vmem:[#allocation54_spill] sm:$0xff] %v8916_v55 }
 0x378   : > { %v6741_v42 = vpop.f32.mrf.mxu0  ;;  %v8919_v37 = vpop.f32.mrf.mxu1 }
 0x379   : > { %v2715_v42 = vrot.slane %v8360_v28, 1 }
 0x37a   : > { %v8922_v15 = vpop.f32.mrf.mxu0  ;;  %6975 = vmatmul.mubr.msk.bf16.gmra.mxu0 %vm2291_vm4, %v4908_v33  ;;  %v6497_v50 = vpop.f32.mrf.mxu1 }
 0x37b   : > { %9985 = vst [vmem:[#allocation55_spill] sm:$0xff] %v8922_v15  ;;  %6978 = vmatprep.mubr.msk.bf16.mxu0 %vm7200_vm0, %v9916_v20  ;;  %v4910_v15 = vsel %vm2691_vm2, %v4907_v1, %v4909_v7  ;;  %v2716_v46 = vsel %vm2691_vm2, %v2713_v61, %v2715_v42 }
 0x37c   : > { %v6744_v21 = vpop.f32.mrf.mxu0  ;;  %v8928_v55 = vpop.f32.mrf.mxu1  ;;  %6599 = vmatmul.mubr.msk.bf16.gmra.mxu1 %vm2291_vm4, %v2714_v24 }
 0x37d   : > { %6602 = vmatprep.mubr.msk.bf16.mxu1 %vm7200_vm0, %v9916_v20 }
 0x37e   : > { %v3751_v40 = vpop.f32.mrf.mxu0  ;;  %v6500_v43 = vpop.f32.mrf.mxu1 }
 0x37f   : > { %v4911_v43 = vrot.slane %v8495_v48, 1  ;;  %v4913_v48 = vrot.slane %v8506_v11, 1 }
 0x380   : > { %v6745_v33 = vpop.f32.mrf.mxu0  ;;  %v8935_v50 = vpop.f32.mrf.mxu1 }
 0x382   : > { %v8938_v56 = vpop.f32.mrf.mxu0  ;;  %6979 = vmatmul.mubr.msk.bf16.gmra.mxu0 %vm2291_vm4, %v4910_v15  ;;  %v6501_v21 = vpop.f32.mrf.mxu1 }
 0x383   : > { %9986 = vst [vmem:[#allocation56_spill] sm:$0xff] %v8938_v56  ;;  %6982 = vmatprep.mubr.msk.bf16.mxu0 %vm7200_vm0, %v9916_v20  ;;  %v4912_v21 = vsel %vm2691_vm2, %v4909_v7, %v4911_v43  ;;  %v7178_v56 = vld [vmem:[#allocation2 + $0x68] sm:$0xff]  }
 0x384   : > { %v6816_v24 = vpop.f32.mrf.mxu0  ;;  %v8944_v40 = vpop.f32.mrf.mxu1  ;;  %6603 = vmatmul.mubr.msk.bf16.gmra.mxu1 %vm2291_vm4, %v2716_v46  ;;  %v2717_v61 = vrot.slane %v7178_v56, 1 }
 0x385   : > { %6606 = vmatprep.mubr.msk.bf16.mxu1 %vm7200_vm0, %v9916_v20 }
 0x386   : > { %v8949_v28 = vpop.f32.mrf.mxu0  ;;  %v6504_v1 = vpop.f32.mrf.mxu1 }
 0x387   : > { %9987 = vst [vmem:[#allocation57_spill] sm:$0xff] %v8949_v28  ;;  %v2718_v28 = vsel %vm2691_vm2, %v2715_v42, %v2717_v61  ;;  %v4914_v42 = vsel %vm2691_vm2, %v4911_v43, %v4913_v48 }
 0x388   : > { %v6817_v15 = vpop.f32.mrf.mxu0  ;;  %v8952_v33 = vpop.f32.mrf.mxu1 }
 0x389   : > { %v7179_v15 = vld [vmem:[#allocation2 + $0x70] sm:$0xff]  }
 0x38a   : > { %v8955_v24 = vpop.f32.mrf.mxu0  ;;  %6983 = vmatmul.mubr.msk.bf16.gmra.mxu0 %vm2291_vm4, %v4912_v21  ;;  %v6505_v46 = vpop.f32.mrf.mxu1  ;;  %v2719_v21 = vrot.slane %v7179_v15, 1 }
 0x38b   : > { %9988 = vst [vmem:[#allocation58_spill] sm:$0xff] %v8955_v24  ;;  %6986 = vmatprep.mubr.msk.bf16.mxu0 %vm7200_vm0, %v9916_v20 }
 0x38c   : > { %v6820_v1 = vpop.f32.mrf.mxu0  ;;  %v8961_v6 = vpop.f32.mrf.mxu1  ;;  %6607 = vmatmul.mubr.msk.bf16.gmra.mxu1 %vm2291_vm4, %v2718_v28  ;;  %v2720_v28 = vsel %vm2691_vm2, %v2717_v61, %v2719_v21 }
 0x38d   : > { %6610 = vmatprep.mubr.msk.bf16.mxu1 %vm7200_vm0, %v9916_v20  ;;  %v8972_v1 = vld [vmem:[#allocation2 + $0x78] sm:$0xff]  }
 0x38e   : > { %v8967_v7 = vpop.f32.mrf.mxu0  ;;  %v6508_v56 = vpop.f32.mrf.mxu1  ;;  %9990 = vst [vmem:[#allocation60_spill] sm:$0xff] %v8972_v1  ;;  %v9882_v15 = vrot.slane %v8972_v1, 1 }
 0x38f   : > { %9989 = vst [vmem:[#allocation59_spill] sm:$0xff] %v8967_v7 }
 0x390   : > { %v6821_v46 = vpop.f32.mrf.mxu0  ;;  %v8969_v24 = vpop.f32.mrf.mxu1  ;;  %v4916_v61 = vsel %vm2691_vm2, %v4913_v48, %v9882_v15 }
 0x392   : > { %v8974_v32 = vpop.f32.mrf.mxu0  ;;  %6987 = vmatmul.mubr.msk.bf16.gmra.mxu0 %vm2291_vm4, %v4914_v42  ;;  %v6509_v11 = vpop.f32.mrf.mxu1  ;;  %v7180_v42 = vld [vmem:[#allocation2 + $0x78] ss:$0 sps:$4 sm:$0x11]  }
 0x393   : > { %9991 = vst [vmem:[#allocation61_spill] sm:$0xff] %v8974_v32  ;;  %6990 = vmatprep.mubr.msk.bf16.mxu0 %vm7200_vm0, %v9916_v20  ;;  %v2721_v11 = vrot.slane %v7180_v42, 1 }
 0x394   : > { %v6824_v56 = vpop.f32.mrf.mxu0  ;;  %v8980_v7 = vpop.f32.mrf.mxu1  ;;  %6611 = vmatmul.mubr.msk.bf16.gmra.mxu1 %vm2291_vm4, %v2720_v28 }
 0x395   : > { %6614 = vmatprep.mubr.msk.bf16.mxu1 %vm7200_vm0, %v9916_v20  ;;  %v2722_v47 = vsel %vm2691_vm2, %v2719_v21, %v2721_v11  ;;  %v7145_v21 = vld [vmem:[%s9872_s3 + $0x58] sm:$0xff]  }
 0x396   : > { %v8986_v43 = vpop.f32.mrf.mxu0  ;;  %v6512_v46 = vpop.f32.mrf.mxu1 }
 0x397   : > { %9992 = vst [vmem:[#allocation62_spill] sm:$0xff] %v8986_v43 }
 0x398   : > { %v6825_v32 = vpop.f32.mrf.mxu0  ;;  %v8988_v23 = vpop.f32.mrf.mxu1 }
 0x39a   : > { %v8993_v56 = vpop.f32.mrf.mxu0  ;;  %6991 = vmatmul.mubr.msk.bf16.gmra.mxu0 %vm2291_vm4, %v4916_v61  ;;  %v6513_v28 = vpop.f32.mrf.mxu1 }
 0x39b   : > { %9993 = vst [vmem:[#allocation63_spill] sm:$0xff] %v8993_v56  ;;  %6994 = vmatprep.mubr.msk.bf16.mxu0 %vm7200_vm0, %v9916_v20  ;;  %v7144_v28 = vld [vmem:[#allocation2 + $0x8] sm:$0xff]  }
 0x39c   : > { %v6828_v46 = vpop.f32.mrf.mxu0  ;;  %v8999_v43 = vpop.f32.mrf.mxu1  ;;  %6615 = vmatmul.mubr.msk.bf16.gmra.mxu1 %vm2291_vm4, %v2722_v47  ;;  %v7153_v47 = vld [vmem:[%s9872_s3 + $0x50] sm:$0xff]  }
 0x39d   : > { %6622 = vmatprep.mubr.msk.bf16.mxu1 %vm7200_vm0, %v9916_v20 }
 0x39e   : > { %v9004_v32 = vpop.f32.mrf.mxu0  ;;  %v6516_v48 = vpop.f32.mrf.mxu1 }
 0x39f   : > { %9994 = vst [vmem:[#allocation64_spill] sm:$0xff] %v9004_v32 }
 0x3a0   : > { %v6829_v42 = vpop.f32.mrf.mxu0  ;;  %v9006_v15 = vpop.f32.mrf.mxu1 }
 0x3a2   : > { %v9011_v11 = vpop.f32.mrf.mxu0  ;;  %v6517_v61 = vpop.f32.mrf.mxu1 }
 0x3a3   : > { %9995 = vst [vmem:[#allocation65_spill] sm:$0xff] %v9011_v11 }
 0x3a4   : > { %v6832_v46 = vpop.f32.mrf.mxu0  ;;  %v9013_v56 = vpop.f32.mrf.mxu1  ;;  %6623 = vmatmul.mubr.msk.bf16.vlgmr.msra.gmra.mxu1 %vm2291_vm4, %v7144_v28 }
 0x3a5   : > { %6747 = vmatpush3.bf16.msra.mxu1 %v7145_v21  ;;  %6626 = vmatprep.mubr.msk.bf16.mxu1 %vm7200_vm0, %v9916_v20  ;;  %v7146_v21 = vld [vmem:[#allocation2 + $0x10] sm:$0xff]  }
 0x3a6   : > { %v9021_v48 = vpop.f32.mrf.mxu0  ;;  %v6520_v42 = vpop.f32.mrf.mxu1  ;;  %6748 = vmatprep.subr.bf16.mxu1 %v9916_v20 }
 0x3a7   : > { %9996 = vst [vmem:[#allocation66_spill] sm:$0xff] %v9021_v48 }
 0x3a8   : > { %v6833_v61 = vpop.f32.mrf.mxu0  ;;  %v9024_v11 = vpop.f32.mrf.mxu1 }
 0x3a9   : > { %6749 = vmatpush3.bf16.msra.mxu1 %v7153_v47 }
 0x3aa   : > { %v9026_v46 = vpop.f32.mrf.mxu0  ;;  %v6521_v28 = vpop.f32.mrf.mxu1  ;;  %6874 = vmatprep.subr.bf16.mxu1 %v9916_v20 }
 0x3ab   : > { %9997 = vst [vmem:[#allocation67_spill] sm:$0xff] %v9026_v46  ;;  %v7147_v46 = vld [vmem:[#allocation2 + $0x18] sm:$0xff]  }
 0x3ac   : > { %v6836_v32 = vpop.f32.mrf.mxu0  ;;  %v9029_v13 = vpop.f32.mrf.mxu1  ;;  %6627 = vmatmul.mubr.msk.bf16.gmra.mxu1 %vm2291_vm4, %v7146_v21 }
 0x3ad   : > { %6630 = vmatprep.mubr.msk.bf16.mxu1 %vm7200_vm0, %v9916_v20 }
 0x3ae   : > { %v9034_v42 = vpop.f32.mrf.mxu0  ;;  %v6524_v61 = vpop.f32.mrf.mxu1 }
 0x3af   : > { %9998 = vst [vmem:[#allocation68_spill] sm:$0xff] %v9034_v42 }
 0x3b0   : > { %v6837_v48 = vpop.f32.mrf.mxu0  ;;  %v9036_v22 = vpop.f32.mrf.mxu1 }
 0x3b2   : > { %v9038_v47 = vpop.f32.mrf.mxu0  ;;  %v6525_v28 = vpop.f32.mrf.mxu1 }
 0x3b3   : > { %9999 = vst [vmem:[#allocation69_spill] sm:$0xff] %v9038_v47  ;;  %v7148_v47 = vld [vmem:[#allocation2 + $0x20] sm:$0xff]  }
 0x3b4   : > { %v6840_v1 = vpop.f32.mrf.mxu0  ;;  %v9040_v54 = vpop.f32.mrf.mxu1  ;;  %6631 = vmatmul.mubr.msk.bf16.gmra.mxu1 %vm2291_vm4, %v7147_v46 }
 0x3b5   : > { %6634 = vmatprep.mubr.msk.bf16.mxu1 %vm7200_vm0, %v9916_v20 }
 0x3b6   : > { %v9045_v32 = vpop.f32.mrf.mxu0  ;;  %v6528_v21 = vpop.f32.mrf.mxu1 }
 0x3b7   : > { %10000 = vst [vmem:[#allocation70_spill] sm:$0xff] %v9045_v32 }
 0x3b8   : > { %v6841_v42 = vpop.f32.mrf.mxu0  ;;  %v9047_v61 = vpop.f32.mrf.mxu1 }
 0x3ba   : > { %v9049_v48 = vpop.f32.mrf.mxu0  ;;  %v6529_v0 = vpop.f32.mrf.mxu1 }
 0x3bb   : > { %10001 = vst [vmem:[#allocation71_spill] sm:$0xff] %v9049_v48  ;;  %v7149_v48 = vld [vmem:[#allocation2 + $0x28] sm:$0xff]  }
 0x3bc   : > { %v6844_v28 = vpop.f32.mrf.mxu0  ;;  %v9051_v17 = vpop.f32.mrf.mxu1  ;;  %6635 = vmatmul.mubr.msk.bf16.gmra.mxu1 %vm2291_vm4, %v7148_v47 }
 0x3bd   : > { %6638 = vmatprep.mubr.msk.bf16.mxu1 %vm7200_vm0, %v9916_v20 }
 0x3be   : > { %v9056_v1 = vpop.f32.mrf.mxu0  ;;  %v6532_v46 = vpop.f32.mrf.mxu1 }
 0x3bf   : > { %10002 = vst [vmem:[#allocation72_spill] sm:$0xff] %v9056_v1 }
 0x3c0   : > { %v6845_v32 = vpop.f32.mrf.mxu0  ;;  %v9058_v21 = vpop.f32.mrf.mxu1 }
 0x3c2   : > { %v9060_v42 = vpop.f32.mrf.mxu0  ;;  %v6533_v19 = vpop.f32.mrf.mxu1 }
 0x3c3   : > { %10003 = vst [vmem:[#allocation73_spill] sm:$0xff] %v9060_v42  ;;  %v7150_v42 = vld [vmem:[#allocation2 + $0x30] sm:$0xff]  }
 0x3c4   : > { %v6848_v0 = vpop.f32.mrf.mxu0  ;;  %v9062_v8 = vpop.f32.mrf.mxu1  ;;  %6639 = vmatmul.mubr.msk.bf16.gmra.mxu1 %vm2291_vm4, %v7149_v48 }
 0x3c5   : > { %6642 = vmatprep.mubr.msk.bf16.mxu1 %vm7200_vm0, %v9916_v20 }
 0x3c6   : > { %v9067_v47 = vpop.f32.mrf.mxu0  ;;  %v6536_v28 = vpop.f32.mrf.mxu1 }
 0x3c7   : > { %10004 = vst [vmem:[#allocation74_spill] sm:$0xff] %v9067_v47 }
 0x3c8   : > { %v6849_v1 = vpop.f32.mrf.mxu0  ;;  %v9069_v46 = vpop.f32.mrf.mxu1 }
 0x3ca   : > { %v9071_v32 = vpop.f32.mrf.mxu0  ;;  %v6537_v14 = vpop.f32.mrf.mxu1 }
 0x3cb   : > { %10005 = vst [vmem:[#allocation75_spill] sm:$0xff] %v9071_v32  ;;  %v7151_v32 = vld [vmem:[#allocation2 + $0x38] sm:$0xff]  }
 0x3cc   : > { %v6852_v19 = vpop.f32.mrf.mxu0  ;;  %v9073_v2 = vpop.f32.mrf.mxu1  ;;  %6643 = vmatmul.mubr.msk.bf16.gmra.mxu1 %vm2291_vm4, %v7150_v42 }
 0x3cd   : > { %6646 = vmatprep.mubr.msk.bf16.mxu1 %vm7200_vm0, %v9916_v20 }
 0x3ce   : > { %v9078_v48 = vpop.f32.mrf.mxu0  ;;  %v6540_v0 = vpop.f32.mrf.mxu1 }
 0x3cf   : > { %10006 = vst [vmem:[#allocation76_spill] sm:$0xff] %v9078_v48 }
 0x3d0   : > { %v6853_v47 = vpop.f32.mrf.mxu0  ;;  %v9080_v28 = vpop.f32.mrf.mxu1 }
 0x3d2   : > { %v9082_v1 = vpop.f32.mrf.mxu0  ;;  %v6541_v63 = vpop.f32.mrf.mxu1 }
 0x3d3   : > { %10007 = vst [vmem:[#allocation77_spill] sm:$0xff] %v9082_v1  ;;  %v7152_v1 = vld [vmem:[#allocation2 + $0x40] sm:$0xff]  }
 0x3d4   : > { %v6856_v14 = vpop.f32.mrf.mxu0  ;;  %v9084_v29 = vpop.f32.mrf.mxu1  ;;  %6647 = vmatmul.mubr.msk.bf16.gmra.mxu1 %vm2291_vm4, %v7151_v32 }
 0x3d5   : > { %10008 = vst [vmem:[#allocation78_spill] sm:$0xff] %v9084_v29  ;;  %6650 = vmatprep.mubr.msk.bf16.mxu1 %vm7200_vm0, %v9916_v20 }
 0x3d6   : > { %v9089_v42 = vpop.f32.mrf.mxu0  ;;  %v6544_v19 = vpop.f32.mrf.mxu1 }
 0x3d7   : > { %10009 = vst [vmem:[#allocation79_spill] sm:$0xff] %v9089_v42 }
 0x3d8   : > { %v6857_v48 = vpop.f32.mrf.mxu0  ;;  %v9091_v0 = vpop.f32.mrf.mxu1 }
 0x3d9   : > { %10010 = vst [vmem:[#allocation80_spill] sm:$0xff] %v9091_v0 }
 0x3da   : > { %v9093_v47 = vpop.f32.mrf.mxu0  ;;  %v6545_v52 = vpop.f32.mrf.mxu1 }
 0x3db   : > { %10011 = vst [vmem:[#allocation81_spill] sm:$0xff] %v9093_v47  ;;  %v7154_v47 = vld [vmem:[#allocation2 + $0x48] sm:$0xff]  }
 0x3dc   : > { %v6860_v63 = vpop.f32.mrf.mxu0  ;;  %v9095_v53 = vpop.f32.mrf.mxu1  ;;  %6651 = vmatmul.mubr.msk.bf16.gmra.mxu1 %vm2291_vm4, %v7152_v1 }
 0x3dd   : > { %10012 = vst [vmem:[#allocation82_spill] sm:$0xff] %v9095_v53  ;;  %6654 = vmatprep.mubr.msk.bf16.mxu1 %vm7200_vm0, %v9916_v20  ;;  %v7155_v53 = vld [vmem:[#allocation2 + $0x50] sm:$0xff]  }
 0x3de   : > { %v9100_v32 = vpop.f32.mrf.mxu0  ;;  %v6548_v14 = vpop.f32.mrf.mxu1 }
 0x3df   : > { %10013 = vst [vmem:[#allocation83_spill] sm:$0xff] %v9100_v32 }
 0x3e0   : > { %v6861_v42 = vpop.f32.mrf.mxu0  ;;  %v9102_v19 = vpop.f32.mrf.mxu1 }
 0x3e1   : > { %10014 = vst [vmem:[#allocation84_spill] sm:$0xff] %v9102_v19 }
 0x3e2   : > { %v9104_v48 = vpop.f32.mrf.mxu0  ;;  %v6549_v0 = vpop.f32.mrf.mxu1 }
 0x3e3   : > { %10015 = vst [vmem:[#allocation85_spill] sm:$0xff] %v9104_v48  ;;  %v2566_v0 = vadd.f32 %v8910_v34, %v8652_v35 }
 0x3e4   : > { %v6864_v52 = vpop.f32.mrf.mxu0  ;;  %v9106_v29 = vpop.f32.mrf.mxu1  ;;  %6655 = vmatmul.mubr.msk.bf16.gmra.mxu1 %vm2291_vm4, %v7154_v47 }
 0x3e5   : > { %6658 = vmatprep.mubr.msk.bf16.mxu1 %vm7200_vm0, %v9916_v20 }
 0x3e6   : > { %v9111_v1 = vpop.f32.mrf.mxu0  ;;  %v6552_v63 = vpop.f32.mrf.mxu1 }
 0x3e7   : > { %10016 = vst [vmem:[#allocation86_spill] sm:$0xff] %v9111_v1  ;;  %v2569_v63 = vadd.f32 %v8919_v37, %v8659_v41 }
 0x3e8   : > { %v6865_v32 = vpop.f32.mrf.mxu0  ;;  %v2680_v14 = vpop.f32.mrf.mxu1 }
 0x3ea   : > { %v9113_v42 = vpop.f32.mrf.mxu0  ;;  %v6553_v19 = vpop.f32.mrf.mxu1 }
 0x3eb   : > { %10017 = vst [vmem:[#allocation87_spill] sm:$0xff] %v9113_v42 }
 0x3ec   : > { %v6868_v52 = vpop.f32.mrf.mxu0  ;;  %v2814_v48 = vpop.f32.mrf.mxu1  ;;  %6659 = vmatmul.mubr.msk.bf16.gmra.mxu1 %vm2291_vm4, %v7155_v53  ;;  %v2574_v53 = vadd.f32 %v8928_v55, %v8668_v5  ;;  %v7157_v55 = vld [vmem:[#allocation2 + $0x60] sm:$0xff]  }
 0x3ed   : > { %v9118_v47 = vadd.f32 %v2814_v48, %v2566_v0  ;;  %6662 = vmatprep.mubr.msk.bf16.mxu1 %vm7200_vm0, %v9916_v20  ;;  %v7156_v52 = vld [vmem:[#allocation2 + $0x58] sm:$0xff]  }
 0x3ee   : > { %v9122_v1 = vpop.f32.mrf.mxu0  ;;  %v6560_v32 = vpop.f32.mrf.mxu1 }
 0x3ef   : > { %10018 = vst [vmem:[#allocation88_spill] sm:$0xff] %v9122_v1  ;;  %v2577_v32 = vadd.f32 %v8935_v50, %v8672_v12 }
 0x3f0   : > { %v6869_v19 = vpop.f32.mrf.mxu0  ;;  %v2817_v14 = vpop.f32.mrf.mxu1 }
 0x3f1   : > { %v9126_v42 = vadd.f32 %v2817_v14, %v2569_v63 }
 0x3f2   : > { %v9128_v34 = vpop.f32.mrf.mxu0  ;;  %v6561_v35 = vpop.f32.mrf.mxu1 }
 0x3f3   : > { %10019 = vst [vmem:[#allocation89_spill] sm:$0xff] %v9128_v34 }
 0x3f4   : > { %v6872_v48 = vpop.f32.mrf.mxu0  ;;  %v2822_v0 = vpop.f32.mrf.mxu1  ;;  %6663 = vmatmul.mubr.msk.bf16.gmra.mxu1 %vm2291_vm4, %v7156_v52  ;;  %v2582_v52 = vadd.f32 %v8944_v40, %v8685_v16 }
 0x3f5   : > { %v9133_v1 = vadd.f32 %v2822_v0, %v2574_v53  ;;  %6666 = vmatprep.mubr.msk.bf16.mxu1 %vm7200_vm0, %v9916_v20 }
 0x3f6   : > { %v4375_v41 = vpop.f32.mrf.mxu0  ;;  %v6564_v37 = vpop.f32.mrf.mxu1 }
 0x3f7   : > { %v2585_v41 = vadd.f32 %v8952_v33, %v8694_v44 }
 0x3f8   : > { %v6873_v63 = vpop.f32.mrf.mxu0  ;;  %v2825_v19 = vpop.f32.mrf.mxu1 }
 0x3f9   : > { %v9139_v14 = vadd.f32 %v2825_v19, %v2577_v32  ;;  %v7158_v19 = vld [vmem:[#allocation2 + $0x68] sm:$0xff]  }
 0x3fa   : > { %v9141_v35 = vpop.f32.mrf.mxu0  ;;  %v6565_v5 = vpop.f32.mrf.mxu1 }
 0x3fb   : > { %v2590_v5 = vadd.f32 %v8961_v6, %v8700_v25 }
 0x3fc   : > { %v6944_v53 = vpop.f32.mrf.mxu0  ;;  %v2830_v48 = vpop.f32.mrf.mxu1  ;;  %6667 = vmatmul.mubr.msk.bf16.gmra.mxu1 %vm2291_vm4, %v7157_v55 }
 0x3fd   : > { %v9146_v0 = vadd.f32 %v2830_v48, %v2582_v52  ;;  %6670 = vmatprep.mubr.msk.bf16.mxu1 %vm7200_vm0, %v9916_v20  ;;  %v2593_v48 = vadd.f32 %v8969_v24, %v8709_v51 }
 0x3fe   : > { %v9150_v12 = vpop.f32.mrf.mxu0  ;;  %v6568_v50 = vpop.f32.mrf.mxu1 }
 0x400   : > { %v6945_v37 = vpop.f32.mrf.mxu0  ;;  %v2833_v32 = vpop.f32.mrf.mxu1 }
 0x401   : > { %v9154_v63 = vadd.f32 %v2833_v32, %v2585_v41  ;;  %v7159_v32 = vld [vmem:[#allocation2 + $0x70] sm:$0xff]  }
 0x402   : > { %v9156_v16 = vpop.f32.mrf.mxu0  ;;  %v6569_v40 = vpop.f32.mrf.mxu1 }
 0x403   : > { %v2598_v40 = vadd.f32 %v8980_v7, %v8715_v10 }
 0x404   : > { %v6948_v55 = vpop.f32.mrf.mxu0  ;;  %v2838_v52 = vpop.f32.mrf.mxu1  ;;  %6671 = vmatmul.mubr.msk.bf16.gmra.mxu1 %vm2291_vm4, %v7158_v19 }
 0x405   : > { %v9161_v53 = vadd.f32 %v2838_v52, %v2590_v5  ;;  %6674 = vmatprep.mubr.msk.bf16.mxu1 %vm7200_vm0, %v9916_v20  ;;  %v2601_v52 = vadd.f32 %v8988_v23, %v8724_v58  ;;  %v7181_v23 = vld [vmem:[#allocation2 + $0xc] sm:$0xf] }
 0x406   : > { %v9165_v44 = vpop.f32.mrf.mxu0  ;;  %v6572_v33 = vpop.f32.mrf.mxu1 }
 0x408   : > { %v6949_v50 = vpop.f32.mrf.mxu0  ;;  %v2841_v41 = vpop.f32.mrf.mxu1 }
 0x409   : > { %v9169_v37 = vadd.f32 %v2841_v41, %v2593_v48  ;;  %v7160_v50 = vld [vmem:[#allocation2 + $0x78] sm:$0xff]  }
 0x40a   : > { %v9171_v25 = vpop.f32.mrf.mxu0  ;;  %v6573_v6 = vpop.f32.mrf.mxu1 }
 0x40b   : > { %v2606_v6 = vadd.f32 %v8999_v43, %v8733_v57 }
 0x40c   : > { %v6952_v19 = vpop.f32.mrf.mxu0  ;;  %v2846_v5 = vpop.f32.mrf.mxu1  ;;  %6675 = vmatmul.mubr.msk.bf16.gmra.mxu1 %vm2291_vm4, %v7159_v32 }
 0x40d   : > { %v9176_v55 = vadd.f32 %v2846_v5, %v2598_v40  ;;  %6678 = vmatprep.mubr.msk.bf16.mxu1 %vm7200_vm0, %v9916_v20  ;;  %v3783_v19 = vld [vmem:[#allocation2 + $0x8] sm:$0xe] }
 0x40e   : > { %v9180_v51 = vpop.f32.mrf.mxu0  ;;  %v6576_v24 = vpop.f32.mrf.mxu1  ;;  %v5844_v58 = vcombine.low %v3783_v19, %v7181_v23  ;;  %v2614_v23 = vadd.f32 %v9013_v56, %v8751_v62  ;;  %v2617_v62 = vadd.f32 %v9024_v11, %v8763_v59  ;;  %v7183_v56 = vld [vmem:[#allocation2 + $0x18] sm:$0xff]  }
 0x410   : > { %v6953_v33 = vpop.f32.mrf.mxu0  ;;  %v2849_v48 = vpop.f32.mrf.mxu1 }
 0x411   : > { %v9184_v41 = vadd.f32 %v2849_v48, %v2601_v52  ;;  %v2609_v33 = vadd.f32 %v9006_v15, %v8740_v60  ;;  %v7182_v48 = vld [vmem:[#allocation2 + $0x10] sm:$0xff]  }
 0x412   : > { %v9186_v10 = vpop.f32.mrf.mxu0  ;;  %v6577_v7 = vpop.f32.mrf.mxu1  ;;  %v3792_v57 = vrot.slane %v7182_v48, 1 }
 0x414   : > { %v6956_v32 = vpop.f32.mrf.mxu0  ;;  %v2854_v40 = vpop.f32.mrf.mxu1  ;;  %6679 = vmatmul.mubr.msk.bf16.gmra.mxu1 %vm2291_vm4, %v7160_v50  ;;  %v3791_v50 = vrot.slane %v5844_v58, 1  ;;  %v7163_v58 = vld [vmem:[%s9872_s3 + $0x70] sm:$0xff]  }
 0x415   : > { %v9191_v5 = vadd.f32 %v2854_v40, %v2606_v6  ;;  %6750 = vmatprep.mubr.msk.bf16.mxu1 %vm7200_vm0, %v9916_v20  ;;  %v7162_v6 = vld [vmem:[%s9872_s3 + $0x78] sm:$0xff]  }
 0x416   : > { %v9195_v24 = vpop.f32.mrf.mxu0  ;;  %v6580_v52 = vpop.f32.mrf.mxu1 }
 0x417   : > { %v3793_v52 = vsel %vm2691_vm2, %v3791_v50, %v3792_v57 }
 0x418   : > { %v6957_v43 = vpop.f32.mrf.mxu0  ;;  %v2857_v7 = vpop.f32.mrf.mxu1 }
 0x419   : > { %v9199_v32 = vadd.f32 %v2857_v7, %v2609_v33  ;;  %v3794_v7 = vrot.slane %v7183_v56, 1  ;;  %v7184_v56 = vld [vmem:[#allocation2 + $0x20] sm:$0xff]  }
 0x41a   : > { %v9204_v40 = vpop.f32.mrf.mxu0  ;;  %v6581_v19 = vpop.f32.mrf.mxu1 }
 0x41c   : > { %v6960_v60 = vpop.f32.mrf.mxu0  ;;  %v2862_v15 = vpop.f32.mrf.mxu1  ;;  %6751 = vmatmul.mubr.msk.bf16.vlgmr.msra.gmra.mxu1 %vm2291_vm4, %v3793_v52 }
 0x41d   : > { %v9210_v48 = vadd.f32 %v2862_v15, %v2614_v23  ;;  %6875 = vmatpush3.bf16.msra.mxu1 %v7162_v6  ;;  %6754 = vmatprep.mubr.msk.bf16.mxu1 %vm7200_vm0, %v9916_v20  ;;  %v2622_v60 = vadd.f32 %v9029_v13, %v8773_v9  ;;  %v3795_v15 = vsel %vm2691_vm2, %v3792_v57, %v3794_v7 }
 0x41e   : > { %v9217_v33 = vpop.f32.mrf.mxu0  ;;  %v6584_v43 = vpop.f32.mrf.mxu1  ;;  %6876 = vmatprep.subr.bf16.mxu1 %v9916_v20 }
 0x420   : > { %v6961_v50 = vpop.f32.mrf.mxu0  ;;  %v2865_v19 = vpop.f32.mrf.mxu1 }
 0x421   : > { %v9222_v6 = vadd.f32 %v2865_v19, %v2617_v62  ;;  %6877 = vmatpush3.bf16.msra.mxu1 %v7163_v58  ;;  %v2625_v62 = vadd.f32 %v9036_v22, %v8782_v49  ;;  %v3796_v50 = vrot.slane %v7184_v56, 1 }
 0x422   : > { %v9224_v23 = vpop.f32.mrf.mxu0  ;;  %v6585_v52 = vpop.f32.mrf.mxu1 }
 0x424   : > { %v6964_v43 = vpop.f32.mrf.mxu0  ;;  %v2870_v34 = vpop.f32.mrf.mxu1  ;;  %6755 = vmatmul.mubr.msk.bf16.gmra.mxu1 %vm2291_vm4, %v3795_v15 }
 0x425   : > { %v9230_v59 = vadd.f32 %v2870_v34, %v2622_v60  ;;  %6758 = vmatprep.mubr.msk.bf16.mxu1 %vm7200_vm0, %v9916_v20  ;;  %v2630_v34 = vadd.f32 %v9040_v54, %v8791_v45  ;;  %v3797_v60 = vsel %vm2691_vm2, %v3794_v7, %v3796_v50 }
 0x426   : > { %v9234_v11 = vpop.f32.mrf.mxu0  ;;  %v6588_v58 = vpop.f32.mrf.mxu1 }
 0x428   : > { %v6965_v13 = vpop.f32.mrf.mxu0  ;;  %v2873_v9 = vpop.f32.mrf.mxu1 }
 0x429   : > { %v9238_v57 = vadd.f32 %v2873_v9, %v2625_v62  ;;  %v2633_v62 = vadd.f32 %v9047_v61, %v8800_v30  ;;  %v2638_v9 = vadd.f32 %v9051_v17, %v8809_v38 }
 0x42a   : > { %v9240_v19 = vpop.f32.mrf.mxu0  ;;  %v6589_v52 = vpop.f32.mrf.mxu1 }
 0x42b   : > { %v10021_v52 = vrot.slane %v8200_v39, 1 }
 0x42c   : > { %v6968_v15 = vpop.f32.mrf.mxu0  ;;  %v2878_v43 = vpop.f32.mrf.mxu1  ;;  %6759 = vmatmul.mubr.msk.bf16.gmra.mxu1 %vm2291_vm4, %v3797_v60 }
 0x42d   : > { %v9246_v58 = vadd.f32 %v2878_v43, %v2630_v34  ;;  %6762 = vmatprep.mubr.msk.bf16.mxu1 %vm7200_vm0, %v9916_v20  ;;  %v3799_v34 = vsel %vm2691_vm2, %v3796_v50, %v10021_v52  ;;  %v2649_v52 = vadd.f32 %v9069_v46, %v8834_v31 }
 0x42e   : > { %v9250_v22 = vpop.f32.mrf.mxu0  ;;  %v6592_v49 = vpop.f32.mrf.mxu1 }
 0x42f   : > { %v2641_v49 = vadd.f32 %v9058_v21, %v8817_v3 }
 0x430   : > { %v6969_v56 = vpop.f32.mrf.mxu0  ;;  %v2881_v13 = vpop.f32.mrf.mxu1 }
 0x431   : > { %v9254_v54 = vadd.f32 %v2881_v13, %v2633_v62  ;;  %v2646_v56 = vadd.f32 %v9062_v8, %v8826_v36 }
 0x432   : > { %v9256_v45 = vpop.f32.mrf.mxu0  ;;  %v6593_v7 = vpop.f32.mrf.mxu1 }
 0x433   : > { %10020 = vst [vmem:[#allocation90_spill] sm:$0xff] %v9256_v45 }
 0x434   : > { %v6972_v60 = vpop.f32.mrf.mxu0  ;;  %v2886_v15 = vpop.f32.mrf.mxu1  ;;  %6763 = vmatmul.mubr.msk.bf16.gmra.mxu1 %vm2291_vm4, %v3799_v34 }
 0x435   : > { %v9264_v43 = vadd.f32 %v2886_v15, %v2638_v9  ;;  %6766 = vmatprep.mubr.msk.bf16.mxu1 %vm7200_vm0, %v9916_v20 }
 0x436   : > { %v9268_v30 = vpop.f32.mrf.mxu0  ;;  %v6596_v61 = vpop.f32.mrf.mxu1 }
 0x437   : > { %10022 = vst [vmem:[#allocation91_spill] sm:$0xff] %v9268_v30 }
 0x438   : > { %v6973_v17 = vpop.f32.mrf.mxu0  ;;  %v2889_v38 = vpop.f32.mrf.mxu1 }
 0x439   : > { %v9272_v39 = vadd.f32 %v2889_v38, %v2641_v49  ;;  %v2657_v38 = vadd.f32 %v9080_v28, %v8851_v27 }
 0x43a   : > { %v9274_v50 = vpop.f32.mrf.mxu0  ;;  %v6597_v62 = vpop.f32.mrf.mxu1 }
 0x43b   : > { %10023 = vst [vmem:[#allocation92_spill] sm:$0xff] %v9274_v50 }
 0x43c   : > { %v6976_v13 = vpop.f32.mrf.mxu0  ;;  %v2894_v7 = vpop.f32.mrf.mxu1  ;;  %6767 = vmatmul.mubr.msk.bf16.gmra.mxu1 %vm2291_vm4, %v8420_v18  ;;  %v2654_v18 = vadd.f32 %v9073_v2, %v8843_v4 }
 0x43d   : > { %v9280_v9 = vadd.f32 %v2894_v7, %v2646_v56  ;;  %6770 = vmatprep.mubr.msk.bf16.mxu1 %vm7200_vm0, %v9916_v20  ;;  %v10028_v7 = vld [vmem:[#allocation43_spill] sm:$0xff] }
 0x43e   : > { %v9284_v3 = vpop.f32.mrf.mxu0  ;;  %v6600_v21 = vpop.f32.mrf.mxu1 }
 0x43f   : > { %10024 = vst [vmem:[#allocation93_spill] sm:$0xff] %v9284_v3 }
 0x440   : > { %v6977_v34 = vpop.f32.mrf.mxu0  ;;  %v2897_v60 = vpop.f32.mrf.mxu1 }
 0x441   : > { %v9288_v15 = vadd.f32 %v2897_v60, %v2649_v52  ;;  %v10030_v60 = vld [vmem:[#allocation4_spill] sm:$0xff] }
 0x442   : > { %v9290_v36 = vpop.f32.mrf.mxu0  ;;  %v6601_v8 = vpop.f32.mrf.mxu1 }
 0x443   : > { %10025 = vst [vmem:[#allocation94_spill] sm:$0xff] %v9290_v36 }
 0x444   : > { %v6980_v61 = vpop.f32.mrf.mxu0  ;;  %v2902_v49 = vpop.f32.mrf.mxu1  ;;  %6771 = vmatmul.mubr.msk.bf16.gmra.mxu1 %vm2291_vm4, %v8423_v26  ;;  %v10029_v26 = vld [vmem:[#allocation78_spill] sm:$0xff] }
 0x445   : > { %v9296_v17 = vadd.f32 %v2902_v49, %v2654_v18  ;;  %6774 = vmatprep.mubr.msk.bf16.mxu1 %vm7200_vm0, %v9916_v20  ;;  %v2662_v21 = vadd.f32 %v10029_v26, %v10028_v7  ;;  %v10032_v18 = vld [vmem:[#allocation45_spill] sm:$0xff]  ;;  %v10033_v61 = vld [vmem:[#allocation80_spill] sm:$0xff]  ;;  %v10035_v7 = vld [vmem:[#allocation47_spill] sm:$0xff] }
 0x446   : > { %v9300_v31 = vpop.f32.mrf.mxu0  ;;  %v6604_v46 = vpop.f32.mrf.mxu1  ;;  %v2665_v49 = vadd.f32 %v10033_v61, %v10032_v18  ;;  %v10036_v26 = vld [vmem:[#allocation82_spill] sm:$0xff]  ;;  %v10039_v61 = vld [vmem:[#allocation49_spill] sm:$0xff] }
 0x447   : > { %10026 = vst [vmem:[#allocation95_spill] sm:$0xff] %v9300_v31 }
 0x448   : > { %v6981_v62 = vpop.f32.mrf.mxu0  ;;  %v2905_v56 = vpop.f32.mrf.mxu1 }
 0x449   : > { %v9304_v13 = vadd.f32 %v2905_v56, %v2657_v38 }
 0x44a   : > { %v9306_v2 = vpop.f32.mrf.mxu0  ;;  %v6605_v4 = vpop.f32.mrf.mxu1 }
 0x44b   : > { %10027 = vst [vmem:[#allocation96_spill] sm:$0xff] %v9306_v2  ;;  %v10043_v2 = vld [vmem:[#allocation6_spill] sm:$0xff] }
 0x44c   : > { %v6984_v52 = vpop.f32.mrf.mxu0  ;;  %v2910_v34 = vpop.f32.mrf.mxu1  ;;  %6775 = vmatmul.mubr.msk.bf16.gmra.mxu1 %vm2291_vm4, %v10030_v60  ;;  %v10037_v60 = vld [vmem:[#allocation5_spill] sm:$0xff] }
 0x44d   : > { %v9312_v8 = vadd.f32 %v2910_v34, %v2662_v21  ;;  %6778 = vmatprep.mubr.msk.bf16.mxu1 %vm7200_vm0, %v9916_v20  ;;  %v2670_v21 = vadd.f32 %v10036_v26, %v10035_v7 }
 0x44e   : > { %v9316_v27 = vpop.f32.mrf.mxu0  ;;  %v6608_v28 = vpop.f32.mrf.mxu1 }
 0x44f   : > { %10031 = vst [vmem:[#allocation43_spill] sm:$0xff] %v9316_v27 }
 0x450   : > { %v6985_v46 = vpop.f32.mrf.mxu0  ;;  %v2913_v38 = vpop.f32.mrf.mxu1 }
 0x451   : > { %v9320_v62 = vadd.f32 %v2913_v38, %v2665_v49  ;;  %v10040_v49 = vld [vmem:[#allocation84_spill] sm:$0xff] }
 0x452   : > { %v9322_v56 = vpop.f32.mrf.mxu0  ;;  %v6609_v4 = vpop.f32.mrf.mxu1  ;;  %v2673_v46 = vadd.f32 %v10040_v49, %v10039_v61 }
 0x453   : > { %10034 = vst [vmem:[#allocation78_spill] sm:$0xff] %v9322_v56 }
 0x454   : > { %v6988_v52 = vpop.f32.mrf.mxu0  ;;  %v2918_v34 = vpop.f32.mrf.mxu1  ;;  %6779 = vmatmul.mubr.msk.bf16.gmra.mxu1 %vm2291_vm4, %v10037_v60 }
 0x455   : > { %v9328_v27 = vadd.f32 %v2918_v34, %v2670_v21  ;;  %6782 = vmatprep.mubr.msk.bf16.mxu1 %vm7200_vm0, %v9916_v20  ;;  %v10042_v52 = vld [vmem:[#allocation51_spill] sm:$0xff] }
 0x456   : > { %v9332_v28 = vpop.f32.mrf.mxu0  ;;  %v6612_v18 = vpop.f32.mrf.mxu1  ;;  %v2678_v21 = vadd.f32 %v9106_v29, %v10042_v52 }
 0x457   : > { %10038 = vst [vmem:[#allocation4_spill] sm:$0xff] %v9332_v28 }
 0x458   : > { %v6989_v38 = vpop.f32.mrf.mxu0  ;;  %v2921_v4 = vpop.f32.mrf.mxu1 }
 0x459   : > { %v9336_v56 = vadd.f32 %v2921_v4, %v2673_v46 }
 0x45a   : > { %v9338_v7 = vpop.f32.mrf.mxu0  ;;  %v6613_v26 = vpop.f32.mrf.mxu1 }
 0x45b   : > { %10041 = vst [vmem:[#allocation45_spill] sm:$0xff] %v9338_v7  ;;  %v10045_v26 = vld [vmem:[#allocation9_spill] sm:$0xff] }
 0x45c   : > { %v6992_v34 = vpop.f32.mrf.mxu0  ;;  %v2926_v60 = vpop.f32.mrf.mxu1  ;;  %6783 = vmatmul.mubr.msk.bf16.gmra.mxu1 %vm2291_vm4, %v10043_v2 }
 0x45d   : > { %v9344_v28 = vadd.f32 %v2926_v60, %v2678_v21  ;;  %6786 = vmatprep.mubr.msk.bf16.mxu1 %vm7200_vm0, %v9916_v20 }
 0x45e   : > { %v9348_v18 = vpop.f32.mrf.mxu0  ;;  %v6616_v61 = vpop.f32.mrf.mxu1 }
 0x45f   : > { %10044 = vst [vmem:[#allocation80_spill] sm:$0xff] %v9348_v18  ;;  %v10046_v61 = vld [vmem:[#allocation7_spill] sm:$0xff] }
 0x460   : > { %v6993_v49 = vpop.f32.mrf.mxu0  ;;  %v2929_v46 = vpop.f32.mrf.mxu1 }
 0x462   : > { %v6617_v38 = vpop.f32.mrf.mxu1 }
 0x464   : > { %v3161_v4 = vpop.f32.mrf.mxu1  ;;  %6787 = vmatmul.mubr.msk.bf16.gmra.mxu1 %vm2291_vm4, %v10045_v26 }
 0x465   : > { %v9353_v29 = vadd.f32 %v3161_v4, %v9118_v47  ;;  %6790 = vmatprep.mubr.msk.bf16.mxu1 %vm7200_vm0, %v9916_v20  ;;  %v7185_v4 = vld [vmem:[#allocation2 + $0x68] sm:$0xff]  }
 0x466   : > { %v6624_v2 = vpop.f32.mrf.mxu1  ;;  %v3814_v26 = vrot.slane %v7185_v4, 1  ;;  %v7164_v4 = vld [vmem:[#allocation2 + $0x80] sm:$0xff]  }
 0x467   : > { %v10047_v2 = vld [vmem:[#allocation3_spill] sm:$0xff] }
 0x468   : > { %v3164_v52 = vpop.f32.mrf.mxu1 }
 0x469   : > { %v9358_v21 = vadd.f32 %v3164_v52, %v9126_v42  ;;  %v10048_v52 = vrot.slane %v10047_v2, 1 }
 0x46a   : > { %v6625_v34 = vpop.f32.mrf.mxu1 }
 0x46b   : > { %v3815_v34 = vsel %vm2691_vm2, %v10048_v52, %v3814_v26  ;;  %v4917_v52 = vrot.slane %v7164_v4, 1 }
 0x46c   : > { %v3169_v60 = vpop.f32.mrf.mxu1  ;;  %6791 = vmatmul.mubr.msk.bf16.gmra.mxu1 %vm2291_vm4, %v10046_v61  ;;  %v7186_v61 = vld [vmem:[#allocation2 + $0x70] sm:$0xff]  }
 0x46d   : > { %v9363_v49 = vadd.f32 %v3169_v60, %v9133_v1  ;;  %6794 = vmatprep.mubr.msk.bf16.mxu1 %vm7200_vm0, %v9916_v20 }
 0x46e   : > { %v6628_v47 = vpop.f32.mrf.mxu1 }
 0x470   : > { %v3172_v46 = vpop.f32.mrf.mxu1 }
 0x471   : > { %v9368_v38 = vadd.f32 %v3172_v46, %v9139_v14  ;;  %v3816_v14 = vrot.slane %v7186_v61, 1  ;;  %v7187_v61 = vld [vmem:[#allocation2 + $0x78] sm:$0xff]  }
 0x472   : > { %v6629_v42 = vpop.f32.mrf.mxu1 }
 0x473   : > { %v3817_v2 = vsel %vm2691_vm2, %v3814_v26, %v3816_v14 }
 0x474   : > { %v3177_v18 = vpop.f32.mrf.mxu1  ;;  %6795 = vmatmul.mubr.msk.bf16.gmra.mxu1 %vm2291_vm4, %v3815_v34 }
 0x475   : > { %v9375_v1 = vadd.f32 %v3177_v18, %v9146_v0  ;;  %6798 = vmatprep.mubr.msk.bf16.mxu1 %vm7200_vm0, %v9916_v20  ;;  %v10049_v18 = vld [vmem:[#allocation60_spill] sm:$0xff] }
 0x476   : > { %v6632_v60 = vpop.f32.mrf.mxu1  ;;  %v10050_v34 = vrot.slane %v10049_v18, 1 }
 0x478   : > { %v3180_v47 = vpop.f32.mrf.mxu1  ;;  %v4918_v60 = vsel %vm2691_vm2, %v10050_v34, %v4917_v52  ;;  %v7188_v34 = vld [vmem:[#allocation2 + $0x80] ss:$0 sps:$4 sm:$0x11]  }
 0x479   : > { %v9380_v46 = vadd.f32 %v3180_v47, %v9154_v63  ;;  %6995 = vmatmul.mubr.msk.bf16.gmra.mxu0 %vm2291_vm4, %v4918_v60  ;;  %v3818_v47 = vrot.slane %v7187_v61, 1  ;;  %v3820_v60 = vrot.slane %v7188_v34, 1 }
 0x47a   : > { %v6633_v42 = vpop.f32.mrf.mxu1  ;;  %6998 = vmatprep.mubr.msk.bf16.mxu0 %vm7200_vm0, %v9916_v20 }
 0x47b   : > { %v4632_v42 = vshll.u32 %v7164_v4, 16  ;;  %v3819_v31 = vsel %vm2691_vm2, %v3816_v14, %v3818_v47 }
 0x47c   : > { %v3185_v7 = vpop.f32.mrf.mxu1  ;;  %6799 = vmatmul.mubr.msk.bf16.gmra.mxu1 %vm2291_vm4, %v3817_v2 }
 0x47d   : > { %v9385_v0 = vadd.f32 %v3185_v7, %v9161_v53  ;;  %6802 = vmatprep.mubr.msk.bf16.mxu1 %vm7200_vm0, %v9916_v20  ;;  %v7165_v7 = vld [vmem:[#allocation2 + $0x88] ss:$0 sps:$4 sm:$0x11]  }
 0x47e   : > { %v6636_v63 = vpop.f32.mrf.mxu1  ;;  %v4919_v18 = vrot.slane %v7165_v7, 1 }
 0x47f   : > { %v9400_v63 = vrot.slane %v4632_v42, 1 }
 0x480   : > { %v3188_v26 = vpop.f32.mrf.mxu1 }
 0x481   : > { %v9396_v53 = vadd.f32 %v3188_v26, %v9169_v37  ;;  %v4920_v37 = vsel %vm2691_vm2, %v4917_v52, %v4919_v18  ;;  %v4636_v26 = vshrl.u32 %v7164_v4, 16 }
 0x482   : > { %v6637_v2 = vpop.f32.mrf.mxu1  ;;  %6999 = vmatmul.mubr.msk.bf16.gmra.mxu0 %vm2291_vm4, %v4920_v37 }
 0x483   : > { %v4640_v2 = vshll.u32 %v7165_v7, 16  ;;  %v4638_v14 = vor.u32 %v4636_v26, %v9400_v63  ;;  %v10051_v7 = vld [vmem:[#allocation8_spill] sm:$0xff] }
 0x484   : > { %v3193_v36 = vpop.f32.mrf.mxu1  ;;  %6803 = vmatmul.mubr.msk.bf16.gmra.mxu1 %vm2291_vm4, %v3819_v31 }
 0x485   : > { %v9403_v61 = vadd.f32 %v3193_v36, %v9176_v55  ;;  %6806 = vmatprep.mubr.msk.bf16.mxu1 %vm7200_vm0, %v9916_v20  ;;  %v4642_v31 = vrot.slane %v4640_v2, 1  ;;  %v3821_v55 = vsel %vm2691_vm2, %v3818_v47, %v3820_v60 }
 0x486   : > { %v6640_v3 = vpop.f32.mrf.mxu1 }
 0x487   : > { %v9415_v36 = vsel %vm2154_vm5, %v4638_v14, %v4642_v31 }
 0x488   : > { %v3196_v50 = vpop.f32.mrf.mxu1 }
 0x489   : > { %v9411_v42 = vadd.f32 %v3196_v50, %v9184_v41 }
 0x48a   : > { %v6641_v34 = vpop.f32.mrf.mxu1 }
 0x48c   : > { %v3201_v30 = vpop.f32.mrf.mxu1  ;;  %6807 = vmatmul.mubr.msk.bf16.gmra.mxu1 %vm2291_vm4, %v3821_v55 }
 0x48d   : > { %v9419_v3 = vadd.f32 %v3201_v30, %v9191_v5  ;;  %6878 = vmatprep.mubr.msk.bf16.mxu1 %vm7200_vm0, %v9916_v20 }
 0x48e   : > { %v6644_v4 = vpop.f32.mrf.mxu1 }
 0x490   : > { %v3204_v52 = vpop.f32.mrf.mxu1 }
 0x491   : > { %v9424_v41 = vadd.f32 %v3204_v52, %v9199_v32  ;;  %v10052_v32 = vld [vmem:[#allocation11_spill] sm:$0xff] }
 0x492   : > { %v6645_v50 = vpop.f32.mrf.mxu1 }
 0x494   : > { %v3209_v47 = vpop.f32.mrf.mxu1  ;;  %6879 = vmatmul.mubr.msk.bf16.vlgmr.msra.gmra.mxu1 %vm2291_vm4, %v10051_v7 }
 0x495   : > { %v9429_v18 = vadd.f32 %v3209_v47, %v9210_v48  ;;  %6882 = vmatprep.mubr.msk.bf16.mxu1 %vm7200_vm0, %v9916_v20 }
 0x496   : > { %v6648_v5 = vpop.f32.mrf.mxu1 }
 0x498   : > { %v3212_v30 = vpop.f32.mrf.mxu1 }
 0x499   : > { %v9434_v60 = vadd.f32 %v3212_v30, %v9222_v6  ;;  %v10053_v6 = vld [vmem:[#allocation12_spill] sm:$0xff] }
 0x49a   : > { %v6649_v37 = vpop.f32.mrf.mxu1 }
 0x49c   : > { %v3217_v26 = vpop.f32.mrf.mxu1  ;;  %6883 = vmatmul.mubr.msk.bf16.gmra.mxu1 %vm2291_vm4, %v10052_v32 }
 0x49d   : > { %v9439_v2 = vadd.f32 %v3217_v26, %v9230_v59  ;;  %6886 = vmatprep.mubr.msk.bf16.mxu1 %vm7200_vm0, %v9916_v20 }
 0x49e   : > { %v6652_v48 = vpop.f32.mrf.mxu1 }
 0x4a0   : > { %v3220_v14 = vpop.f32.mrf.mxu1 }
 0x4a1   : > { %v9444_v31 = vadd.f32 %v3220_v14, %v9238_v57  ;;  %v10054_v57 = vld [vmem:[#allocation13_spill] sm:$0xff] }
 0x4a2   : > { %v6653_v55 = vpop.f32.mrf.mxu1 }
 0x4a4   : > { %v3225_v34 = vpop.f32.mrf.mxu1  ;;  %6887 = vmatmul.mubr.msk.bf16.gmra.mxu1 %vm2291_vm4, %v10053_v6 }
 0x4a5   : > { %v9449_v4 = vadd.f32 %v3225_v34, %v9246_v58  ;;  %6890 = vmatprep.mubr.msk.bf16.mxu1 %vm7200_vm0, %v9916_v20 }
 0x4a6   : > { %v6656_v59 = vpop.f32.mrf.mxu1 }
 0x4a8   : > { %v3228_v52 = vpop.f32.mrf.mxu1 }
 0x4a9   : > { %v9454_v50 = vadd.f32 %v3228_v52, %v9254_v54  ;;  %v10055_v54 = vld [vmem:[#allocation14_spill] sm:$0xff] }
 0x4aa   : > { %v6657_v47 = vpop.f32.mrf.mxu1 }
 0x4ac   : > { %v3233_v7 = vpop.f32.mrf.mxu1  ;;  %6891 = vmatmul.mubr.msk.bf16.gmra.mxu1 %vm2291_vm4, %v10054_v57 }
 0x4ad   : > { %v9459_v5 = vadd.f32 %v3233_v7, %v9264_v43  ;;  %6894 = vmatprep.mubr.msk.bf16.mxu1 %vm7200_vm0, %v9916_v20 }
 0x4ae   : > { %v6660_v58 = vpop.f32.mrf.mxu1 }
 0x4b0   : > { %v3236_v30 = vpop.f32.mrf.mxu1 }
 0x4b1   : > { %v9464_v37 = vadd.f32 %v3236_v30, %v9272_v39  ;;  %v10056_v39 = vld [vmem:[#allocation15_spill] sm:$0xff] }
 0x4b2   : > { %v6661_v26 = vpop.f32.mrf.mxu1 }
 0x4b4   : > { %v3241_v32 = vpop.f32.mrf.mxu1  ;;  %6895 = vmatmul.mubr.msk.bf16.gmra.mxu1 %vm2291_vm4, %v10055_v54 }
 0x4b5   : > { %v9469_v48 = vadd.f32 %v3241_v32, %v9280_v9  ;;  %6898 = vmatprep.mubr.msk.bf16.mxu1 %vm7200_vm0, %v9916_v20 }
 0x4b6   : > { %v6664_v43 = vpop.f32.mrf.mxu1 }
 0x4b8   : > { %v3244_v14 = vpop.f32.mrf.mxu1 }
 0x4b9   : > { %v9474_v55 = vadd.f32 %v3244_v14, %v9288_v15  ;;  %v10057_v15 = vld [vmem:[#allocation16_spill] sm:$0xff] }
 0x4ba   : > { %v6665_v34 = vpop.f32.mrf.mxu1 }
 0x4bc   : > { %v3249_v6 = vpop.f32.mrf.mxu1  ;;  %6899 = vmatmul.mubr.msk.bf16.gmra.mxu1 %vm2291_vm4, %v10056_v39 }
 0x4bd   : > { %v9479_v59 = vadd.f32 %v3249_v6, %v9296_v17  ;;  %6902 = vmatprep.mubr.msk.bf16.mxu1 %vm7200_vm0, %v9916_v20 }
 0x4be   : > { %v6668_v9 = vpop.f32.mrf.mxu1 }
 0x4c0   : > { %v3252_v52 = vpop.f32.mrf.mxu1 }
 0x4c1   : > { %v9484_v47 = vadd.f32 %v3252_v52, %v9304_v13  ;;  %v10058_v13 = vld [vmem:[#allocation17_spill] sm:$0xff] }
 0x4c2   : > { %v6669_v7 = vpop.f32.mrf.mxu1 }
 0x4c4   : > { %v3257_v57 = vpop.f32.mrf.mxu1  ;;  %6903 = vmatmul.mubr.msk.bf16.gmra.mxu1 %vm2291_vm4, %v10057_v15 }
 0x4c5   : > { %v9489_v58 = vadd.f32 %v3257_v57, %v9312_v8  ;;  %6906 = vmatprep.mubr.msk.bf16.mxu1 %vm7200_vm0, %v9916_v20  ;;  %v10060_v57 = vld [vmem:[#allocation10_spill] sm:$0xff] }
 0x4c6   : > { %v6672_v17 = vpop.f32.mrf.mxu1  ;;  %v3754_v15 = vadd.f32 %v10060_v57, %v9353_v29 }
 0x4c8   : > { %v3260_v30 = vpop.f32.mrf.mxu1 }
 0x4c9   : > { %v9494_v26 = vadd.f32 %v3260_v30, %v9320_v62  ;;  %v10059_v62 = vld [vmem:[#allocation18_spill] sm:$0xff] }
 0x4ca   : > { %v6673_v32 = vpop.f32.mrf.mxu1 }
 0x4cb   : > { %v10062_v32 = vld [vmem:[#allocation23_spill] sm:$0xff] }
 0x4cc   : > { %v3265_v54 = vpop.f32.mrf.mxu1  ;;  %6907 = vmatmul.mubr.msk.bf16.gmra.mxu1 %vm2291_vm4, %v10058_v13 }
 0x4cd   : > { %v9499_v43 = vadd.f32 %v3265_v54, %v9328_v27  ;;  %6910 = vmatprep.mubr.msk.bf16.mxu1 %vm7200_vm0, %v9916_v20  ;;  %v3755_v54 = vadd.f32 %v10062_v32, %v9358_v21 }
 0x4ce   : > { %v6676_v8 = vpop.f32.mrf.mxu1 }
 0x4d0   : > { %v3268_v14 = vpop.f32.mrf.mxu1 }
 0x4d1   : > { %v9504_v34 = vadd.f32 %v3268_v14, %v9336_v56  ;;  %v10061_v56 = vld [vmem:[#allocation20_spill] sm:$0xff] }
 0x4d2   : > { %v6677_v6 = vpop.f32.mrf.mxu1 }
 0x4d3   : > { %v10063_v6 = vld [vmem:[#allocation24_spill] sm:$0xff] }
 0x4d4   : > { %v3273_v39 = vpop.f32.mrf.mxu1  ;;  %6911 = vmatmul.mubr.msk.bf16.gmra.mxu1 %vm2291_vm4, %v10059_v62  ;;  %v3756_v29 = vadd.f32 %v10063_v6, %v9363_v49  ;;  %v10064_v62 = vld [vmem:[#allocation21_spill] sm:$0xff]  ;;  %v7190_v6 = vld [vmem:[#allocation2 + $0x70] sm:$0xff]  }
 0x4d5   : > { %v9509_v9 = vadd.f32 %v3273_v39, %v9344_v28  ;;  %6914 = vmatprep.mubr.msk.bf16.mxu1 %vm7200_vm0, %v9916_v20 }
 0x4d6   : > { %v6680_v27 = vpop.f32.mrf.mxu1 }
 0x4d8   : > { %v3276_v52 = vpop.f32.mrf.mxu1 }
 0x4da   : > { %v6681_v7 = vpop.f32.mrf.mxu1 }
 0x4db   : > { %v10065_v7 = vld [vmem:[#allocation25_spill] sm:$0xff] }
 0x4dc   : > { %v3913_v17 = vpop.f32.mrf.mxu1  ;;  %6915 = vmatmul.mubr.msk.bf16.gmra.mxu1 %vm2291_vm4, %v10061_v56  ;;  %v3757_v21 = vadd.f32 %v10065_v7, %v9368_v38  ;;  %v10066_v56 = vld [vmem:[#allocation26_spill] sm:$0xff]  ;;  %v4620_v38 = vshrl.u32 %v7190_v6, 16 }
 0x4dd   : > { %v9517_v30 = vadd.f32 %v3913_v17, %v3754_v15  ;;  %6918 = vmatprep.mubr.msk.bf16.mxu1 %vm7200_vm0, %v9916_v20  ;;  %v3758_v49 = vadd.f32 %v10066_v56, %v9375_v1 }
 0x4de   : > { %v6752_v28 = vpop.f32.mrf.mxu1 }
 0x4df   : > { %v7189_v28 = vld [vmem:[#allocation2 + $0x78] sm:$0xff]  }
 0x4e0   : > { %v3916_v13 = vpop.f32.mrf.mxu1  ;;  %v4624_v32 = vshll.u32 %v7189_v28, 16 }
 0x4e1   : > { %v9523_v8 = vadd.f32 %v3916_v13, %v3755_v54  ;;  %v10067_v13 = vld [vmem:[#allocation22_spill] sm:$0xff] }
 0x4e2   : > { %v6753_v14 = vpop.f32.mrf.mxu1  ;;  %v4626_v1 = vrot.slane %v4624_v32, 1 }
 0x4e4   : > { %v3921_v39 = vpop.f32.mrf.mxu1  ;;  %6919 = vmatmul.mubr.msk.bf16.gmra.mxu1 %vm2291_vm4, %v10064_v62 }
 0x4e5   : > { %v9529_v27 = vadd.f32 %v3921_v39, %v3756_v29  ;;  %6922 = vmatprep.mubr.msk.bf16.mxu1 %vm7200_vm0, %v9916_v20  ;;  %v10068_v39 = vld [vmem:[#allocation27_spill] sm:$0xff] }
 0x4e6   : > { %v6756_v52 = vpop.f32.mrf.mxu1  ;;  %v3759_v62 = vadd.f32 %v10068_v39, %v9380_v46 }
 0x4e7   : > { %v10069_v52 = vld [vmem:[#allocation19_spill] sm:$0xff] }
 0x4e8   : > { %v3924_v57 = vpop.f32.mrf.mxu1  ;;  %v4622_v7 = vor.u32 %v4620_v38, %v10069_v52  ;;  %v10071_v38 = vld [vmem:[#allocation29_spill] sm:$0xff]  ;;  %v10072_v52 = vld [vmem:[#allocation30_spill] sm:$0xff] }
 0x4e9   : > { %v9535_v15 = vadd.f32 %v3924_v57, %v3757_v21 }
 0x4ea   : > { %v6757_v17 = vpop.f32.mrf.mxu1 }
 0x4eb   : > { %v4628_v17 = vshrl.u32 %v7189_v28, 16 }
 0x4ec   : > { %v3929_v54 = vpop.f32.mrf.mxu1  ;;  %6923 = vmatmul.mubr.msk.bf16.gmra.mxu1 %vm2291_vm4, %v10067_v13  ;;  %v4627_v13 = vsel %vm2154_vm5, %v4622_v7, %v4626_v1  ;;  %v3762_v7 = vadd.f32 %v10072_v52, %v9403_v61 }
 0x4ed   : > { %v9541_v14 = vadd.f32 %v3929_v54, %v3758_v49  ;;  %6926 = vmatprep.mubr.msk.bf16.mxu1 %vm7200_vm0, %v9916_v20  ;;  %v10070_v49 = vld [vmem:[#allocation28_spill] sm:$0xff]  ;;  %v4630_v46 = vor.u32 %v4628_v17, %v4626_v1 }
 0x4ee   : > { %v6760_v29 = vpop.f32.mrf.mxu1  ;;  %v3760_v54 = vadd.f32 %v10070_v49, %v9385_v0 }
 0x4ef   : > { %v3761_v29 = vadd.f32 %v10071_v38, %v9396_v53  ;;  %v4635_v0 = vsel %vm2154_vm5, %v4630_v46, %v9400_v63  ;;  %v10073_v53 = vld [vmem:[#allocation31_spill] sm:$0xff] }
 0x4f0   : > { %v3932_v21 = vpop.f32.mrf.mxu1  ;;  %v3763_v17 = vadd.f32 %v10073_v53, %v9411_v42 }
 0x4f1   : > { %v9548_v57 = vadd.f32 %v3932_v21, %v3759_v62 }
 0x4f2   : > { %v6761_v56 = vpop.f32.mrf.mxu1 }
 0x4f4   : > { %v3937_v45 = vpop.f32.mrf.mxu1  ;;  %6927 = vmatmul.mubr.msk.bf16.gmra.mxu1 %vm2291_vm4, %v4627_v13 }
 0x4f5   : > { %v9554_v6 = vadd.f32 %v3937_v45, %v3760_v54  ;;  %6930 = vmatprep.mubr.msk.bf16.mxu1 %vm7200_vm0, %v9916_v20  ;;  %v10074_v54 = vld [vmem:[#allocation32_spill] sm:$0xff] }
 0x4f6   : > { %v6764_v32 = vpop.f32.mrf.mxu1  ;;  %v3764_v13 = vadd.f32 %v10074_v54, %v9419_v3 }
 0x4f8   : > { %v3940_v28 = vpop.f32.mrf.mxu1 }
 0x4f9   : > { %v9560_v39 = vadd.f32 %v3940_v28, %v3761_v29 }
 0x4fa   : > { %v6765_v62 = vpop.f32.mrf.mxu1 }
 0x4fc   : > { %v3945_v45 = vpop.f32.mrf.mxu1  ;;  %6931 = vmatmul.mubr.msk.bf16.gmra.mxu1 %vm2291_vm4, %v4635_v0  ;;  %v10076_v0 = vld [vmem:[#allocation34_spill] sm:$0xff] }
 0x4fd   : > { %v9567_v21 = vadd.f32 %v3945_v45, %v3762_v7  ;;  %6934 = vmatprep.mubr.msk.bf16.mxu1 %vm7200_vm0, %v9916_v20  ;;  %v10075_v20 = vld [vmem:[#allocation33_spill] sm:$0xff]  ;;  %v3766_v62 = vadd.f32 %v10076_v0, %v9429_v18  ;;  %v10077_v45 = vld [vmem:[#allocation35_spill] sm:$0xff]  ;;  %vm5497_vm0 = vcmask 519168  }
 0x4fe   : > { %v6768_v1 = vpop.f32.mrf.mxu1  ;;  %v3765_v38 = vadd.f32 %v10075_v20, %v9424_v41  ;;  %v10078_v41 = vld [vmem:[#allocation36_spill] sm:$0xff]  ;;  %v10079_v18 = vld [vmem:[#allocation37_spill] sm:$0xff] }
 0x500   : > { %v3948_v56 = vpop.f32.mrf.mxu1 }
 0x501   : > { %v9573_v49 = vadd.f32 %v3948_v56, %v3763_v17  ;;  %v3768_v56 = vadd.f32 %v10078_v41, %v9439_v2  ;;  %v10081_v2 = vld [vmem:[#allocation39_spill] sm:$0xff] }
 0x502   : > { %v6769_v63 = vpop.f32.mrf.mxu1 }
 0x504   : > { %v3953_v61 = vpop.f32.mrf.mxu1  ;;  %6935 = vmatmul.mubr.msk.bf16.gmra.mxu1 %vm2291_vm4, %v9415_v36  ;;  %v3767_v36 = vadd.f32 %v10077_v45, %v9434_v60  ;;  %v10080_v60 = vld [vmem:[#allocation38_spill] sm:$0xff] }
 0x505   : > { %v9579_v46 = vadd.f32 %v3953_v61, %v3764_v13  ;;  %v3769_v61 = vadd.f32 %v10079_v18, %v9444_v31  ;;  %v10082_v31 = vld [vmem:[#allocation40_spill] sm:$0xff] }
 0x506   : > { %v6772_v32 = vpop.f32.mrf.mxu1 }
 0x508   : > { %v3956_v29 = vpop.f32.mrf.mxu1 }
 0x509   : > { %v9583_v28 = vadd.f32 %v3956_v29, %v3765_v38  ;;  %v3770_v29 = vadd.f32 %v10080_v60, %v9449_v4  ;;  %v10083_v4 = vld [vmem:[#allocation41_spill] sm:$0xff] }
 0x50a   : > { %v6773_v42 = vpop.f32.mrf.mxu1 }
 0x50c   : > { %v3961_v52 = vpop.f32.mrf.mxu1 }
 0x50d   : > { %v9587_v7 = vadd.f32 %v3961_v52, %v3766_v62  ;;  %v3771_v52 = vadd.f32 %v10081_v2, %v9454_v50  ;;  %v10084_v50 = vld [vmem:[#allocation42_spill] sm:$0xff] }
 0x50e   : > { %v6776_v3 = vpop.f32.mrf.mxu1 }
 0x510   : > { %v3964_v1 = vpop.f32.mrf.mxu1 }
 0x511   : > { %v9591_v53 = vadd.f32 %v3964_v1, %v3767_v36  ;;  %v3772_v1 = vadd.f32 %v10082_v31, %v9459_v5  ;;  %v10085_v5 = vld [vmem:[#allocation44_spill] sm:$0xff] }
 0x512   : > { %v6777_v17 = vpop.f32.mrf.mxu1 }
 0x514   : > { %v3969_v63 = vpop.f32.mrf.mxu1 }
 0x515   : > { %v9595_v54 = vadd.f32 %v3969_v63, %v3768_v56  ;;  %v3773_v63 = vadd.f32 %v10083_v4, %v9464_v37  ;;  %v10086_v37 = vld [vmem:[#allocation46_spill] sm:$0xff] }
 0x516   : > { %v6780_v13 = vpop.f32.mrf.mxu1 }
 0x518   : > { %v3972_v32 = vpop.f32.mrf.mxu1 }
 0x519   : > { %v9599_v20 = vadd.f32 %v3972_v32, %v3769_v61  ;;  %v3774_v32 = vadd.f32 %v10084_v50, %v9469_v48  ;;  %v10087_v48 = vld [vmem:[#allocation48_spill] sm:$0xff] }
 0x51a   : > { %v6781_v38 = vpop.f32.mrf.mxu1 }
 0x51c   : > { %v3977_v42 = vpop.f32.mrf.mxu1 }
 0x51d   : > { %v9603_v0 = vadd.f32 %v3977_v42, %v3770_v29  ;;  %v3775_v42 = vadd.f32 %v10085_v5, %v9474_v55  ;;  %v10088_v55 = vld [vmem:[#allocation50_spill] sm:$0xff] }
 0x51e   : > { %v6784_v62 = vpop.f32.mrf.mxu1 }
 0x520   : > { %v3980_v3 = vpop.f32.mrf.mxu1 }
 0x521   : > { %v9607_v45 = vadd.f32 %v3980_v3, %v3771_v52  ;;  %v3776_v3 = vadd.f32 %v10086_v37, %v9479_v59  ;;  %v10089_v59 = vld [vmem:[#allocation52_spill] sm:$0xff] }
 0x522   : > { %v6785_v36 = vpop.f32.mrf.mxu1 }
 0x524   : > { %v3985_v17 = vpop.f32.mrf.mxu1 }
 0x525   : > { %v9611_v41 = vadd.f32 %v3985_v17, %v3772_v1  ;;  %v3777_v17 = vadd.f32 %v10087_v48, %v9484_v47  ;;  %v10090_v47 = vld [vmem:[#allocation53_spill] sm:$0xff] }
 0x526   : > { %v6788_v56 = vpop.f32.mrf.mxu1 }
 0x528   : > { %v3988_v13 = vpop.f32.mrf.mxu1 }
 0x529   : > { %v9615_v18 = vadd.f32 %v3988_v13, %v3773_v63  ;;  %v3778_v13 = vadd.f32 %v10088_v55, %v9489_v58  ;;  %v10091_v58 = vld [vmem:[#allocation54_spill] sm:$0xff] }
 0x52a   : > { %v6789_v61 = vpop.f32.mrf.mxu1 }
 0x52c   : > { %v3993_v38 = vpop.f32.mrf.mxu1 }
 0x52d   : > { %v9619_v60 = vadd.f32 %v3993_v38, %v3774_v32  ;;  %v3779_v38 = vadd.f32 %v10089_v59, %v9494_v26  ;;  %v10092_v26 = vld [vmem:[#allocation55_spill] sm:$0xff] }
 0x52e   : > { %v6792_v29 = vpop.f32.mrf.mxu1 }
 0x530   : > { %v3996_v62 = vpop.f32.mrf.mxu1 }
 0x531   : > { %v9623_v2 = vadd.f32 %v3996_v62, %v3775_v42  ;;  %v3780_v62 = vadd.f32 %v10090_v47, %v9499_v43 }
 0x532   : > { %v6793_v52 = vpop.f32.mrf.mxu1 }
 0x534   : > { %v4001_v36 = vpop.f32.mrf.mxu1 }
 0x535   : > { %v9627_v31 = vadd.f32 %v4001_v36, %v3776_v3  ;;  %v3781_v36 = vadd.f32 %v10091_v58, %v9504_v34 }
 0x536   : > { %v6796_v1 = vpop.f32.mrf.mxu1 }
 0x538   : > { %v4004_v56 = vpop.f32.mrf.mxu1 }
 0x539   : > { %v9631_v4 = vadd.f32 %v4004_v56, %v3777_v17  ;;  %v9649_v56 = vpop.f32.mrf.mxu0 }
 0x53a   : > { %v6797_v63 = vpop.f32.mrf.mxu1 }
 0x53b   : > { %v3782_v63 = vadd.f32 %v10092_v26, %v9509_v9  ;;  %v9664_v9 = vld [vmem:[%s9873_s4] ss:$0 sm:$0xff] }
 0x53c   : > { %v4009_v61 = vpop.f32.mrf.mxu1 }
 0x53d   : > { %v9635_v50 = vadd.f32 %v4009_v61, %v3778_v13  ;;  %v6996_v13 = vpop.f32.mrf.mxu0 }
 0x53e   : > { %v6800_v32 = vpop.f32.mrf.mxu1 }
 0x53f   : > { %v9655_v32 = vpop.f32.mrf.mxu0 }
 0x540   : > { %v4012_v29 = vpop.f32.mrf.mxu1 }
 0x541   : > { %v9639_v5 = vadd.f32 %v4012_v29, %v3779_v38  ;;  %v6997_v38 = vpop.f32.mrf.mxu0 }
 0x542   : > { %v6801_v42 = vpop.f32.mrf.mxu1  ;;  %v10095_v38 = vld [vmem:[#allocation58_spill] sm:$0xff] }
 0x543   : > { %v9657_v34 = vpop.f32.mrf.mxu0  ;;  %v10093_v42 = vld [vmem:[#allocation56_spill] sm:$0xff] }
 0x544   : > { %v4017_v52 = vpop.f32.mrf.mxu1  ;;  %v4378_v47 = vadd.f32 %v10093_v42, %v9517_v30 }
 0x545   : > { %v9643_v37 = vadd.f32 %v4017_v52, %v3780_v62  ;;  %v7000_v52 = vpop.f32.mrf.mxu0 }
 0x546   : > { %v6804_v3 = vpop.f32.mrf.mxu1 }
 0x548   : > { %v4020_v1 = vpop.f32.mrf.mxu1 }
 0x549   : > { %v9647_v48 = vadd.f32 %v4020_v1, %v3781_v36  ;;  %v5127_v36 = vpop.f32.mrf.mxu0 }
 0x54a   : > { %v6805_v17 = vpop.f32.mrf.mxu1 }
 0x54b   : > { %v10094_v17 = vld [vmem:[#allocation57_spill] sm:$0xff] }
 0x54c   : > { %v4025_v55 = vpop.f32.mrf.mxu1  ;;  %v4379_v26 = vadd.f32 %v10094_v17, %v9523_v8 }
 0x54d   : > { %v9653_v61 = vadd.f32 %v4025_v55, %v3782_v63  ;;  %v7001_v55 = vpop.f32.mrf.mxu0 }
 0x54e   : > { %v6808_v43 = vpop.f32.mrf.mxu1 }
 0x550   : > { %v4028_v59 = vpop.f32.mrf.mxu1 }
 0x552   : > { %v6809_v29 = vpop.f32.mrf.mxu1 }
 0x553   : > { %v4380_v29 = vadd.f32 %v10095_v38, %v9529_v27 }
 0x554   : > { %v4735_v62 = vpop.f32.mrf.mxu1 }
 0x555   : > { %v4853_v3 = vadd.f32 %v4735_v62, %v4378_v47 }
 0x556   : > { %v6880_v58 = vpop.f32.mrf.mxu1 }
 0x557   : > { %v5130_v1 = vadd.f32 %v9141_v35, %v4853_v3  ;;  %v10096_v58 = vld [vmem:[#allocation59_spill] sm:$0xff] }
 0x558   : > { %v4738_v63 = vpop.f32.mrf.mxu1  ;;  %v4381_v36 = vadd.f32 %v10096_v58, %v9535_v15  ;;  %v10098_v58 = vld [vmem:[#allocation62_spill] sm:$0xff] }
 0x559   : > { %v5166_v13 = vadd.f32 %v9664_v9, %v5130_v1  ;;  %v4854_v30 = vadd.f32 %v4738_v63, %v4379_v26 }
 0x55a   : > { %v6881_v43 = vpop.f32.mrf.mxu1 }
 0x55b   : > { %v5131_v59 = vadd.f32 %v9150_v12, %v4854_v30  ;;  %v5195_v47 = vmax.f32 %v5166_v13, 0.0  ;;  %v10097_v43 = vld [vmem:[#allocation61_spill] sm:$0xff] }
 0x55c   : > { %v4743_v42 = vpop.f32.mrf.mxu1 }
 0x55d   : > { %v5167_v62 = vadd.f32 %v9664_v9, %v5131_v59  ;;  %v4855_v52 = vadd.f32 %v4743_v42, %v4380_v29  ;;  %v5254_v17 = vrot.slane %v5195_v47, 1  ;;  %v4382_v59 = vadd.f32 %v10097_v43, %v9541_v14 }
 0x55e   : > { %v6884_v35 = vpop.f32.mrf.mxu1 }
 0x55f   : > { %v5196_v3 = vmax.f32 %v5167_v62, 0.0  ;;  %v5132_v8 = vadd.f32 %v9156_v16, %v4855_v52 }
 0x560   : > { %v4746_v1 = vpop.f32.mrf.mxu1 }
 0x561   : > { %v5255_v26 = vrot.slane %v5196_v3, 1  ;;  %v5168_v12 = vadd.f32 %v9664_v9, %v5132_v8  ;;  %v4856_v63 = vadd.f32 %v4746_v1, %v4381_v36  ;;  %v4383_v36 = vadd.f32 %v10098_v58, %v9548_v57 }
 0x562   : > { %v6885_v55 = vpop.f32.mrf.mxu1 }
 0x563   : > { %v5256_v27 = vsel %vm2691_vm2, %v5254_v17, %v5255_v26  ;;  %v5197_v13 = vmax.f32 %v5168_v12, 0.0  ;;  %v5133_v30 = vadd.f32 %v9165_v44, %v4856_v63 }
 0x564   : > { %v5339_v38 = vmax.f32 %v5195_v47, %v5256_v27  ;;  %v4751_v16 = vpop.f32.mrf.mxu1 }
 0x565   : > { %v5257_v29 = vrot.slane %v5197_v13, 1  ;;  %v5169_v15 = vadd.f32 %v9664_v9, %v5133_v30  ;;  %v4857_v42 = vadd.f32 %v4751_v16, %v4382_v59 }
 0x566   : > { %v6888_v62 = vpop.f32.mrf.mxu1 }
 0x567   : > { %v5258_v52 = vsel %vm2691_vm2, %v5255_v26, %v5257_v29  ;;  %v5198_v35 = vmax.f32 %v5169_v15, 0.0  ;;  %v5134_v8 = vadd.f32 %v9171_v25, %v4857_v42  ;;  %v10099_v26 = vld [vmem:[#allocation63_spill] sm:$0xff] }
 0x568   : > { %v5340_v44 = vmax.f32 %v5196_v3, %v5258_v52  ;;  %v4754_v1 = vpop.f32.mrf.mxu1  ;;  %v4384_v30 = vadd.f32 %v10099_v26, %v9554_v6 }
 0x569   : > { %v5259_v17 = vrot.slane %v5198_v35, 1  ;;  %v5170_v14 = vadd.f32 %v9664_v9, %v5134_v8  ;;  %v4858_v47 = vadd.f32 %v4754_v1, %v4383_v36 }
 0x56a   : > { %v6889_v12 = vpop.f32.mrf.mxu1 }
 0x56b   : > { %v5260_v63 = vsel %vm2691_vm2, %v5257_v29, %v5259_v17  ;;  %v5199_v55 = vmax.f32 %v5170_v14, 0.0  ;;  %v5135_v27 = vadd.f32 %v9180_v51, %v4858_v47  ;;  %v10101_v12 = vld [vmem:[#allocation65_spill] sm:$0xff] }
 0x56c   : > { %v5341_v25 = vmax.f32 %v5197_v13, %v5260_v63  ;;  %v4759_v43 = vpop.f32.mrf.mxu1  ;;  %v10100_v13 = vld [vmem:[#allocation64_spill] sm:$0xff] }
 0x56d   : > { %v5261_v59 = vrot.slane %v5199_v55, 1  ;;  %v5171_v57 = vadd.f32 %v9664_v9, %v5135_v27  ;;  %v4859_v3 = vadd.f32 %v4759_v43, %v4384_v30  ;;  %v4385_v42 = vadd.f32 %v10100_v13, %v9560_v39 }
 0x56e   : > { %v5367_v16 = vmax.f32 %v5339_v38, %v5341_v25  ;;  %v6892_v15 = vpop.f32.mrf.mxu1  ;;  %v4386_v39 = vadd.f32 %v10101_v12, %v9567_v21 }
 0x56f   : > { %v5262_v51 = vsel %vm2691_vm2, %v5259_v17, %v5261_v59  ;;  %v5200_v29 = vmax.f32 %v5171_v57, 0.0  ;;  %v5136_v6 = vadd.f32 %v9186_v10, %v4859_v3 }
 0x570   : > { %v5999_v62 = vpack.c.bf16 %v5367_v16, %v5367_v16  ;;  %v5342_v52 = vmax.f32 %v5198_v35, %v5262_v51  ;;  %v4762_v8 = vpop.f32.mrf.mxu1  ;;  %v10102_v16 = vld [vmem:[#allocation66_spill] sm:$0xff] }
 0x571   : > { %v5263_v38 = vrot.slane %v5200_v29, 1  ;;  %v5172_v58 = vadd.f32 %v9664_v9, %v5136_v6  ;;  %v4860_v36 = vadd.f32 %v4762_v8, %v4385_v42  ;;  %v4387_v21 = vadd.f32 %v10102_v16, %v9573_v49 }
 0x572   : > { %5498 = vst.msk [vmem:[%s9697_s19] sm:$0xf] %vm5497_vm0, %v5999_v62  ;;  %v5368_v1 = vmax.f32 %v5340_v44, %v5342_v52  ;;  %v6893_v14 = vpop.f32.mrf.mxu1 }
 0x573   : > { %v5264_v17 = vsel %vm2691_vm2, %v5261_v59, %v5263_v38  ;;  %v5201_v47 = vmax.f32 %v5172_v58, 0.0  ;;  %v5137_v10 = vadd.f32 %v9195_v24, %v4860_v36  ;;  %v10103_v58 = vld [vmem:[#allocation67_spill] sm:$0xff] }
 0x574   : > { %v6000_v63 = vpack.c.bf16 %v5368_v1, %v5368_v1  ;;  %v5343_v35 = vmax.f32 %v5199_v55, %v5264_v17  ;;  %v4767_v27 = vpop.f32.mrf.mxu1  ;;  %v4388_v49 = vadd.f32 %v10103_v58, %v9579_v46 }
 0x575   : > { %v5265_v26 = vrot.slane %v5201_v47, 1  ;;  %v5173_v30 = vadd.f32 %v9664_v9, %v5137_v10  ;;  %v4861_v43 = vadd.f32 %v4767_v27, %v4386_v39  ;;  %v10104_v27 = vld [vmem:[#allocation68_spill] sm:$0xff] }
 0x576   : > { %5499 = vst.msk [vmem:[%s9697_s19 + $0x4] sm:$0xf] %vm5497_vm0, %v6000_v63  ;;  %v5369_v44 = vmax.f32 %v5341_v25, %v5343_v35  ;;  %v6896_v57 = vpop.f32.mrf.mxu1  ;;  %v4389_v46 = vadd.f32 %v10104_v27, %v9583_v28 }
 0x577   : > { %v5266_v59 = vsel %vm2691_vm2, %v5263_v38, %v5265_v26  ;;  %v5202_v3 = vmax.f32 %v5173_v30, 0.0  ;;  %v5138_v24 = vadd.f32 %v9204_v40, %v4861_v43 }
 0x578   : > { %v6001_v15 = vpack.c.bf16 %v5369_v44, %v5369_v44  ;;  %v5344_v55 = vmax.f32 %v5200_v29, %v5266_v59  ;;  %v4770_v51 = vpop.f32.mrf.mxu1 }
 0x579   : > { %v5267_v6 = vrot.slane %v5202_v3, 1  ;;  %v5174_v13 = vadd.f32 %v9664_v9, %v5138_v24  ;;  %v4862_v42 = vadd.f32 %v4770_v51, %v4387_v21  ;;  %v10105_v21 = vld [vmem:[#allocation69_spill] sm:$0xff] }
 0x57a   : > { %5500 = vst.msk [vmem:[%s9697_s19 + $0x8] sm:$0xf] %vm5497_vm0, %v6001_v15  ;;  %v5370_v25 = vmax.f32 %v5342_v52, %v5344_v55  ;;  %v6897_v62 = vpop.f32.mrf.mxu1  ;;  %v4390_v28 = vadd.f32 %v10105_v21, %v9587_v7 }
 0x57b   : > { %v5268_v8 = vsel %vm2691_vm2, %v5265_v26, %v5267_v6  ;;  %v5203_v38 = vmax.f32 %v5174_v13, 0.0  ;;  %v5139_v40 = vadd.f32 %v9217_v33, %v4862_v42 }
 0x57c   : > { %v6002_v36 = vpack.c.bf16 %v5370_v25, %v5370_v25  ;;  %v5345_v29 = vmax.f32 %v5201_v47, %v5268_v8  ;;  %v4775_v1 = vpop.f32.mrf.mxu1 }
 0x57d   : > { %v5269_v14 = vrot.slane %v5203_v38, 1  ;;  %v5175_v17 = vadd.f32 %v9664_v9, %v5139_v40  ;;  %v4863_v10 = vadd.f32 %v4775_v1, %v4388_v49  ;;  %v10106_v40 = vld [vmem:[#allocation70_spill] sm:$0xff] }
 0x57e   : > { %5501 = vst.msk [vmem:[%s9697_s19 + $0xc] sm:$0xf] %vm5497_vm0, %v6002_v36  ;;  %v5371_v52 = vmax.f32 %v5343_v35, %v5345_v29  ;;  %v6900_v12 = vpop.f32.mrf.mxu1  ;;  %v4391_v7 = vadd.f32 %v10106_v40, %v9591_v53 }
 0x57f   : > { %v5270_v39 = vsel %vm2691_vm2, %v5267_v6, %v5269_v14  ;;  %v5204_v63 = vmax.f32 %v5175_v17, 0.0  ;;  %v5140_v33 = vadd.f32 %v9224_v23, %v4863_v10  ;;  %v10107_v12 = vld [vmem:[#allocation71_spill] sm:$0xff] }
 0x580   : > { %v6003_v26 = vpack.c.bf16 %v5371_v52, %v5371_v52  ;;  %v5346_v47 = vmax.f32 %v5202_v3, %v5270_v39  ;;  %v4778_v30 = vpop.f32.mrf.mxu1  ;;  %v4392_v53 = vadd.f32 %v10107_v12, %v9595_v54 }
 0x581   : > { %v5271_v43 = vrot.slane %v5204_v63, 1  ;;  %v5176_v44 = vadd.f32 %v9664_v9, %v5140_v33  ;;  %v4864_v57 = vadd.f32 %v4778_v30, %v4389_v46 }
 0x582   : > { %5502 = vst.msk [vmem:[%s9697_s19 + $0x10] sm:$0xf] %vm5497_vm0, %v6003_v26  ;;  %v5372_v35 = vmax.f32 %v5344_v55, %v5346_v47  ;;  %v6901_v59 = vpop.f32.mrf.mxu1 }
 0x583   : > { %v5272_v24 = vsel %vm2691_vm2, %v5269_v14, %v5271_v43  ;;  %v5205_v16 = vmax.f32 %v5176_v44, 0.0  ;;  %v5141_v23 = vadd.f32 %v9234_v11, %v4864_v57  ;;  %v10108_v57 = vld [vmem:[#allocation90_spill] sm:$0xff] }
 0x584   : > { %v6004_v15 = vpack.c.bf16 %v5372_v35, %v5372_v35  ;;  %v5347_v3 = vmax.f32 %v5203_v38, %v5272_v24  ;;  %v4783_v51 = vpop.f32.mrf.mxu1  ;;  %v10109_v35 = vld [vmem:[#allocation72_spill] sm:$0xff] }
 0x585   : > { %v5273_v6 = vrot.slane %v5205_v16, 1  ;;  %v5177_v13 = vadd.f32 %v9664_v9, %v5141_v23  ;;  %v4865_v42 = vadd.f32 %v4783_v51, %v4390_v28  ;;  %v4393_v54 = vadd.f32 %v10109_v35, %v9599_v20 }
 0x586   : > { %5503 = vst.msk [vmem:[%s9697_s19 + $0x14] sm:$0xf] %vm5497_vm0, %v6004_v15  ;;  %v5373_v55 = vmax.f32 %v5345_v29, %v5347_v3  ;;  %v6904_v25 = vpop.f32.mrf.mxu1 }
 0x587   : > { %v5274_v62 = vsel %vm2691_vm2, %v5271_v43, %v5273_v6  ;;  %v5206_v8 = vmax.f32 %v5177_v13, 0.0  ;;  %v5142_v11 = vadd.f32 %v9240_v19, %v4865_v42  ;;  %v10110_v13 = vld [vmem:[#allocation91_spill] sm:$0xff] }
 0x588   : > { %v6005_v58 = vpack.c.bf16 %v5373_v55, %v5373_v55  ;;  %v5348_v38 = vmax.f32 %v5204_v63, %v5274_v62  ;;  %v4786_v49 = vpop.f32.mrf.mxu1  ;;  %v10111_v55 = vld [vmem:[#allocation73_spill] sm:$0xff] }
 0x589   : > { %v5275_v36 = vrot.slane %v5206_v8, 1  ;;  %v5178_v1 = vadd.f32 %v9664_v9, %v5142_v11  ;;  %v4866_v14 = vadd.f32 %v4786_v49, %v4391_v7  ;;  %v4394_v20 = vadd.f32 %v10111_v55, %v9603_v0 }
 0x58a   : > { %5504 = vst.msk [vmem:[%s9697_s19 + $0x18] sm:$0xf] %vm5497_vm0, %v6005_v58  ;;  %v5374_v29 = vmax.f32 %v5346_v47, %v5348_v38  ;;  %v6905_v17 = vpop.f32.mrf.mxu1 }
 0x58b   : > { %v5276_v10 = vsel %vm2691_vm2, %v5273_v6, %v5275_v36  ;;  %v5207_v52 = vmax.f32 %v5178_v1, 0.0  ;;  %v5143_v19 = vadd.f32 %v9250_v22, %v4866_v14  ;;  %v10112_v1 = vld [vmem:[#allocation92_spill] sm:$0xff] }
 0x58c   : > { %v6006_v39 = vpack.c.bf16 %v5374_v29, %v5374_v29  ;;  %v5349_v63 = vmax.f32 %v5205_v16, %v5276_v10  ;;  %v4791_v33 = vpop.f32.mrf.mxu1  ;;  %v10113_v29 = vld [vmem:[#allocation74_spill] sm:$0xff] }
 0x58d   : > { %v5277_v27 = vrot.slane %v5207_v52, 1  ;;  %v5179_v46 = vadd.f32 %v9664_v9, %v5143_v19  ;;  %v4867_v26 = vadd.f32 %v4791_v33, %v4392_v53  ;;  %v4395_v0 = vadd.f32 %v10113_v29, %v9607_v45 }
 0x58e   : > { %5505 = vst.msk [vmem:[%s9697_s19 + $0x1c] sm:$0xf] %vm5497_vm0, %v6006_v39  ;;  %v5375_v47 = vmax.f32 %v5347_v3, %v5349_v63  ;;  %v6908_v30 = vpop.f32.mrf.mxu1 }
 0x58f   : > { %v5278_v43 = vsel %vm2691_vm2, %v5275_v36, %v5277_v27  ;;  %v5208_v44 = vmax.f32 %v5179_v46, 0.0  ;;  %v5144_v22 = vadd.f32 %v10108_v57, %v4867_v26  ;;  %v10114_v46 = vld [vmem:[#allocation93_spill] sm:$0xff] }
 0x590   : > { %v6007_v59 = vpack.c.bf16 %v5375_v47, %v5375_v47  ;;  %v5350_v24 = vmax.f32 %v5206_v8, %v5278_v43  ;;  %v4794_v16 = vpop.f32.mrf.mxu1  ;;  %v10115_v47 = vld [vmem:[#allocation75_spill] sm:$0xff] }
 0x591   : > { %v5279_v23 = vrot.slane %v5208_v44, 1  ;;  %v5180_v21 = vadd.f32 %v9664_v9, %v5144_v22  ;;  %v4868_v28 = vadd.f32 %v4794_v16, %v4393_v54  ;;  %v4396_v45 = vadd.f32 %v10115_v47, %v9611_v41 }
 0x592   : > { %5506 = vst.msk [vmem:[%s9697_s19 + $0x20] sm:$0xf] %vm5497_vm0, %v6007_v59  ;;  %v5376_v15 = vmax.f32 %v5348_v38, %v5350_v24  ;;  %v6909_v3 = vpop.f32.mrf.mxu1 }
 0x593   : > { %v5280_v51 = vsel %vm2691_vm2, %v5277_v27, %v5279_v23  ;;  %v5209_v6 = vmax.f32 %v5180_v21, 0.0  ;;  %v5145_v42 = vadd.f32 %v10110_v13, %v4868_v28  ;;  %v10117_v28 = vld [vmem:[#allocation76_spill] sm:$0xff] }
 0x594   : > { %v6008_v25 = vpack.c.bf16 %v5376_v15, %v5376_v15  ;;  %v5351_v62 = vmax.f32 %v5207_v52, %v5280_v51  ;;  %v4799_v8 = vpop.f32.mrf.mxu1  ;;  %v4397_v41 = vadd.f32 %v10117_v28, %v9615_v18 }
 0x595   : > { %v5281_v11 = vrot.slane %v5209_v6, 1  ;;  %v5181_v40 = vadd.f32 %v9664_v9, %v5145_v42  ;;  %v4869_v7 = vadd.f32 %v4799_v8, %v4394_v20  ;;  %v10118_v8 = vld [vmem:[#allocation95_spill] sm:$0xff] }
 0x596   : > { %5507 = vst.msk [vmem:[%s9697_s19 + $0x24] sm:$0xf] %vm5497_vm0, %v6008_v25  ;;  %v5377_v58 = vmax.f32 %v5349_v63, %v5351_v62  ;;  %v6912_v38 = vpop.f32.mrf.mxu1 }
 0x597   : > { %v5282_v49 = vsel %vm2691_vm2, %v5279_v23, %v5281_v11  ;;  %v5210_v36 = vmax.f32 %v5181_v40, 0.0  ;;  %v5146_v14 = vadd.f32 %v10112_v1, %v4869_v7  ;;  %v10116_v23 = vld [vmem:[#allocation94_spill] sm:$0xff]  ;;  %v10119_v40 = vld [vmem:[#allocation77_spill] sm:$0xff] }
 0x598   : > { %v6009_v17 = vpack.c.bf16 %v5377_v58, %v5377_v58  ;;  %v5352_v10 = vmax.f32 %v5208_v44, %v5282_v49  ;;  %v4802_v52 = vpop.f32.mrf.mxu1  ;;  %v4398_v18 = vadd.f32 %v10119_v40, %v9619_v60  ;;  %v10126_v40 = vld [vmem:[#allocation4_spill] sm:$0xff] }
 0x599   : > { %v5283_v19 = vrot.slane %v5210_v36, 1  ;;  %v5182_v12 = vadd.f32 %v9664_v9, %v5146_v14  ;;  %v4870_v53 = vadd.f32 %v4802_v52, %v4395_v0 }
 0x59a   : > { %5508 = vst.msk [vmem:[%s9697_s19 + $0x28] sm:$0xf] %vm5497_vm0, %v6009_v17  ;;  %v5378_v39 = vmax.f32 %v5350_v24, %v5352_v10  ;;  %v6913_v63 = vpop.f32.mrf.mxu1 }
 0x59b   : > { %v5284_v33 = vsel %vm2691_vm2, %v5281_v11, %v5283_v19  ;;  %v5211_v27 = vmax.f32 %v5182_v12, 0.0  ;;  %v5147_v26 = vadd.f32 %v10114_v46, %v4870_v53 }
 0x59c   : > { %v6010_v30 = vpack.c.bf16 %v5378_v39, %v5378_v39  ;;  %v5353_v43 = vmax.f32 %v5209_v6, %v5284_v33  ;;  %v4807_v44 = vpop.f32.mrf.mxu1 }
 0x59d   : > { %v5285_v57 = vrot.slane %v5211_v27, 1  ;;  %v5183_v22 = vadd.f32 %v9664_v9, %v5147_v26  ;;  %v4871_v35 = vadd.f32 %v4807_v44, %v4396_v45  ;;  %v10123_v44 = vld [vmem:[#allocation81_spill] sm:$0xff] }
 0x59e   : > { %5509 = vst.msk [vmem:[%s9697_s19 + $0x2c] sm:$0xf] %vm5497_vm0, %v6010_v30  ;;  %v5379_v54 = vmax.f32 %v5351_v62, %v5353_v43  ;;  %v6916_v59 = vpop.f32.mrf.mxu1  ;;  %v10122_v30 = vld [vmem:[#allocation43_spill] sm:$0xff] }
 0x59f   : > { %v5286_v24 = vsel %vm2691_vm2, %v5283_v19, %v5285_v57  ;;  %v5212_v16 = vmax.f32 %v5183_v22, 0.0  ;;  %v5148_v21 = vadd.f32 %v10116_v23, %v4871_v35  ;;  %v10121_v19 = vld [vmem:[#allocation79_spill] sm:$0xff] }
 0x5a0   : > { %v6011_v15 = vpack.c.bf16 %v5379_v54, %v5379_v54  ;;  %v5354_v3 = vmax.f32 %v5210_v36, %v5286_v24  ;;  %v4810_v51 = vpop.f32.mrf.mxu1  ;;  %v4399_v60 = vadd.f32 %v10121_v19, %v9623_v2  ;;  %v4400_v2 = vadd.f32 %v10123_v44, %v9627_v31  ;;  %v10131_v44 = vld [vmem:[#allocation87_spill] sm:$0xff] }
 0x5a1   : > { %v5287_v6 = vrot.slane %v5212_v16, 1  ;;  %v5184_v13 = vadd.f32 %v9664_v9, %v5148_v21  ;;  %v4872_v42 = vadd.f32 %v4810_v51, %v4397_v41  ;;  %v10124_v41 = vld [vmem:[#allocation78_spill] sm:$0xff] }
 0x5a2   : > { %5510 = vst.msk [vmem:[%s9697_s19 + $0x30] sm:$0xf] %vm5497_vm0, %v6011_v15  ;;  %v5380_v55 = vmax.f32 %v5352_v10, %v5354_v3  ;;  %v6917_v20 = vpop.f32.mrf.mxu1  ;;  %v10120_v10 = vld [vmem:[#allocation96_spill] sm:$0xff] }
 0x5a3   : > { %v5288_v25 = vsel %vm2691_vm2, %v5285_v57, %v5287_v6  ;;  %v5213_v62 = vmax.f32 %v5184_v13, 0.0  ;;  %v5149_v11 = vadd.f32 %v10118_v8, %v4872_v42 }
 0x5a4   : > { %v6012_v7 = vpack.c.bf16 %v5380_v55, %v5380_v55  ;;  %v5355_v58 = vmax.f32 %v5211_v27, %v5288_v25  ;;  %v4815_v38 = vpop.f32.mrf.mxu1 }
 0x5a5   : > { %v5289_v49 = vrot.slane %v5213_v62, 1  ;;  %v5185_v36 = vadd.f32 %v9664_v9, %v5149_v11  ;;  %v4873_v1 = vadd.f32 %v4815_v38, %v4398_v18 }
 0x5a6   : > { %5511 = vst.msk [vmem:[%s9697_s19 + $0x34] sm:$0xf] %vm5497_vm0, %v6012_v7  ;;  %v5381_v14 = vmax.f32 %v5353_v43, %v5355_v58  ;;  %v6920_v29 = vpop.f32.mrf.mxu1  ;;  %v10127_v7 = vld [vmem:[#allocation85_spill] sm:$0xff] }
 0x5a7   : > { %v5290_v0 = vsel %vm2691_vm2, %v5287_v6, %v5289_v49  ;;  %v5214_v17 = vmax.f32 %v5185_v36, 0.0  ;;  %v5150_v52 = vadd.f32 %v10120_v10, %v4873_v1 }
 0x5a8   : > { %v6013_v12 = vpack.c.bf16 %v5381_v14, %v5381_v14  ;;  %v5356_v53 = vmax.f32 %v5212_v16, %v5290_v0  ;;  %v4818_v39 = vpop.f32.mrf.mxu1 }
 0x5a9   : > { %v5291_v63 = vrot.slane %v5214_v17, 1  ;;  %v5186_v33 = vadd.f32 %v9664_v9, %v5150_v52  ;;  %v4874_v27 = vadd.f32 %v4818_v39, %v4399_v60  ;;  %v10128_v52 = vld [vmem:[#allocation45_spill] sm:$0xff]  ;;  %v10129_v60 = vld [vmem:[#allocation86_spill] sm:$0xff] }
 0x5aa   : > { %5512 = vst.msk [vmem:[%s9697_s19 + $0x38] sm:$0xf] %vm5497_vm0, %v6013_v12  ;;  %v5382_v46 = vmax.f32 %v5354_v3, %v5356_v53  ;;  %v6921_v26 = vpop.f32.mrf.mxu1  ;;  %v10125_v3 = vld [vmem:[#allocation83_spill] sm:$0xff] }
 0x5ab   : > { %v5292_v47 = vsel %vm2691_vm2, %v5289_v49, %v5291_v63  ;;  %v5215_v45 = vmax.f32 %v5186_v33, 0.0  ;;  %v5151_v43 = vadd.f32 %v10122_v30, %v4874_v27  ;;  %v4401_v31 = vadd.f32 %v10125_v3, %v9631_v4  ;;  %v10130_v30 = vld [vmem:[#allocation80_spill] sm:$0xff] }
 0x5ac   : > { %v6014_v57 = vpack.c.bf16 %v5382_v46, %v5382_v46  ;;  %v5357_v22 = vmax.f32 %v5213_v62, %v5292_v47  ;;  %v4823_v35 = vpop.f32.mrf.mxu1  ;;  %v4402_v4 = vadd.f32 %v10127_v7, %v9635_v50  ;;  %v4403_v50 = vadd.f32 %v10129_v60, %v9639_v5 }
 0x5ad   : > { %v5293_v54 = vrot.slane %v5215_v45, 1  ;;  %v5187_v59 = vadd.f32 %v9664_v9, %v5151_v43  ;;  %v4875_v24 = vadd.f32 %v4823_v35, %v4400_v2  ;;  %v4404_v5 = vadd.f32 %v10131_v44, %v9643_v37 }
 0x5ae   : > { %5513 = vst.msk [vmem:[%s9697_s19 + $0x3c] sm:$0xf] %vm5497_vm0, %v6014_v57  ;;  %v5383_v16 = vmax.f32 %v5355_v58, %v5357_v22  ;;  %v6924_v23 = vpop.f32.mrf.mxu1 }
 0x5af   : > { %v5294_v21 = vsel %vm2691_vm2, %v5291_v63, %v5293_v54  ;;  %v5216_v28 = vmax.f32 %v5187_v59, 0.0  ;;  %v5152_v15 = vadd.f32 %v10124_v41, %v4875_v24  ;;  %v10132_v41 = vld [vmem:[#allocation88_spill] sm:$0xff] }
 0x5b0   : > { %v6015_v51 = vpack.c.bf16 %v5383_v16, %v5383_v16  ;;  %v5358_v6 = vmax.f32 %v5214_v17, %v5294_v21  ;;  %v4826_v13 = vpop.f32.mrf.mxu1  ;;  %v4405_v37 = vadd.f32 %v10132_v41, %v9647_v48 }
 0x5b1   : > { %v5295_v42 = vrot.slane %v5216_v28, 1  ;;  %v5188_v55 = vadd.f32 %v9664_v9, %v5152_v15  ;;  %v4876_v20 = vadd.f32 %v4826_v13, %v4401_v31 }
 0x5b2   : > { %5514 = vst.msk [vmem:[%s9697_s19 + $0x40] sm:$0xf] %vm5497_vm0, %v6015_v51  ;;  %v5384_v25 = vmax.f32 %v5356_v53, %v5358_v6  ;;  %v6925_v62 = vpop.f32.mrf.mxu1 }
 0x5b3   : > { %v5296_v8 = vsel %vm2691_vm2, %v5293_v54, %v5295_v42  ;;  %v5217_v11 = vmax.f32 %v5188_v55, 0.0  ;;  %v5153_v18 = vadd.f32 %v10126_v40, %v4876_v20  ;;  %v10133_v62 = vld [vmem:[#allocation89_spill] sm:$0xff] }
 0x5b4   : > { %v6016_v58 = vpack.c.bf16 %v5384_v25, %v5384_v25  ;;  %v5359_v38 = vmax.f32 %v5215_v45, %v5296_v8  ;;  %v4831_v49 = vpop.f32.mrf.mxu1  ;;  %v4406_v48 = vadd.f32 %v10133_v62, %v9653_v61 }
 0x5b5   : > { %v5297_v36 = vrot.slane %v5217_v11, 1  ;;  %v5189_v1 = vadd.f32 %v9664_v9, %v5153_v18  ;;  %v4877_v14 = vadd.f32 %v4831_v49, %v4402_v4 }
 0x5b6   : > { %5515 = vst.msk [vmem:[%s9697_s19 + $0x44] sm:$0xf] %vm5497_vm0, %v6016_v58  ;;  %v5385_v29 = vmax.f32 %v5357_v22, %v5359_v38  ;;  %v6928_v0 = vpop.f32.mrf.mxu1 }
 0x5b7   : > { %v5298_v17 = vsel %vm2691_vm2, %v5295_v42, %v5297_v36  ;;  %v5218_v10 = vmax.f32 %v5189_v1, 0.0  ;;  %v5154_v19 = vadd.f32 %v10128_v52, %v4877_v14 }
 0x5b8   : > { %v6017_v12 = vpack.c.bf16 %v5385_v29, %v5385_v29  ;;  %v5360_v53 = vmax.f32 %v5216_v28, %v5298_v17  ;;  %v4834_v39 = vpop.f32.mrf.mxu1 }
 0x5b9   : > { %v5299_v63 = vrot.slane %v5218_v10, 1  ;;  %v5190_v33 = vadd.f32 %v9664_v9, %v5154_v19  ;;  %v4878_v27 = vadd.f32 %v4834_v39, %v4403_v50 }
 0x5ba   : > { %5516 = vst.msk [vmem:[%s9697_s19 + $0x48] sm:$0xf] %vm5497_vm0, %v6017_v12  ;;  %v5386_v46 = vmax.f32 %v5358_v6, %v5360_v53  ;;  %v6929_v26 = vpop.f32.mrf.mxu1 }
 0x5bb   : > { %v5300_v47 = vsel %vm2691_vm2, %v5297_v36, %v5299_v63  ;;  %v5219_v45 = vmax.f32 %v5190_v33, 0.0  ;;  %v5155_v43 = vadd.f32 %v10130_v30, %v4878_v27 }
 0x5bc   : > { %v6018_v2 = vpack.c.bf16 %v5386_v46, %v5386_v46  ;;  %v5361_v57 = vmax.f32 %v5217_v11, %v5300_v47  ;;  %v4839_v22 = vpop.f32.mrf.mxu1 }
 0x5bd   : > { %v5301_v35 = vrot.slane %v5219_v45, 1  ;;  %v5191_v54 = vadd.f32 %v9664_v9, %v5155_v43  ;;  %v4879_v59 = vadd.f32 %v4839_v22, %v4404_v5 }
 0x5be   : > { %5517 = vst.msk [vmem:[%s9697_s19 + $0x4c] sm:$0xf] %vm5497_vm0, %v6018_v2  ;;  %v5387_v24 = vmax.f32 %v5359_v38, %v5361_v57  ;;  %v6932_v16 = vpop.f32.mrf.mxu1 }
 0x5bf   : > { %v5302_v23 = vsel %vm2691_vm2, %v5299_v63, %v5301_v35  ;;  %v5220_v21 = vmax.f32 %v5191_v54, 0.0  ;;  %v5156_v28 = vadd.f32 %v9649_v56, %v4879_v59 }
 0x5c0   : > { %v6019_v15 = vpack.c.bf16 %v5387_v24, %v5387_v24  ;;  %v5362_v3 = vmax.f32 %v5218_v10, %v5302_v23  ;;  %v4842_v31 = vpop.f32.mrf.mxu1 }
 0x5c1   : > { %v5303_v51 = vrot.slane %v5220_v21, 1  ;;  %v5192_v6 = vadd.f32 %v9664_v9, %v5156_v28  ;;  %v4880_v13 = vadd.f32 %v4842_v31, %v4405_v37 }
 0x5c2   : > { %5518 = vst.msk [vmem:[%s9697_s19 + $0x50] sm:$0xf] %vm5497_vm0, %v6019_v15  ;;  %v5388_v42 = vmax.f32 %v5360_v53, %v5362_v3  ;;  %v6933_v55 = vpop.f32.mrf.mxu1 }
 0x5c3   : > { %v5304_v20 = vsel %vm2691_vm2, %v5301_v35, %v5303_v51  ;;  %v5221_v25 = vmax.f32 %v5192_v6, 0.0  ;;  %v5157_v56 = vadd.f32 %v9655_v32, %v4880_v13 }
 0x5c4   : > { %v6020_v8 = vpack.c.bf16 %v5388_v42, %v5388_v42  ;;  %v5363_v11 = vmax.f32 %v5219_v45, %v5304_v20  ;;  %v4847_v40 = vpop.f32.mrf.mxu1 }
 0x5c5   : > { %v5305_v18 = vrot.slane %v5221_v25, 1  ;;  %v5193_v7 = vadd.f32 %v9664_v9, %v5157_v56  ;;  %v4881_v4 = vadd.f32 %v4847_v40, %v4406_v48 }
 0x5c6   : > { %5519 = vst.msk [vmem:[%s9697_s19 + $0x54] sm:$0xf] %vm5497_vm0, %v6020_v8  ;;  %v5389_v58 = vmax.f32 %v5361_v57, %v5363_v11  ;;  %v6936_v38 = vpop.f32.mrf.mxu1 }
 0x5c7   : > { %v5306_v49 = vsel %vm2691_vm2, %v5303_v51, %v5305_v18  ;;  %v5222_v36 = vmax.f32 %v5193_v7, 0.0  ;;  %v5158_v32 = vadd.f32 %v9657_v34, %v4881_v4 }
 0x5c8   : > { %v6021_v1 = vpack.c.bf16 %v5389_v58, %v5389_v58  ;;  %v5364_v61 = vmax.f32 %v5220_v21, %v5306_v49  ;;  %v4850_v14 = vpop.f32.mrf.mxu1 }
 0x5c9   : > { %v5307_v29 = vrot.slane %v5222_v36, 1  ;;  %v5194_v0 = vadd.f32 %v9664_v9, %v5158_v32 }
 0x5ca   : > { %5520 = vst.msk [vmem:[%s9697_s19 + $0x58] sm:$0xf] %vm5497_vm0, %v6021_v1  ;;  %v5390_v17 = vmax.f32 %v5362_v3, %v5364_v61  ;;  %v6937_v10 = vpop.f32.mrf.mxu1 }
 0x5cb   : > { %v5308_v52 = vsel %vm2691_vm2, %v5305_v18, %v5307_v29  ;;  %v5223_v19 = vmax.f32 %v5194_v0, 0.0 }
 0x5cc   : > { %v6022_v60 = vpack.c.bf16 %v5390_v17, %v5390_v17  ;;  %v5365_v50 = vmax.f32 %v5221_v25, %v5308_v52 }
 0x5cd   : > { %v5309_v12 = vrot.slane %v5223_v19, 1 }
 0x5ce   : > { %5521 = vst.msk [vmem:[%s9697_s19 + $0x5c] sm:$0xf] %vm5497_vm0, %v6022_v60  ;;  %v5391_v34 = vmax.f32 %v5363_v11, %v5365_v50 }
 0x5cf   : > { %v5310_v53 = vsel %vm2691_vm2, %v5307_v29, %v5309_v12 }
 0x5d0   : > { %v6023_v39 = vpack.c.bf16 %v5391_v34, %v5391_v34  ;;  %v5366_v63 = vmax.f32 %v5222_v36, %v5310_v53 }
 0x5d2   : > { %5522 = vst.msk [vmem:[%s9697_s19 + $0x60] sm:$0xf] %vm5497_vm0, %v6023_v39  ;;  %v5392_v9 = vmax.f32 %v5364_v61, %v5366_v63 }
 0x5d4   : > { %v6024_v33 = vpack.c.bf16 %v5392_v9, %v5392_v9 }
 0x5d6   : > { %5523 = vst.msk [vmem:[%s9697_s19 + $0x64] sm:$0xf] %vm5497_vm0, %v6024_v33 }
 0x5d7 PF: > { %s15_s18 = sadd.s32 1, %s7197_s18  }
 0x5d8   : > { %p12_p4 = scmp.ge.s32.totalorder %s15_s18, 4  }
 0x5da   :  { %14 = sbr.rel (!%p12_p4) target bundleno = 1 (0x1), region = 70 }

</bundles_post_ra>
